<compile_context>
chip_gen: v7x
topology: tpu7x:2x2x1
jax: 0.10.0
libtpu: 0.0.40
codegen_flags: <defaults>
</compile_context>

<pallas_src>
import functools

import jax
import jax.numpy as jnp
from jax.experimental import pallas as pl
from jax.experimental.pallas import tpu as pltpu

EXPANSION = 4
BN_EPS = 1e-5
_LANE = 128
_SUBLANE = 8
_VMEM_LIMIT = 32 * 1024 * 1024


def _rup(x, m):
    return ((x + m - 1) // m) * m


def _pad_rows(a, rows):
    if a.shape[0] == rows:
        return a
    return jnp.pad(a, ((0, rows - a.shape[0]),) + ((0, 0),) * (a.ndim - 1))


def _compiler_params(sem):
    return pltpu.CompilerParams(dimension_semantics=sem,
                                vmem_limit_bytes=_VMEM_LIMIT)


# ----------------------------------------------------------------------------
# Kernel 1: tiled matmul + per-column BatchNorm statistics (1x1 convs)
# ----------------------------------------------------------------------------
def _mm_stats_kernel(x_ref, w_ref, y_ref, stats_ref, acc_ref, stats_acc_ref):
    # grid = (N//tn, M//tm, K//tk); k is the contraction, m is swept
    # consecutively for each n so column stats accumulate in a VMEM scratch.
    m = pl.program_id(1)
    k = pl.program_id(2)

    @pl.when(k == 0)
    def _():
        acc_ref[...] = jnp.zeros_like(acc_ref)

    acc_ref[...] += jnp.dot(x_ref[...], w_ref[...],
                            preferred_element_type=jnp.float32)

    @pl.when(k == pl.num_programs(2) - 1)
    def _():
        yf = acc_ref[...]
        y_ref[...] = yf.astype(y_ref.dtype)
        row_sum = jnp.sum(yf, axis=0, keepdims=True)
        row_sq = jnp.sum(yf * yf, axis=0, keepdims=True)

        @pl.when(m == 0)
        def _():
            stats_acc_ref[0:1, :] = row_sum
            stats_acc_ref[1:2, :] = row_sq

        @pl.when(m > 0)
        def _():
            stats_acc_ref[0:1, :] = stats_acc_ref[0:1, :] + row_sum
            stats_acc_ref[1:2, :] = stats_acc_ref[1:2, :] + row_sq

        @pl.when(m == pl.num_programs(1) - 1)
        def _():
            stats_ref[...] = stats_acc_ref[...]


def matmul_bn_stats(x, w, *, compute_dtype=jnp.float32):
    """Tiled y = x @ w plus per-column (sum, sum_of_squares) statistics."""
    m_true, kdim = x.shape
    kdim2, ndim = w.shape
    assert kdim == kdim2 and kdim % _LANE == 0 and ndim % _LANE == 0

    tm = min(256, _rup(m_true, _SUBLANE))
    mp = _rup(m_true, tm)
    tk = 512 if kdim % 512 == 0 else (256 if kdim % 256 == 0 else 128)
    tn = 256 if ndim % 256 == 0 else 128

    xp = _pad_rows(x, mp).astype(compute_dtype)
    wp = w.astype(compute_dtype)

    y, stats = pl.pallas_call(
        _mm_stats_kernel,
        out_shape=(jax.ShapeDtypeStruct((mp, ndim), compute_dtype),
                   jax.ShapeDtypeStruct((2, ndim), jnp.float32)),
        grid=(ndim // tn, mp // tm, kdim // tk),
        in_specs=[
            pl.BlockSpec((tm, tk), lambda n, m, k: (m, k)),
            pl.BlockSpec((tk, tn), lambda n, m, k: (k, n)),
        ],
        out_specs=(
            pl.BlockSpec((tm, tn), lambda n, m, k: (m, n)),
            pl.BlockSpec((2, tn), lambda n, m, k: (0, n)),
        ),
        scratch_shapes=[pltpu.VMEM((tm, tn), jnp.float32),
                        pltpu.VMEM((2, tn), jnp.float32)],
        compiler_params=_compiler_params(("parallel", "arbitrary", "arbitrary")),
    )(xp, wp)
    return y, stats


# ----------------------------------------------------------------------------
# Kernel 2: 3x3 VALID conv as 9 shifted contiguous matmuls (no HBM im2col)
# ----------------------------------------------------------------------------
def _conv3x3_stats_kernel(x_ref, w_ref, y_ref, stats_ref, acc_ref,
                          stats_acc_ref, *, width, ho, wo):
    # x_ref: (1, HWp, tk) row-flattened image (+ zero slack rows)
    # w_ref: (9, tk, tn)
    # y_ref: (1, HOWp, tn) "wide" output rows (full input width); invalid
    #        columns are masked out of the stats and dropped by the wrapper.
    b = pl.program_id(1)
    k = pl.program_id(2)
    howp = y_ref.shape[1]

    @pl.when(k == 0)
    def _():
        acc_ref[...] = jnp.zeros_like(acc_ref)

    acc = acc_ref[...]
    for tap in range(9):
        dh, dw = tap // 3, tap % 3
        off = dh * width + dw
        acc = acc + jnp.dot(x_ref[0, off:off + howp, :], w_ref[tap],
                            preferred_element_type=jnp.float32)
    acc_ref[...] = acc

    @pl.when(k == pl.num_programs(2) - 1)
    def _():
        yf = acc_ref[...]
        y_ref[0] = yf.astype(y_ref.dtype)
        r = jax.lax.broadcasted_iota(jnp.int32, (howp, 1), 0)
        valid = (r < ho * width) & ((r % width) < wo)
        ym = jnp.where(valid, yf, 0.0)
        row_sum = jnp.sum(ym, axis=0, keepdims=True)
        row_sq = jnp.sum(ym * ym, axis=0, keepdims=True)

        @pl.when(b == 0)
        def _():
            stats_acc_ref[0:1, :] = row_sum
            stats_acc_ref[1:2, :] = row_sq

        @pl.when(b > 0)
        def _():
            stats_acc_ref[0:1, :] = stats_acc_ref[0:1, :] + row_sum
            stats_acc_ref[1:2, :] = stats_acc_ref[1:2, :] + row_sq

        @pl.when(b == pl.num_programs(1) - 1)
        def _():
            stats_ref[...] = stats_acc_ref[...]


def conv3x3_bn_stats(x3, w9, *, width, ho, wo, compute_dtype=jnp.float32):
    nb, hwp, kdim = x3.shape
    nine, kdim2, ndim = w9.shape
    assert nine == 9 and kdim == kdim2
    assert kdim % _LANE == 0 and ndim % _LANE == 0
    howp = _rup(ho * width, _SUBLANE)
    assert hwp >= 2 * width + 2 + howp and hwp % _SUBLANE == 0

    tk = 256 if kdim % 256 == 0 else 128
    tn = 256 if ndim % 256 == 0 else 128

    kernel = functools.partial(_conv3x3_stats_kernel, width=width, ho=ho, wo=wo)
    y, stats = pl.pallas_call(
        kernel,
        out_shape=(jax.ShapeDtypeStruct((nb, howp, ndim), compute_dtype),
                   jax.ShapeDtypeStruct((2, ndim), jnp.float32)),
        grid=(ndim // tn, nb, kdim // tk),
        in_specs=[
            pl.BlockSpec((1, hwp, tk), lambda n, b, k: (b, 0, k)),
            pl.BlockSpec((9, tk, tn), lambda n, b, k: (0, k, n)),
        ],
        out_specs=(
            pl.BlockSpec((1, howp, tn), lambda n, b, k: (b, 0, n)),
            pl.BlockSpec((2, tn), lambda n, b, k: (0, n)),
        ),
        scratch_shapes=[pltpu.VMEM((howp, tn), jnp.float32),
                        pltpu.VMEM((2, tn), jnp.float32)],
        compiler_params=_compiler_params(("parallel", "arbitrary", "arbitrary")),
    )(x3.astype(compute_dtype), w9.astype(compute_dtype))
    return y, stats


# ----------------------------------------------------------------------------
# Kernel 3: BatchNorm apply (+ fused residual add + ReLU), row-tiled
# ----------------------------------------------------------------------------
def _bn_apply_kernel(*refs, inv_rows, eps, relu, res_mode):
    if res_mode == "bn":
        y_ref, s_ref, g_ref, b_ref, y2_ref, s2_ref, g2_ref, b2_ref, o_ref = refs
    elif res_mode == "raw":
        y_ref, s_ref, g_ref, b_ref, r_ref, o_ref = refs
    else:
        y_ref, s_ref, g_ref, b_ref, o_ref = refs

    def norm(y_r, s_r, g_r, b_r):
        mean = s_r[0:1, :] * inv_rows
        var = jnp.maximum(s_r[1:2, :] * inv_rows - mean * mean, 0.0)
        scale = jax.lax.rsqrt(var + eps) * g_r[...]
        return (y_r[...].astype(jnp.float32) - mean) * scale + b_r[...]

    out = norm(y_ref, s_ref, g_ref, b_ref)
    if res_mode == "bn":
        out = out + norm(y2_ref, s2_ref, g2_ref, b2_ref)
    elif res_mode == "raw":
        out = out + r_ref[...].astype(jnp.float32)
    if relu:
        out = jnp.maximum(out, 0.0)
    o_ref[...] = out.astype(o_ref.dtype)


def bn_apply(y, stats, gamma, beta, *, n_rows, relu, out_dtype=jnp.float32,
             raw_residual=None, bn_residual=None):
    m_in, ndim = y.shape
    assert ndim % _LANE == 0
    tm = _rup(m_in, _SUBLANE) if m_in <= 1024 else 256
    mp = _rup(m_in, tm)
    y = _pad_rows(y, mp)

    row_spec = pl.BlockSpec((tm, ndim), lambda i: (i, 0))
    vec_spec = pl.BlockSpec((1, ndim), lambda i: (0, 0))
    stat_spec = pl.BlockSpec((2, ndim), lambda i: (0, 0))

    inputs = [y, stats, gamma, beta]
    in_specs = [row_spec, stat_spec, vec_spec, vec_spec]
    res_mode = "none"
    if bn_residual is not None:
        res_mode = "bn"
        y2, s2, g2, b2 = bn_residual
        assert y2.shape == (m_in, ndim)
        inputs += [_pad_rows(y2, mp), s2, g2, b2]
        in_specs += [row_spec, stat_spec, vec_spec, vec_spec]
    elif raw_residual is not None:
        res_mode = "raw"
        assert raw_residual.shape[1] == ndim
        inputs += [_pad_rows(raw_residual, mp)]
        in_specs += [row_spec]

    kernel = functools.partial(_bn_apply_kernel, inv_rows=1.0 / float(n_rows),
                               eps=BN_EPS, relu=relu, res_mode=res_mode)
    return pl.pallas_call(
        kernel,
        out_shape=jax.ShapeDtypeStruct((mp, ndim), out_dtype),
        grid=(mp // tm,),
        in_specs=in_specs,
        out_specs=row_spec,
        compiler_params=_compiler_params(("parallel",)),
    )(*inputs)


# ----------------------------------------------------------------------------
# Kernel 4: AvgPool2d(stride) on NHWC, no HBM transpose
# ----------------------------------------------------------------------------
def _avgpool_kernel(x_ref, o_ref, *, s):
    acc = x_ref[:, 0, :, 0, :].astype(jnp.float32)
    for i in range(s):
        for j in range(s):
            if i == 0 and j == 0:
                continue
            acc = acc + x_ref[:, i, :, j, :].astype(jnp.float32)
    o_ref[...] = (acc * (1.0 / (s * s))).astype(o_ref.dtype)


def avgpool_nhwc(x, s):
    """torch.nn.AvgPool2d(kernel=s, stride=s, padding=0) on NHWC data."""
    if s == 1:
        return x
    nb, h, w, c = x.shape
    hp, wp = h // s, w // s
    assert c % _LANE == 0
    xr = x[:, :hp * s, :wp * s, :].reshape(nb * hp, s, wp, s, c)
    rows = nb * hp
    tr = min(256, rows)
    out = pl.pallas_call(
        functools.partial(_avgpool_kernel, s=s),
        out_shape=jax.ShapeDtypeStruct((rows, wp, c), x.dtype),
        grid=(pl.cdiv(rows, tr),),
        in_specs=[pl.BlockSpec((tr, s, wp, s, c), lambda i: (i, 0, 0, 0, 0))],
        out_specs=pl.BlockSpec((tr, wp, c), lambda i: (i, 0, 0)),
        compiler_params=_compiler_params(("parallel",)),
    )(xr)
    return out.reshape(nb, hp, wp, c)


# ----------------------------------------------------------------------------
# Parameter preparation (layout / zero padding; glue only)
# ----------------------------------------------------------------------------
def _prep_w_1x1(w_oihw, k_pad, n_pad):
    cout, cin = w_oihw.shape[0], w_oihw.shape[1]
    w2d = jnp.transpose(w_oihw[:, :, 0, 0], (1, 0))          # (cin, cout)
    return jnp.pad(w2d, ((0, k_pad - cin), (0, n_pad - cout)))


def _prep_w_3x3(w_oihw, k_pad, n_pad):
    cout, cin = w_oihw.shape[0], w_oihw.shape[1]
    w = jnp.transpose(w_oihw, (2, 3, 1, 0))                   # (3, 3, cin, cout)
    w = jnp.pad(w, ((0, 0), (0, 0), (0, k_pad - cin), (0, n_pad - cout)))
    return w.reshape(9, k_pad, n_pad)


def _prep_bn(bn, n_pad):
    c = bn["gamma"].shape[0]
    g = jnp.pad(bn["gamma"], (0, n_pad - c), constant_values=1.0).reshape(1, n_pad)
    b = jnp.pad(bn["beta"], (0, n_pad - c)).reshape(1, n_pad)
    return g, b


def init_bottleneck_params(key, inplanes, planes, stride):
    keys = jax.random.split(key, 12)

    def conv_w(k, cout, cin, kh, kw):
        fan_in = cin * kh * kw
        return jax.random.normal(k, (cout, cin, kh, kw), jnp.float32) / jnp.sqrt(
            jnp.float32(fan_in))

    def bn_p(kg, kb, c):
        return {
            "gamma": 1.0 + 0.1 * jax.random.normal(kg, (c,), jnp.float32),
            "beta": 0.1 * jax.random.normal(kb, (c,), jnp.float32),
        }

    params = {
        "conv1": conv_w(keys[0], planes, inplanes, 1, 1),
        "bn1": bn_p(keys[1], keys[2], planes),
        "conv2": conv_w(keys[3], planes, planes, 3, 3),
        "bn2": bn_p(keys[4], keys[5], planes),
        # NB: module declares conv3 with in_channels = inplanes (as written).
        "conv3": conv_w(keys[6], planes * EXPANSION, inplanes, 1, 1),
        "bn3": bn_p(keys[7], keys[8], planes * EXPANSION),
    }
    if stride > 1 or inplanes != planes * EXPANSION:
        params["downsample_conv"] = conv_w(keys[9], planes * EXPANSION, inplanes, 1, 1)
        params["downsample_bn"] = bn_p(keys[10], keys[11], planes * EXPANSION)
    return params


# ----------------------------------------------------------------------------
# BottleNeck forward (Pallas)
# ----------------------------------------------------------------------------
def bottleneck_forward(params, x_nchw, *, inplanes, planes, stride,
                       compute_dtype=jnp.float32):
    assert inplanes == planes, (
        "conv3 takes `inplanes` input channels but is applied to a `planes`-"
        "channel tensor in the reference module; forward only runs when "
        "inplanes == planes")
    batch, cin, h, w = x_nchw.shape
    assert cin == inplanes and h >= 3 and w >= 3
    cout3 = planes * EXPANSION

    cin_p = _rup(cin, _LANE)
    p_p = _rup(planes, _LANE)
    n3_p = _rup(cout3, _LANE)

    # NCHW -> NHWC, zero-pad channels to a lane-dense multiple of 128.
    x = jnp.transpose(x_nchw, (0, 2, 3, 1)).astype(jnp.float32)
    x_p = jnp.pad(x, ((0, 0), (0, 0), (0, 0), (0, cin_p - cin)))

    # --- conv1 (1x1) + bn1 + relu -------------------------------------------
    w1 = _prep_w_1x1(params["conv1"], cin_p, p_p)
    g1, b1 = _prep_bn(params["bn1"], p_p)
    m1 = batch * h * w
    y1, s1 = matmul_bn_stats(x_p.reshape(m1, cin_p), w1, compute_dtype=compute_dtype)
    o1 = bn_apply(y1, s1, g1, b1, n_rows=m1, relu=True,
                  out_dtype=compute_dtype)[:m1]

    # --- conv2 (3x3, VALID) + bn2 + relu ------------------------------------
    ho, wo = h - 2, w - 2
    howp = _rup(ho * w, _SUBLANE)
    hwp = _rup(2 * w + 2 + howp, _SUBLANE)
    x2 = jnp.pad(o1.reshape(batch, h * w, p_p), ((0, 0), (0, hwp - h * w), (0, 0)))
    w2 = _prep_w_3x3(params["conv2"], p_p, p_p)
    g2, b2 = _prep_bn(params["bn2"], p_p)
    y2w, s2 = conv3x3_bn_stats(x2, w2, width=w, ho=ho, wo=wo,
                               compute_dtype=compute_dtype)
    y2 = y2w[:, :ho * w, :].reshape(batch, ho, w, p_p)[:, :, :wo, :]
    m2 = batch * ho * wo
    o2 = bn_apply(y2.reshape(m2, p_p), s2, g2, b2, n_rows=m2, relu=True,
                  out_dtype=compute_dtype)[:m2].reshape(batch, ho, wo, p_p)

    # --- avgpool (main path) + conv3 (1x1) ----------------------------------
    if stride > 1:
        o2 = avgpool_nhwc(o2, stride)
    hp, wp_ = o2.shape[1], o2.shape[2]
    m3 = batch * hp * wp_
    w3 = _prep_w_1x1(params["conv3"], p_p, n3_p)
    g3, b3 = _prep_bn(params["bn3"], n3_p)
    y3, s3 = matmul_bn_stats(o2.reshape(m3, p_p), w3, compute_dtype=compute_dtype)

    # --- identity / downsample path, fused into the final bn+add+relu -------
    if "downsample_conv" in params:
        idn = avgpool_nhwc(x_p, stride) if stride > 1 else x_p
        assert idn.shape[1] == hp and idn.shape[2] == wp_, (idn.shape, (hp, wp_))
        wd = _prep_w_1x1(params["downsample_conv"], cin_p, n3_p)
        gd, bd = _prep_bn(params["downsample_bn"], n3_p)
        yd, sd = matmul_bn_stats(idn.reshape(m3, cin_p), wd,
                                 compute_dtype=compute_dtype)
        out = bn_apply(y3, s3, g3, b3, n_rows=m3, relu=True,
                       out_dtype=jnp.float32, bn_residual=(yd, sd, gd, bd))
    else:
        # Unreachable given the inplanes == planes assertion; kept for symmetry.
        idn2d = _pad_rows(x_p.reshape(batch * h * w, cin_p), y3.shape[0])
        out = bn_apply(y3, s3, g3, b3, n_rows=m3, relu=True,
                       out_dtype=jnp.float32, raw_residual=idn2d)

    res = out[:m3, :cout3].reshape(batch, hp, wp_, cout3)
    return jnp.transpose(res, (0, 3, 1, 2))                   # NHWC -> NCHW


# ----------------------------------------------------------------------------
# Pure-JAX reference (independent: lax.conv + reduce_window), for validation
# ----------------------------------------------------------------------------
def bottleneck_reference(params, x_nchw, stride):
    dn = ("NCHW", "OIHW", "NCHW")

    def conv(x, w):
        return jax.lax.conv_general_dilated(x, w, (1, 1), "VALID", dimension_numbers=dn)

    def bn(x, p):
        mu = jnp.mean(x, axis=(0, 2, 3), keepdims=True)
        var = jnp.mean((x - mu) ** 2, axis=(0, 2, 3), keepdims=True)
        g = p["gamma"].reshape(1, -1, 1, 1)
        b = p["beta"].reshape(1, -1, 1, 1)
        return (x - mu) / jnp.sqrt(var + BN_EPS) * g + b

    def avgpool(x, s):
        if s == 1:
            return x
        y = jax.lax.reduce_window(x, 0.0, jax.lax.add, (1, 1, s, s), (1, 1, s, s), "VALID")
        return y / float(s * s)

    out = jax.nn.relu(bn(conv(x_nchw, params["conv1"]), params["bn1"]))
    out = jax.nn.relu(bn(conv(out, params["conv2"]), params["bn2"]))
    out = avgpool(out, stride)
    out = bn(conv(out, params["conv3"]), params["bn3"])
    if "downsample_conv" in params:
        idn = avgpool(x_nchw, stride)
        idn = bn(conv(idn, params["downsample_conv"]), params["downsample_bn"])
    else:
        idn = x_nchw
    return jax.nn.relu(out + idn)


if __name__ == "__main__":
    def run_case(name, batch, inplanes, planes, stride, h, w, compute_dtype, tol):
        key = jax.random.PRNGKey(0)
        kx, kp = jax.random.split(key)
        x = jax.random.normal(kx, (batch, inplanes, h, w), jnp.float32)
        params = init_bottleneck_params(kp, inplanes, planes, stride)

        fwd = jax.jit(functools.partial(
            bottleneck_forward, inplanes=inplanes, planes=planes, stride=stride,
            compute_dtype=compute_dtype))
        out = jax.block_until_ready(fwd(params, x))
        ref = jax.block_until_ready(bottleneck_reference(params, x, stride))
        assert out.shape == ref.shape, (name, out.shape, ref.shape)
        err = float(jnp.max(jnp.abs(out - ref)))
        assert err < tol, f"{name}: max abs err {err} >= {tol}"
        return err

    # The module as written needs inplanes == planes (conv3 quirk) and a stride
    # with floor((H-2)/s) == floor(H/s) so the residual spatial shapes line up.
    run_case("small_f32", 2, 4, 4, 3, 8, 8, jnp.float32, 2e-4)
    # Bigger config exercising multi-block M tiling + cross-tile BN statistics.
    run_case("medium_f32", 4, 64, 64, 3, 11, 11, jnp.float32, 1e-3)
    # bf16 MXU inputs with f32 accumulation and f32 BN math (looser tolerance).
    run_case("small_bf16", 2, 4, 4, 3, 8, 8, jnp.bfloat16, 1.5e-1)
    print("KERNEL_OK")
</pallas_src>

<mosaic_0001>
module attributes {stable_mosaic.version = 11 : i64} {
  func.func @_mm_stats_kernel(%arg0: i32, %arg1: i32, %arg2: i32, %arg3: memref<128x128xf32, #tpu.memory_space<vmem>>, %arg4: memref<128x128xf32, #tpu.memory_space<vmem>>, %arg5: memref<128x128xf32, #tpu.memory_space<vmem>>, %arg6: memref<2x128xf32, #tpu.memory_space<vmem>>, %arg7: memref<128x128xf32, #tpu.memory_space<vmem>>, %arg8: memref<2x128xf32, #tpu.memory_space<vmem>>) attributes {dimension_semantics = [#tpu.dimension_semantics<parallel>, #tpu.dimension_semantics<arbitrary>, #tpu.dimension_semantics<arbitrary>], iteration_bounds = array<i64: 1, 1, 1>, scalar_prefetch = 0 : i64, scratch_operands = 2 : i64, tpu.core_type = #tpu.core_type<tc>, window_params = [{transform_indices = @transform_0, window_bounds = array<i64: 128, 128>}, {transform_indices = @transform_1, window_bounds = array<i64: 128, 128>}, {transform_indices = @transform_2, window_bounds = array<i64: 128, 128>}, {transform_indices = @transform_3, window_bounds = array<i64: 2, 128>}]} {
    %c0_i32 = arith.constant 0 : i32
    %0 = arith.cmpi eq, %arg2, %c0_i32 : i32
    %1 = arith.extui %0 : i1 to i32
    %c0_i32_0 = arith.constant 0 : i32
    %2 = arith.cmpi ne, %1, %c0_i32_0 : i32
    scf.if %2 {
      %cst_10 = arith.constant 0.000000e+00 : f32
      %12 = vector.broadcast %cst_10 : f32 to vector<128x128xf32>
      %c0_11 = arith.constant 0 : index
      %c0_12 = arith.constant 0 : index
      %13 = vector.load %arg7[%c0_11, %c0_12] : memref<128x128xf32, #tpu.memory_space<vmem>>, vector<128x128xf32>
      tpu.vector_store %arg7[%c0_11, %c0_12], %12 {strides = array<i32>} : memref<128x128xf32, #tpu.memory_space<vmem>>, vector<128x128xf32>,
    } else {
    }
    %c0 = arith.constant 0 : index
    %c0_1 = arith.constant 0 : index
    %3 = vector.load %arg7[%c0, %c0_1] : memref<128x128xf32, #tpu.memory_space<vmem>>, vector<128x128xf32>
    %c0_2 = arith.constant 0 : index
    %c0_3 = arith.constant 0 : index
    %4 = vector.load %arg3[%c0_2, %c0_3] : memref<128x128xf32, #tpu.memory_space<vmem>>, vector<128x128xf32>
    %c0_4 = arith.constant 0 : index
    %c0_5 = arith.constant 0 : index
    %5 = vector.load %arg4[%c0_4, %c0_5] : memref<128x128xf32, #tpu.memory_space<vmem>>, vector<128x128xf32>
    %cst = arith.constant dense<0.000000e+00> : vector<128x128xf32>
    %6 = tpu.matmul %4, %5, %cst {dimension_numbers = #tpu.dot_dimension_numbers<[1], [0], [0], [1], [0, 0, 1, 1], [], []>} : vector<128x128xf32>, vector<128x128xf32>, vector<128x128xf32> -> vector<128x128xf32>
    %7 = arith.addf %3, %6 : vector<128x128xf32>
    %c0_6 = arith.constant 0 : index
    %c0_7 = arith.constant 0 : index
    %8 = vector.load %arg7[%c0_6, %c0_7] : memref<128x128xf32, #tpu.memory_space<vmem>>, vector<128x128xf32>
    tpu.vector_store %arg7[%c0_6, %c0_7], %7 {strides = array<i32>} : memref<128x128xf32, #tpu.memory_space<vmem>>, vector<128x128xf32>,
    %c0_i32_8 = arith.constant 0 : i32
    %9 = arith.cmpi eq, %arg2, %c0_i32_8 : i32
    %10 = arith.extui %9 : i1 to i32
    %c0_i32_9 = arith.constant 0 : i32
    %11 = arith.cmpi ne, %10, %c0_i32_9 : i32
    scf.if %11 {
      %c0_10 = arith.constant 0 : index
      %c0_11 = arith.constant 0 : index
      %12 = vector.load %arg7[%c0_10, %c0_11] : memref<128x128xf32, #tpu.memory_space<vmem>>, vector<128x128xf32>
      %c0_12 = arith.constant 0 : index
      %c0_13 = arith.constant 0 : index
      %13 = vector.load %arg5[%c0_12, %c0_13] : memref<128x128xf32, #tpu.memory_space<vmem>>, vector<128x128xf32>
      tpu.vector_store %arg5[%c0_12, %c0_13], %12 {strides = array<i32>} : memref<128x128xf32, #tpu.memory_space<vmem>>, vector<128x128xf32>,
      %cst_14 = arith.constant dense<0.000000e+00> : vector<128xf32>
      %14 = vector.multi_reduction <add>, %12, %cst_14 [0] : vector<128x128xf32> to vector<128xf32>
      %15 = vector.shape_cast %14 : vector<128xf32> to vector<1x128xf32>
      %16 = arith.mulf %12, %12 : vector<128x128xf32>
      %cst_15 = arith.constant dense<0.000000e+00> : vector<128xf32>
      %17 = vector.multi_reduction <add>, %16, %cst_15 [0] : vector<128x128xf32> to vector<128xf32>
      %18 = vector.shape_cast %17 : vector<128xf32> to vector<1x128xf32>
      %c0_i32_16 = arith.constant 0 : i32
      %19 = arith.cmpi eq, %arg1, %c0_i32_16 : i32
      %20 = arith.extui %19 : i1 to i32
      %c0_i32_17 = arith.constant 0 : i32
      %21 = arith.cmpi ne, %20, %c0_i32_17 : i32
      scf.if %21 {
        %c0_22 = arith.constant 0 : index
        %c0_23 = arith.constant 0 : index
        %28 = vector.load %arg8[%c0_22, %c0_23] : memref<2x128xf32, #tpu.memory_space<vmem>>, vector<1x128xf32>
        tpu.vector_store %arg8[%c0_22, %c0_23], %15 {strides = array<i32>} : memref<2x128xf32, #tpu.memory_space<vmem>>, vector<1x128xf32>,
        %c1 = arith.constant 1 : index
        %c0_24 = arith.constant 0 : index
        %29 = vector.load %arg8[%c1, %c0_24] : memref<2x128xf32, #tpu.memory_space<vmem>>, vector<1x128xf32>
        tpu.vector_store %arg8[%c1, %c0_24], %18 {strides = array<i32>} : memref<2x128xf32, #tpu.memory_space<vmem>>, vector<1x128xf32>,
      } else {
      }
      %c0_i32_18 = arith.constant 0 : i32
      %22 = arith.cmpi sgt, %arg1, %c0_i32_18 : i32
      %23 = arith.extui %22 : i1 to i32
      %c0_i32_19 = arith.constant 0 : i32
      %24 = arith.cmpi ne, %23, %c0_i32_19 : i32
      scf.if %24 {
        %c0_22 = arith.constant 0 : index
        %c0_23 = arith.constant 0 : index
        %28 = vector.load %arg8[%c0_22, %c0_23] : memref<2x128xf32, #tpu.memory_space<vmem>>, vector<1x128xf32>
        %29 = arith.addf %28, %15 : vector<1x128xf32>
        %c0_24 = arith.constant 0 : index
        %c0_25 = arith.constant 0 : index
        %30 = vector.load %arg8[%c0_24, %c0_25] : memref<2x128xf32, #tpu.memory_space<vmem>>, vector<1x128xf32>
        tpu.vector_store %arg8[%c0_24, %c0_25], %29 {strides = array<i32>} : memref<2x128xf32, #tpu.memory_space<vmem>>, vector<1x128xf32>,
        %c1 = arith.constant 1 : index
        %c0_26 = arith.constant 0 : index
        %31 = vector.load %arg8[%c1, %c0_26] : memref<2x128xf32, #tpu.memory_space<vmem>>, vector<1x128xf32>
        %32 = arith.addf %31, %18 : vector<1x128xf32>
        %c1_27 = arith.constant 1 : index
        %c0_28 = arith.constant 0 : index
        %33 = vector.load %arg8[%c1_27, %c0_28] : memref<2x128xf32, #tpu.memory_space<vmem>>, vector<1x128xf32>
        tpu.vector_store %arg8[%c1_27, %c0_28], %32 {strides = array<i32>} : memref<2x128xf32, #tpu.memory_space<vmem>>, vector<1x128xf32>,
      } else {
      }
      %c0_i32_20 = arith.constant 0 : i32
      %25 = arith.cmpi eq, %arg1, %c0_i32_20 : i32
      %26 = arith.extui %25 : i1 to i32
      %c0_i32_21 = arith.constant 0 : i32
      %27 = arith.cmpi ne, %26, %c0_i32_21 : i32
      scf.if %27 {
        %c0_22 = arith.constant 0 : index
        %c0_23 = arith.constant 0 : index
        %28 = vector.load %arg8[%c0_22, %c0_23] : memref<2x128xf32, #tpu.memory_space<vmem>>, vector<2x128xf32>
        %c0_24 = arith.constant 0 : index
        %c0_25 = arith.constant 0 : index
        %29 = vector.load %arg6[%c0_24, %c0_25] : memref<2x128xf32, #tpu.memory_space<vmem>>, vector<2x128xf32>
        tpu.vector_store %arg6[%c0_24, %c0_25], %28 {strides = array<i32>} : memref<2x128xf32, #tpu.memory_space<vmem>>, vector<2x128xf32>,
      } else {
      }
    } else {
    }
    return
  }
  func.func @transform_0(%arg0: i32, %arg1: i32, %arg2: i32) -> (i32, i32) {
    %c0_i32 = arith.constant 0 : i32
    return %arg1, %arg2 : i32, i32
  }
  func.func @transform_1(%arg0: i32, %arg1: i32, %arg2: i32) -> (i32, i32) {
    %c0_i32 = arith.constant 0 : i32
    return %arg2, %arg0 : i32, i32
  }
  func.func @transform_2(%arg0: i32, %arg1: i32, %arg2: i32) -> (i32, i32) {
    %c0_i32 = arith.constant 0 : i32
    return %arg1, %arg0 : i32, i32
  }
  func.func @transform_3(%arg0: i32, %arg1: i32, %arg2: i32) -> (i32, i32) {
    %c0_i32 = arith.constant 0 : i32
    %c0_i32_0 = arith.constant 0 : i32
    return %c0_i32, %arg0 : i32, i32
  }
}

module attributes {stable_mosaic.version = 11 : i64} {
  func.func @_bn_apply_kernel(%arg0: i32, %arg1: memref<128x128xf32, #tpu.memory_space<vmem>>, %arg2: memref<2x128xf32, #tpu.memory_space<vmem>>, %arg3: memref<1x128xf32, #tpu.memory_space<vmem>>, %arg4: memref<1x128xf32, #tpu.memory_space<vmem>>, %arg5: memref<128x128xf32, #tpu.memory_space<vmem>>) attributes {dimension_semantics = [#tpu.dimension_semantics<parallel>], iteration_bounds = array<i64: 1>, scalar_prefetch = 0 : i64, scratch_operands = 0 : i64, tpu.core_type = #tpu.core_type<tc>, window_params = [{transform_indices = @transform_0, window_bounds = array<i64: 128, 128>}, {pipeline_mode = #tpu.pipeline_mode<synchronous>, transform_indices = @transform_1, window_bounds = array<i64: 2, 128>}, {pipeline_mode = #tpu.pipeline_mode<synchronous>, transform_indices = @transform_2, window_bounds = array<i64: 1, 128>}, {pipeline_mode = #tpu.pipeline_mode<synchronous>, transform_indices = @transform_3, window_bounds = array<i64: 1, 128>}, {transform_indices = @transform_4, window_bounds = array<i64: 128, 128>}]} {
    %c0 = arith.constant 0 : index
    %c0_0 = arith.constant 0 : index
    %0 = vector.load %arg2[%c0, %c0_0] : memref<2x128xf32, #tpu.memory_space<vmem>>, vector<1x128xf32>
    %cst = arith.constant 7.812500e-03 : f32
    %1 = vector.broadcast %cst : f32 to vector<1x128xf32>
    %2 = arith.mulf %0, %1 : vector<1x128xf32>
    %c1 = arith.constant 1 : index
    %c0_1 = arith.constant 0 : index
    %3 = vector.load %arg2[%c1, %c0_1] : memref<2x128xf32, #tpu.memory_space<vmem>>, vector<1x128xf32>
    %cst_2 = arith.constant 7.812500e-03 : f32
    %4 = vector.broadcast %cst_2 : f32 to vector<1x128xf32>
    %5 = arith.mulf %3, %4 : vector<1x128xf32>
    %6 = arith.mulf %2, %2 : vector<1x128xf32>
    %7 = arith.subf %5, %6 : vector<1x128xf32>
    %cst_3 = arith.constant 0.000000e+00 : f32
    %8 = vector.broadcast %cst_3 : f32 to vector<1x128xf32>
    %9 = arith.maximumf %7, %8 : vector<1x128xf32>
    %cst_4 = arith.constant 9.99999974E-6 : f32
    %10 = vector.broadcast %cst_4 : f32 to vector<1x128xf32>
    %11 = arith.addf %9, %10 : vector<1x128xf32>
    %12 = math.rsqrt %11 : vector<1x128xf32>
    %c0_5 = arith.constant 0 : index
    %c0_6 = arith.constant 0 : index
    %13 = vector.load %arg3[%c0_5, %c0_6] : memref<1x128xf32, #tpu.memory_space<vmem>>, vector<1x128xf32>
    %14 = arith.mulf %12, %13 : vector<1x128xf32>
    %c0_7 = arith.constant 0 : index
    %c0_8 = arith.constant 0 : index
    %15 = vector.load %arg1[%c0_7, %c0_8] : memref<128x128xf32, #tpu.memory_space<vmem>>, vector<128x128xf32>
    %16 = vector.broadcast %2 : vector<1x128xf32> to vector<128x128xf32>
    %17 = arith.subf %15, %16 : vector<128x128xf32>
    %18 = vector.broadcast %14 : vector<1x128xf32> to vector<128x128xf32>
    %19 = arith.mulf %17, %18 : vector<128x128xf32>
    %c0_9 = arith.constant 0 : index
    %c0_10 = arith.constant 0 : index
    %20 = vector.load %arg4[%c0_9, %c0_10] : memref<1x128xf32, #tpu.memory_space<vmem>>, vector<1x128xf32>
    %21 = vector.broadcast %20 : vector<1x128xf32> to vector<128x128xf32>
    %22 = arith.addf %19, %21 : vector<128x128xf32>
    %cst_11 = arith.constant 0.000000e+00 : f32
    %23 = vector.broadcast %cst_11 : f32 to vector<128x128xf32>
    %24 = arith.maximumf %22, %23 : vector<128x128xf32>
    %c0_12 = arith.constant 0 : index
    %c0_13 = arith.constant 0 : index
    %25 = vector.load %arg5[%c0_12, %c0_13] : memref<128x128xf32, #tpu.memory_space<vmem>>, vector<128x128xf32>
    tpu.vector_store %arg5[%c0_12, %c0_13], %24 {strides = array<i32>} : memref<128x128xf32, #tpu.memory_space<vmem>>, vector<128x128xf32>,
    return
  }
  func.func @transform_0(%arg0: i32) -> (i32, i32) {
    %c0_i32 = arith.constant 0 : i32
    %c0_i32_0 = arith.constant 0 : i32
    return %arg0, %c0_i32 : i32, i32
  }
  func.func @transform_1(%arg0: i32) -> (i32, i32) {
    %c0_i32 = arith.constant 0 : i32
    %c0_i32_0 = arith.constant 0 : i32
    %c0_i32_1 = arith.constant 0 : i32
    return %c0_i32, %c0_i32_0 : i32, i32
  }
  func.func @transform_2(%arg0: i32) -> (i32, i32) {
    %c0_i32 = arith.constant 0 : i32
    %c0_i32_0 = arith.constant 0 : i32
    %c0_i32_1 = arith.constant 0 : i32
    return %c0_i32, %c0_i32_0 : i32, i32
  }
  func.func @transform_3(%arg0: i32) -> (i32, i32) {
    %c0_i32 = arith.constant 0 : i32
    %c0_i32_0 = arith.constant 0 : i32
    %c0_i32_1 = arith.constant 0 : i32
    return %c0_i32, %c0_i32_0 : i32, i32
  }
  func.func @transform_4(%arg0: i32) -> (i32, i32) {
    %c0_i32 = arith.constant 0 : i32
    %c0_i32_0 = arith.constant 0 : i32
    return %arg0, %c0_i32 : i32, i32
  }
}

module attributes {stable_mosaic.version = 11 : i64} {
  func.func @_conv3x3_stats_kernel(%arg0: i32, %arg1: i32, %arg2: i32, %arg3: memref<1x72x128xf32, #tpu.memory_space<vmem>>, %arg4: memref<9x128x128xf32, #tpu.memory_space<vmem>>, %arg5: memref<1x48x128xf32, #tpu.memory_space<vmem>>, %arg6: memref<2x128xf32, #tpu.memory_space<vmem>>, %arg7: memref<48x128xf32, #tpu.memory_space<vmem>>, %arg8: memref<2x128xf32, #tpu.memory_space<vmem>>) attributes {dimension_semantics = [#tpu.dimension_semantics<parallel>, #tpu.dimension_semantics<arbitrary>, #tpu.dimension_semantics<arbitrary>], iteration_bounds = array<i64: 1, 2, 1>, scalar_prefetch = 0 : i64, scratch_operands = 2 : i64, tpu.core_type = #tpu.core_type<tc>, window_params = [{transform_indices = @transform_0, window_bounds = array<i64: 1, 72, 128>}, {transform_indices = @transform_1, window_bounds = array<i64: 9, 128, 128>}, {transform_indices = @transform_2, window_bounds = array<i64: 1, 48, 128>}, {transform_indices = @transform_3, window_bounds = array<i64: 2, 128>}]} {
    %c0_i32 = arith.constant 0 : i32
    %0 = arith.cmpi eq, %arg2, %c0_i32 : i32
    %1 = arith.extui %0 : i1 to i32
    %c0_i32_0 = arith.constant 0 : i32
    %2 = arith.cmpi ne, %1, %c0_i32_0 : i32
    scf.if %2 {
      %cst_55 = arith.constant 0.000000e+00 : f32
      %62 = vector.broadcast %cst_55 : f32 to vector<48x128xf32>
      %c0_56 = arith.constant 0 : index
      %c0_57 = arith.constant 0 : index
      %63 = vector.load %arg7[%c0_56, %c0_57] : memref<48x128xf32, #tpu.memory_space<vmem>>, vector<48x128xf32>
      tpu.vector_store %arg7[%c0_56, %c0_57], %62 {strides = array<i32>} : memref<48x128xf32, #tpu.memory_space<vmem>>, vector<48x128xf32>,
    } else {
    }
    %c0 = arith.constant 0 : index
    %c0_1 = arith.constant 0 : index
    %3 = vector.load %arg7[%c0, %c0_1] : memref<48x128xf32, #tpu.memory_space<vmem>>, vector<48x128xf32>
    %c0_2 = arith.constant 0 : index
    %c0_3 = arith.constant 0 : index
    %c0_4 = arith.constant 0 : index
    %4 = vector.load %arg3[%c0_2, %c0_3, %c0_4] : memref<1x72x128xf32, #tpu.memory_space<vmem>>, vector<1x48x128xf32>
    %5 = vector.shape_cast %4 : vector<1x48x128xf32> to vector<48x128xf32>
    %c0_5 = arith.constant 0 : index
    %c0_6 = arith.constant 0 : index
    %c0_7 = arith.constant 0 : index
    %6 = vector.load %arg4[%c0_5, %c0_6, %c0_7] : memref<9x128x128xf32, #tpu.memory_space<vmem>>, vector<1x128x128xf32>
    %7 = vector.shape_cast %6 : vector<1x128x128xf32> to vector<128x128xf32>
    %cst = arith.constant dense<0.000000e+00> : vector<48x128xf32>
    %8 = tpu.matmul %5, %7, %cst {dimension_numbers = #tpu.dot_dimension_numbers<[1], [0], [0], [1], [0, 0, 1, 1], [], []>} : vector<48x128xf32>, vector<128x128xf32>, vector<48x128xf32> -> vector<48x128xf32>
    %9 = arith.addf %3, %8 : vector<48x128xf32>
    %c0_8 = arith.constant 0 : index
    %c1 = arith.constant 1 : index
    %c0_9 = arith.constant 0 : index
    %10 = vector.load %arg3[%c0_8, %c1, %c0_9] : memref<1x72x128xf32, #tpu.memory_space<vmem>>, vector<1x48x128xf32>
    %11 = vector.shape_cast %10 : vector<1x48x128xf32> to vector<48x128xf32>
    %c1_10 = arith.constant 1 : index
    %c0_11 = arith.constant 0 : index
    %c0_12 = arith.constant 0 : index
    %12 = vector.load %arg4[%c1_10, %c0_11, %c0_12] : memref<9x128x128xf32, #tpu.memory_space<vmem>>, vector<1x128x128xf32>
    %13 = vector.shape_cast %12 : vector<1x128x128xf32> to vector<128x128xf32>
    %cst_13 = arith.constant dense<0.000000e+00> : vector<48x128xf32>
    %14 = tpu.matmul %11, %13, %cst_13 {dimension_numbers = #tpu.dot_dimension_numbers<[1], [0], [0], [1], [0, 0, 1, 1], [], []>} : vector<48x128xf32>, vector<128x128xf32>, vector<48x128xf32> -> vector<48x128xf32>
    %15 = arith.addf %9, %14 : vector<48x128xf32>
    %c0_14 = arith.constant 0 : index
    %c2 = arith.constant 2 : index
    %c0_15 = arith.constant 0 : index
    %16 = vector.load %arg3[%c0_14, %c2, %c0_15] : memref<1x72x128xf32, #tpu.memory_space<vmem>>, vector<1x48x128xf32>
    %17 = vector.shape_cast %16 : vector<1x48x128xf32> to vector<48x128xf32>
    %c2_16 = arith.constant 2 : index
    %c0_17 = arith.constant 0 : index
    %c0_18 = arith.constant 0 : index
    %18 = vector.load %arg4[%c2_16, %c0_17, %c0_18] : memref<9x128x128xf32, #tpu.memory_space<vmem>>, vector<1x128x128xf32>
    %19 = vector.shape_cast %18 : vector<1x128x128xf32> to vector<128x128xf32>
    %cst_19 = arith.constant dense<0.000000e+00> : vector<48x128xf32>
    %20 = tpu.matmul %17, %19, %cst_19 {dimension_numbers = #tpu.dot_dimension_numbers<[1], [0], [0], [1], [0, 0, 1, 1], [], []>} : vector<48x128xf32>, vector<128x128xf32>, vector<48x128xf32> -> vector<48x128xf32>
    %21 = arith.addf %15, %20 : vector<48x128xf32>
    %c0_20 = arith.constant 0 : index
    %c8 = arith.constant 8 : index
    %c0_21 = arith.constant 0 : index
    %22 = vector.load %arg3[%c0_20, %c8, %c0_21] : memref<1x72x128xf32, #tpu.memory_space<vmem>>, vector<1x48x128xf32>
    %23 = vector.shape_cast %22 : vector<1x48x128xf32> to vector<48x128xf32>
    %c3 = arith.constant 3 : index
    %c0_22 = arith.constant 0 : index
    %c0_23 = arith.constant 0 : index
    %24 = vector.load %arg4[%c3, %c0_22, %c0_23] : memref<9x128x128xf32, #tpu.memory_space<vmem>>, vector<1x128x128xf32>
    %25 = vector.shape_cast %24 : vector<1x128x128xf32> to vector<128x128xf32>
    %cst_24 = arith.constant dense<0.000000e+00> : vector<48x128xf32>
    %26 = tpu.matmul %23, %25, %cst_24 {dimension_numbers = #tpu.dot_dimension_numbers<[1], [0], [0], [1], [0, 0, 1, 1], [], []>} : vector<48x128xf32>, vector<128x128xf32>, vector<48x128xf32> -> vector<48x128xf32>
    %27 = arith.addf %21, %26 : vector<48x128xf32>
    %c0_25 = arith.constant 0 : index
    %c9 = arith.constant 9 : index
    %c0_26 = arith.constant 0 : index
    %28 = vector.load %arg3[%c0_25, %c9, %c0_26] : memref<1x72x128xf32, #tpu.memory_space<vmem>>, vector<1x48x128xf32>
    %29 = vector.shape_cast %28 : vector<1x48x128xf32> to vector<48x128xf32>
    %c4 = arith.constant 4 : index
    %c0_27 = arith.constant 0 : index
    %c0_28 = arith.constant 0 : index
    %30 = vector.load %arg4[%c4, %c0_27, %c0_28] : memref<9x128x128xf32, #tpu.memory_space<vmem>>, vector<1x128x128xf32>
    %31 = vector.shape_cast %30 : vector<1x128x128xf32> to vector<128x128xf32>
    %cst_29 = arith.constant dense<0.000000e+00> : vector<48x128xf32>
    %32 = tpu.matmul %29, %31, %cst_29 {dimension_numbers = #tpu.dot_dimension_numbers<[1], [0], [0], [1], [0, 0, 1, 1], [], []>} : vector<48x128xf32>, vector<128x128xf32>, vector<48x128xf32> -> vector<48x128xf32>
    %33 = arith.addf %27, %32 : vector<48x128xf32>
    %c0_30 = arith.constant 0 : index
    %c10 = arith.constant 10 : index
    %c0_31 = arith.constant 0 : index
    %34 = vector.load %arg3[%c0_30, %c10, %c0_31] : memref<1x72x128xf32, #tpu.memory_space<vmem>>, vector<1x48x128xf32>
    %35 = vector.shape_cast %34 : vector<1x48x128xf32> to vector<48x128xf32>
    %c5 = arith.constant 5 : index
    %c0_32 = arith.constant 0 : index
    %c0_33 = arith.constant 0 : index
    %36 = vector.load %arg4[%c5, %c0_32, %c0_33] : memref<9x128x128xf32, #tpu.memory_space<vmem>>, vector<1x128x128xf32>
    %37 = vector.shape_cast %36 : vector<1x128x128xf32> to vector<128x128xf32>
    %cst_34 = arith.constant dense<0.000000e+00> : vector<48x128xf32>
    %38 = tpu.matmul %35, %37, %cst_34 {dimension_numbers = #tpu.dot_dimension_numbers<[1], [0], [0], [1], [0, 0, 1, 1], [], []>} : vector<48x128xf32>, vector<128x128xf32>, vector<48x128xf32> -> vector<48x128xf32>
    %39 = arith.addf %33, %38 : vector<48x128xf32>
    %c0_35 = arith.constant 0 : index
    %c16 = arith.constant 16 : index
    %c0_36 = arith.constant 0 : index
    %40 = vector.load %arg3[%c0_35, %c16, %c0_36] : memref<1x72x128xf32, #tpu.memory_space<vmem>>, vector<1x48x128xf32>
    %41 = vector.shape_cast %40 : vector<1x48x128xf32> to vector<48x128xf32>
    %c6 = arith.constant 6 : index
    %c0_37 = arith.constant 0 : index
    %c0_38 = arith.constant 0 : index
    %42 = vector.load %arg4[%c6, %c0_37, %c0_38] : memref<9x128x128xf32, #tpu.memory_space<vmem>>, vector<1x128x128xf32>
    %43 = vector.shape_cast %42 : vector<1x128x128xf32> to vector<128x128xf32>
    %cst_39 = arith.constant dense<0.000000e+00> : vector<48x128xf32>
    %44 = tpu.matmul %41, %43, %cst_39 {dimension_numbers = #tpu.dot_dimension_numbers<[1], [0], [0], [1], [0, 0, 1, 1], [], []>} : vector<48x128xf32>, vector<128x128xf32>, vector<48x128xf32> -> vector<48x128xf32>
    %45 = arith.addf %39, %44 : vector<48x128xf32>
    %c0_40 = arith.constant 0 : index
    %c17 = arith.constant 17 : index
    %c0_41 = arith.constant 0 : index
    %46 = vector.load %arg3[%c0_40, %c17, %c0_41] : memref<1x72x128xf32, #tpu.memory_space<vmem>>, vector<1x48x128xf32>
    %47 = vector.shape_cast %46 : vector<1x48x128xf32> to vector<48x128xf32>
    %c7 = arith.constant 7 : index
    %c0_42 = arith.constant 0 : index
    %c0_43 = arith.constant 0 : index
    %48 = vector.load %arg4[%c7, %c0_42, %c0_43] : memref<9x128x128xf32, #tpu.memory_space<vmem>>, vector<1x128x128xf32>
    %49 = vector.shape_cast %48 : vector<1x128x128xf32> to vector<128x128xf32>
    %cst_44 = arith.constant dense<0.000000e+00> : vector<48x128xf32>
    %50 = tpu.matmul %47, %49, %cst_44 {dimension_numbers = #tpu.dot_dimension_numbers<[1], [0], [0], [1], [0, 0, 1, 1], [], []>} : vector<48x128xf32>, vector<128x128xf32>, vector<48x128xf32> -> vector<48x128xf32>
    %51 = arith.addf %45, %50 : vector<48x128xf32>
    %c0_45 = arith.constant 0 : index
    %c18 = arith.constant 18 : index
    %c0_46 = arith.constant 0 : index
    %52 = vector.load %arg3[%c0_45, %c18, %c0_46] : memref<1x72x128xf32, #tpu.memory_space<vmem>>, vector<1x48x128xf32>
    %53 = vector.shape_cast %52 : vector<1x48x128xf32> to vector<48x128xf32>
    %c8_47 = arith.constant 8 : index
    %c0_48 = arith.constant 0 : index
    %c0_49 = arith.constant 0 : index
    %54 = vector.load %arg4[%c8_47, %c0_48, %c0_49] : memref<9x128x128xf32, #tpu.memory_space<vmem>>, vector<1x128x128xf32>
    %55 = vector.shape_cast %54 : vector<1x128x128xf32> to vector<128x128xf32>
    %cst_50 = arith.constant dense<0.000000e+00> : vector<48x128xf32>
    %56 = tpu.matmul %53, %55, %cst_50 {dimension_numbers = #tpu.dot_dimension_numbers<[1], [0], [0], [1], [0, 0, 1, 1], [], []>} : vector<48x128xf32>, vector<128x128xf32>, vector<48x128xf32> -> vector<48x128xf32>
    %57 = arith.addf %51, %56 : vector<48x128xf32>
    %c0_51 = arith.constant 0 : index
    %c0_52 = arith.constant 0 : index
    %58 = vector.load %arg7[%c0_51, %c0_52] : memref<48x128xf32, #tpu.memory_space<vmem>>, vector<48x128xf32>
    tpu.vector_store %arg7[%c0_51, %c0_52], %57 {strides = array<i32>} : memref<48x128xf32, #tpu.memory_space<vmem>>, vector<48x128xf32>,
    %c0_i32_53 = arith.constant 0 : i32
    %59 = arith.cmpi eq, %arg2, %c0_i32_53 : i32
    %60 = arith.extui %59 : i1 to i32
    %c0_i32_54 = arith.constant 0 : i32
    %61 = arith.cmpi ne, %60, %c0_i32_54 : i32
    scf.if %61 {
      %c0_55 = arith.constant 0 : index
      %c0_56 = arith.constant 0 : index
      %62 = vector.load %arg7[%c0_55, %c0_56] : memref<48x128xf32, #tpu.memory_space<vmem>>, vector<48x128xf32>
      %c0_57 = arith.constant 0 : index
      %c0_58 = arith.constant 0 : index
      %c0_59 = arith.constant 0 : index
      %63 = vector.load %arg5[%c0_57, %c0_58, %c0_59] : memref<1x48x128xf32, #tpu.memory_space<vmem>>, vector<1x48x128xf32>
      %64 = vector.shape_cast %63 : vector<1x48x128xf32> to vector<48x128xf32>
      %65 = vector.shape_cast %62 : vector<48x128xf32> to vector<1x48x128xf32>
      tpu.vector_store %arg5[%c0_57, %c0_58, %c0_59], %65 {strides = array<i32>} : memref<1x48x128xf32, #tpu.memory_space<vmem>>, vector<1x48x128xf32>,
      %66 = tpu.iota {dimensions = array<i32: 0>} : vector<48x1xi32>
      %c48_i32 = arith.constant 48 : i32
      %67 = vector.broadcast %c48_i32 : i32 to vector<48x1xi32>
      %68 = arith.cmpi slt, %66, %67 : vector<48x1xi32>
      %c8_i32 = arith.constant 8 : i32
      %c0_i32_60 = arith.constant 0 : i32
      %69 = arith.cmpi eq, %c8_i32, %c0_i32_60 : i32
      %c1_i32 = arith.constant 1 : i32
      %70 = arith.select %69, %c1_i32, %c8_i32 : i32
      %71 = vector.broadcast %70 : i32 to vector<48x1xi32>
      %72 = arith.remsi %66, %71 : vector<48x1xi32>
      %c0_i32_61 = arith.constant 0 : i32
      %73 = vector.broadcast %c0_i32_61 : i32 to vector<48x1xi32>
      %74 = arith.cmpi ne, %72, %73 : vector<48x1xi32>
      %c0_i32_62 = arith.constant 0 : i32
      %75 = vector.broadcast %c0_i32_62 : i32 to vector<48x1xi32>
      %76 = arith.cmpi slt, %72, %75 : vector<48x1xi32>
      %c0_i32_63 = arith.constant 0 : i32
      %77 = arith.cmpi slt, %70, %c0_i32_63 : i32
      %78 = vector.broadcast %77 : i1 to vector<48x1xi1>
      %79 = vector.broadcast %78 : vector<48x1xi1> to vector<48x1xi1>
      %80 = arith.xori %76, %79 : vector<48x1xi1>
      %81 = arith.andi %80, %74 : vector<48x1xi1>
      %82 = vector.broadcast %70 : i32 to vector<48x1xi32>
      %83 = arith.addi %72, %82 : vector<48x1xi32>
      %84 = arith.select %81, %83, %72 : vector<48x1xi1>, vector<48x1xi32>
      %c6_i32 = arith.constant 6 : i32
      %85 = vector.broadcast %c6_i32 : i32 to vector<48x1xi32>
      %86 = arith.cmpi slt, %84, %85 : vector<48x1xi32>
      %87 = arith.andi %68, %86 : vector<48x1xi1>
      %cst_64 = arith.constant 0.000000e+00 : f32
      %88 = vector.shape_cast %87 : vector<48x1xi1> to vector<48x1xi1>
      %89 = vector.broadcast %88 : vector<48x1xi1> to vector<48x128xi1>
      %90 = vector.broadcast %cst_64 : f32 to vector<48x128xf32>
      %91 = arith.select %89, %62, %90 : vector<48x128xi1>, vector<48x128xf32>
      %cst_65 = arith.constant dense<0.000000e+00> : vector<128xf32>
      %92 = vector.multi_reduction <add>, %91, %cst_65 [0] : vector<48x128xf32> to vector<128xf32>
      %93 = vector.shape_cast %92 : vector<128xf32> to vector<1x128xf32>
      %94 = arith.mulf %91, %91 : vector<48x128xf32>
      %cst_66 = arith.constant dense<0.000000e+00> : vector<128xf32>
      %95 = vector.multi_reduction <add>, %94, %cst_66 [0] : vector<48x128xf32> to vector<128xf32>
      %96 = vector.shape_cast %95 : vector<128xf32> to vector<1x128xf32>
      %c0_i32_67 = arith.constant 0 : i32
      %97 = arith.cmpi eq, %arg1, %c0_i32_67 : i32
      %98 = arith.extui %97 : i1 to i32
      %c0_i32_68 = arith.constant 0 : i32
      %99 = arith.cmpi ne, %98, %c0_i32_68 : i32
      scf.if %99 {
        %c0_73 = arith.constant 0 : index
        %c0_74 = arith.constant 0 : index
        %106 = vector.load %arg8[%c0_73, %c0_74] : memref<2x128xf32, #tpu.memory_space<vmem>>, vector<1x128xf32>
        tpu.vector_store %arg8[%c0_73, %c0_74], %93 {strides = array<i32>} : memref<2x128xf32, #tpu.memory_space<vmem>>, vector<1x128xf32>,
        %c1_75 = arith.constant 1 : index
        %c0_76 = arith.constant 0 : index
        %107 = vector.load %arg8[%c1_75, %c0_76] : memref<2x128xf32, #tpu.memory_space<vmem>>, vector<1x128xf32>
        tpu.vector_store %arg8[%c1_75, %c0_76], %96 {strides = array<i32>} : memref<2x128xf32, #tpu.memory_space<vmem>>, vector<1x128xf32>,
      } else {
      }
      %c0_i32_69 = arith.constant 0 : i32
      %100 = arith.cmpi sgt, %arg1, %c0_i32_69 : i32
      %101 = arith.extui %100 : i1 to i32
      %c0_i32_70 = arith.constant 0 : i32
      %102 = arith.cmpi ne, %101, %c0_i32_70 : i32
      scf.if %102 {
        %c0_73 = arith.constant 0 : index
        %c0_74 = arith.constant 0 : index
        %106 = vector.load %arg8[%c0_73, %c0_74] : memref<2x128xf32, #tpu.memory_space<vmem>>, vector<1x128xf32>
        %107 = arith.addf %106, %93 : vector<1x128xf32>
        %c0_75 = arith.constant 0 : index
        %c0_76 = arith.constant 0 : index
        %108 = vector.load %arg8[%c0_75, %c0_76] : memref<2x128xf32, #tpu.memory_space<vmem>>, vector<1x128xf32>
        tpu.vector_store %arg8[%c0_75, %c0_76], %107 {strides = array<i32>} : memref<2x128xf32, #tpu.memory_space<vmem>>, vector<1x128xf32>,
        %c1_77 = arith.constant 1 : index
        %c0_78 = arith.constant 0 : index
        %109 = vector.load %arg8[%c1_77, %c0_78] : memref<2x128xf32, #tpu.memory_space<vmem>>, vector<1x128xf32>
        %110 = arith.addf %109, %96 : vector<1x128xf32>
        %c1_79 = arith.constant 1 : index
        %c0_80 = arith.constant 0 : index
        %111 = vector.load %arg8[%c1_79, %c0_80] : memref<2x128xf32, #tpu.memory_space<vmem>>, vector<1x128xf32>
        tpu.vector_store %arg8[%c1_79, %c0_80], %110 {strides = array<i32>} : memref<2x128xf32, #tpu.memory_space<vmem>>, vector<1x128xf32>,
      } else {
      }
      %c1_i32_71 = arith.constant 1 : i32
      %103 = arith.cmpi eq, %arg1, %c1_i32_71 : i32
      %104 = arith.extui %103 : i1 to i32
      %c0_i32_72 = arith.constant 0 : i32
      %105 = arith.cmpi ne, %104, %c0_i32_72 : i32
      scf.if %105 {
        %c0_73 = arith.constant 0 : index
        %c0_74 = arith.constant 0 : index
        %106 = vector.load %arg8[%c0_73, %c0_74] : memref<2x128xf32, #tpu.memory_space<vmem>>, vector<2x128xf32>
        %c0_75 = arith.constant 0 : index
        %c0_76 = arith.constant 0 : index
        %107 = vector.load %arg6[%c0_75, %c0_76] : memref<2x128xf32, #tpu.memory_space<vmem>>, vector<2x128xf32>
        tpu.vector_store %arg6[%c0_75, %c0_76], %106 {strides = array<i32>} : memref<2x128xf32, #tpu.memory_space<vmem>>, vector<2x128xf32>,
      } else {
      }
    } else {
    }
    return
  }
  func.func @transform_0(%arg0: i32, %arg1: i32, %arg2: i32) -> (i32, i32, i32) {
    %c0_i32 = arith.constant 0 : i32
    %c0_i32_0 = arith.constant 0 : i32
    return %arg1, %c0_i32, %arg2 : i32, i32, i32
  }
  func.func @transform_1(%arg0: i32, %arg1: i32, %arg2: i32) -> (i32, i32, i32) {
    %c0_i32 = arith.constant 0 : i32
    %c0_i32_0 = arith.constant 0 : i32
    return %c0_i32, %arg2, %arg0 : i32, i32, i32
  }
  func.func @transform_2(%arg0: i32, %arg1: i32, %arg2: i32) -> (i32, i32, i32) {
    %c0_i32 = arith.constant 0 : i32
    %c0_i32_0 = arith.constant 0 : i32
    return %arg1, %c0_i32, %arg0 : i32, i32, i32
  }
  func.func @transform_3(%arg0: i32, %arg1: i32, %arg2: i32) -> (i32, i32) {
    %c0_i32 = arith.constant 0 : i32
    %c0_i32_0 = arith.constant 0 : i32
    return %c0_i32, %arg0 : i32, i32
  }
}

module attributes {stable_mosaic.version = 11 : i64} {
  func.func @_bn_apply_kernel(%arg0: i32, %arg1: memref<72x128xf32, #tpu.memory_space<vmem>>, %arg2: memref<2x128xf32, #tpu.memory_space<vmem>>, %arg3: memref<1x128xf32, #tpu.memory_space<vmem>>, %arg4: memref<1x128xf32, #tpu.memory_space<vmem>>, %arg5: memref<72x128xf32, #tpu.memory_space<vmem>>) attributes {dimension_semantics = [#tpu.dimension_semantics<parallel>], iteration_bounds = array<i64: 1>, scalar_prefetch = 0 : i64, scratch_operands = 0 : i64, tpu.core_type = #tpu.core_type<tc>, window_params = [{transform_indices = @transform_0, window_bounds = array<i64: 72, 128>}, {pipeline_mode = #tpu.pipeline_mode<synchronous>, transform_indices = @transform_1, window_bounds = array<i64: 2, 128>}, {pipeline_mode = #tpu.pipeline_mode<synchronous>, transform_indices = @transform_2, window_bounds = array<i64: 1, 128>}, {pipeline_mode = #tpu.pipeline_mode<synchronous>, transform_indices = @transform_3, window_bounds = array<i64: 1, 128>}, {transform_indices = @transform_4, window_bounds = array<i64: 72, 128>}]} {
    %c0 = arith.constant 0 : index
    %c0_0 = arith.constant 0 : index
    %0 = vector.load %arg2[%c0, %c0_0] : memref<2x128xf32, #tpu.memory_space<vmem>>, vector<1x128xf32>
    %cst = arith.constant 0.013888889 : f32
    %1 = vector.broadcast %cst : f32 to vector<1x128xf32>
    %2 = arith.mulf %0, %1 : vector<1x128xf32>
    %c1 = arith.constant 1 : index
    %c0_1 = arith.constant 0 : index
    %3 = vector.load %arg2[%c1, %c0_1] : memref<2x128xf32, #tpu.memory_space<vmem>>, vector<1x128xf32>
    %cst_2 = arith.constant 0.013888889 : f32
    %4 = vector.broadcast %cst_2 : f32 to vector<1x128xf32>
    %5 = arith.mulf %3, %4 : vector<1x128xf32>
    %6 = arith.mulf %2, %2 : vector<1x128xf32>
    %7 = arith.subf %5, %6 : vector<1x128xf32>
    %cst_3 = arith.constant 0.000000e+00 : f32
    %8 = vector.broadcast %cst_3 : f32 to vector<1x128xf32>
    %9 = arith.maximumf %7, %8 : vector<1x128xf32>
    %cst_4 = arith.constant 9.99999974E-6 : f32
    %10 = vector.broadcast %cst_4 : f32 to vector<1x128xf32>
    %11 = arith.addf %9, %10 : vector<1x128xf32>
    %12 = math.rsqrt %11 : vector<1x128xf32>
    %c0_5 = arith.constant 0 : index
    %c0_6 = arith.constant 0 : index
    %13 = vector.load %arg3[%c0_5, %c0_6] : memref<1x128xf32, #tpu.memory_space<vmem>>, vector<1x128xf32>
    %14 = arith.mulf %12, %13 : vector<1x128xf32>
    %c0_7 = arith.constant 0 : index
    %c0_8 = arith.constant 0 : index
    %15 = vector.load %arg1[%c0_7, %c0_8] : memref<72x128xf32, #tpu.memory_space<vmem>>, vector<72x128xf32>
    %16 = vector.broadcast %2 : vector<1x128xf32> to vector<72x128xf32>
    %17 = arith.subf %15, %16 : vector<72x128xf32>
    %18 = vector.broadcast %14 : vector<1x128xf32> to vector<72x128xf32>
    %19 = arith.mulf %17, %18 : vector<72x128xf32>
    %c0_9 = arith.constant 0 : index
    %c0_10 = arith.constant 0 : index
    %20 = vector.load %arg4[%c0_9, %c0_10] : memref<1x128xf32, #tpu.memory_space<vmem>>, vector<1x128xf32>
    %21 = vector.broadcast %20 : vector<1x128xf32> to vector<72x128xf32>
    %22 = arith.addf %19, %21 : vector<72x128xf32>
    %cst_11 = arith.constant 0.000000e+00 : f32
    %23 = vector.broadcast %cst_11 : f32 to vector<72x128xf32>
    %24 = arith.maximumf %22, %23 : vector<72x128xf32>
    %c0_12 = arith.constant 0 : index
    %c0_13 = arith.constant 0 : index
    %25 = vector.load %arg5[%c0_12, %c0_13] : memref<72x128xf32, #tpu.memory_space<vmem>>, vector<72x128xf32>
    tpu.vector_store %arg5[%c0_12, %c0_13], %24 {strides = array<i32>} : memref<72x128xf32, #tpu.memory_space<vmem>>, vector<72x128xf32>,
    return
  }
  func.func @transform_0(%arg0: i32) -> (i32, i32) {
    %c0_i32 = arith.constant 0 : i32
    %c0_i32_0 = arith.constant 0 : i32
    return %arg0, %c0_i32 : i32, i32
  }
  func.func @transform_1(%arg0: i32) -> (i32, i32) {
    %c0_i32 = arith.constant 0 : i32
    %c0_i32_0 = arith.constant 0 : i32
    %c0_i32_1 = arith.constant 0 : i32
    return %c0_i32, %c0_i32_0 : i32, i32
  }
  func.func @transform_2(%arg0: i32) -> (i32, i32) {
    %c0_i32 = arith.constant 0 : i32
    %c0_i32_0 = arith.constant 0 : i32
    %c0_i32_1 = arith.constant 0 : i32
    return %c0_i32, %c0_i32_0 : i32, i32
  }
  func.func @transform_3(%arg0: i32) -> (i32, i32) {
    %c0_i32 = arith.constant 0 : i32
    %c0_i32_0 = arith.constant 0 : i32
    %c0_i32_1 = arith.constant 0 : i32
    return %c0_i32, %c0_i32_0 : i32, i32
  }
  func.func @transform_4(%arg0: i32) -> (i32, i32) {
    %c0_i32 = arith.constant 0 : i32
    %c0_i32_0 = arith.constant 0 : i32
    return %arg0, %c0_i32 : i32, i32
  }
}

module attributes {stable_mosaic.version = 11 : i64} {
  func.func @_avgpool_kernel(%arg0: i32, %arg1: memref<4x3x2x3x128xf32, #tpu.memory_space<vmem>>, %arg2: memref<4x2x128xf32, #tpu.memory_space<vmem>>) attributes {dimension_semantics = [#tpu.dimension_semantics<parallel>], iteration_bounds = array<i64: 1>, scalar_prefetch = 0 : i64, scratch_operands = 0 : i64, tpu.core_type = #tpu.core_type<tc>, window_params = [{transform_indices = @transform_0, window_bounds = array<i64: 4, 3, 2, 3, 128>}, {transform_indices = @transform_1, window_bounds = array<i64: 4, 2, 128>}]} {
    %c0 = arith.constant 0 : index
    %c0_0 = arith.constant 0 : index
    %c0_1 = arith.constant 0 : index
    %c0_2 = arith.constant 0 : index
    %c0_3 = arith.constant 0 : index
    %0 = vector.load %arg1[%c0, %c0_0, %c0_1, %c0_2, %c0_3] : memref<4x3x2x3x128xf32, #tpu.memory_space<vmem>>, vector<4x1x2x1x128xf32>
    %1 = vector.shape_cast %0 : vector<4x1x2x1x128xf32> to vector<4x2x128xf32>
    %c0_4 = arith.constant 0 : index
    %c0_5 = arith.constant 0 : index
    %c0_6 = arith.constant 0 : index
    %c1 = arith.constant 1 : index
    %c0_7 = arith.constant 0 : index
    %2 = vector.load %arg1[%c0_4, %c0_5, %c0_6, %c1, %c0_7] : memref<4x3x2x3x128xf32, #tpu.memory_space<vmem>>, vector<4x1x2x1x128xf32>
    %3 = vector.shape_cast %2 : vector<4x1x2x1x128xf32> to vector<4x2x128xf32>
    %4 = arith.addf %1, %3 : vector<4x2x128xf32>
    %c0_8 = arith.constant 0 : index
    %c0_9 = arith.constant 0 : index
    %c0_10 = arith.constant 0 : index
    %c2 = arith.constant 2 : index
    %c0_11 = arith.constant 0 : index
    %5 = vector.load %arg1[%c0_8, %c0_9, %c0_10, %c2, %c0_11] : memref<4x3x2x3x128xf32, #tpu.memory_space<vmem>>, vector<4x1x2x1x128xf32>
    %6 = vector.shape_cast %5 : vector<4x1x2x1x128xf32> to vector<4x2x128xf32>
    %7 = arith.addf %4, %6 : vector<4x2x128xf32>
    %c0_12 = arith.constant 0 : index
    %c1_13 = arith.constant 1 : index
    %c0_14 = arith.constant 0 : index
    %c0_15 = arith.constant 0 : index
    %c0_16 = arith.constant 0 : index
    %8 = vector.load %arg1[%c0_12, %c1_13, %c0_14, %c0_15, %c0_16] : memref<4x3x2x3x128xf32, #tpu.memory_space<vmem>>, vector<4x1x2x1x128xf32>
    %9 = vector.shape_cast %8 : vector<4x1x2x1x128xf32> to vector<4x2x128xf32>
    %10 = arith.addf %7, %9 : vector<4x2x128xf32>
    %c0_17 = arith.constant 0 : index
    %c1_18 = arith.constant 1 : index
    %c0_19 = arith.constant 0 : index
    %c1_20 = arith.constant 1 : index
    %c0_21 = arith.constant 0 : index
    %11 = vector.load %arg1[%c0_17, %c1_18, %c0_19, %c1_20, %c0_21] : memref<4x3x2x3x128xf32, #tpu.memory_space<vmem>>, vector<4x1x2x1x128xf32>
    %12 = vector.shape_cast %11 : vector<4x1x2x1x128xf32> to vector<4x2x128xf32>
    %13 = arith.addf %10, %12 : vector<4x2x128xf32>
    %c0_22 = arith.constant 0 : index
    %c1_23 = arith.constant 1 : index
    %c0_24 = arith.constant 0 : index
    %c2_25 = arith.constant 2 : index
    %c0_26 = arith.constant 0 : index
    %14 = vector.load %arg1[%c0_22, %c1_23, %c0_24, %c2_25, %c0_26] : memref<4x3x2x3x128xf32, #tpu.memory_space<vmem>>, vector<4x1x2x1x128xf32>
    %15 = vector.shape_cast %14 : vector<4x1x2x1x128xf32> to vector<4x2x128xf32>
    %16 = arith.addf %13, %15 : vector<4x2x128xf32>
    %c0_27 = arith.constant 0 : index
    %c2_28 = arith.constant 2 : index
    %c0_29 = arith.constant 0 : index
    %c0_30 = arith.constant 0 : index
    %c0_31 = arith.constant 0 : index
    %17 = vector.load %arg1[%c0_27, %c2_28, %c0_29, %c0_30, %c0_31] : memref<4x3x2x3x128xf32, #tpu.memory_space<vmem>>, vector<4x1x2x1x128xf32>
    %18 = vector.shape_cast %17 : vector<4x1x2x1x128xf32> to vector<4x2x128xf32>
    %19 = arith.addf %16, %18 : vector<4x2x128xf32>
    %c0_32 = arith.constant 0 : index
    %c2_33 = arith.constant 2 : index
    %c0_34 = arith.constant 0 : index
    %c1_35 = arith.constant 1 : index
    %c0_36 = arith.constant 0 : index
    %20 = vector.load %arg1[%c0_32, %c2_33, %c0_34, %c1_35, %c0_36] : memref<4x3x2x3x128xf32, #tpu.memory_space<vmem>>, vector<4x1x2x1x128xf32>
    %21 = vector.shape_cast %20 : vector<4x1x2x1x128xf32> to vector<4x2x128xf32>
    %22 = arith.addf %19, %21 : vector<4x2x128xf32>
    %c0_37 = arith.constant 0 : index
    %c2_38 = arith.constant 2 : index
    %c0_39 = arith.constant 0 : index
    %c2_40 = arith.constant 2 : index
    %c0_41 = arith.constant 0 : index
    %23 = vector.load %arg1[%c0_37, %c2_38, %c0_39, %c2_40, %c0_41] : memref<4x3x2x3x128xf32, #tpu.memory_space<vmem>>, vector<4x1x2x1x128xf32>
    %24 = vector.shape_cast %23 : vector<4x1x2x1x128xf32> to vector<4x2x128xf32>
    %25 = arith.addf %22, %24 : vector<4x2x128xf32>
    %cst = arith.constant 0.111111112 : f32
    %26 = vector.broadcast %cst : f32 to vector<4x2x128xf32>
    %27 = arith.mulf %25, %26 : vector<4x2x128xf32>
    %c0_42 = arith.constant 0 : index
    %c0_43 = arith.constant 0 : index
    %c0_44 = arith.constant 0 : index
    %28 = vector.load %arg2[%c0_42, %c0_43, %c0_44] : memref<4x2x128xf32, #tpu.memory_space<vmem>>, vector<4x2x128xf32>
    tpu.vector_store %arg2[%c0_42, %c0_43, %c0_44], %27 {strides = array<i32>} : memref<4x2x128xf32, #tpu.memory_space<vmem>>, vector<4x2x128xf32>,
    return
  }
  func.func @transform_0(%arg0: i32) -> (i32, i32, i32, i32, i32) {
    %c0_i32 = arith.constant 0 : i32
    %c0_i32_0 = arith.constant 0 : i32
    %c0_i32_1 = arith.constant 0 : i32
    %c0_i32_2 = arith.constant 0 : i32
    %c0_i32_3 = arith.constant 0 : i32
    return %arg0, %c0_i32, %c0_i32_0, %c0_i32_1, %c0_i32_2 : i32, i32, i32, i32, i32
  }
  func.func @transform_1(%arg0: i32) -> (i32, i32, i32) {
    %c0_i32 = arith.constant 0 : i32
    %c0_i32_0 = arith.constant 0 : i32
    %c0_i32_1 = arith.constant 0 : i32
    return %arg0, %c0_i32, %c0_i32_0 : i32, i32, i32
  }
}

module attributes {stable_mosaic.version = 11 : i64} {
  func.func @_mm_stats_kernel(%arg0: i32, %arg1: i32, %arg2: i32, %arg3: memref<8x128xf32, #tpu.memory_space<vmem>>, %arg4: memref<128x128xf32, #tpu.memory_space<vmem>>, %arg5: memref<8x128xf32, #tpu.memory_space<vmem>>, %arg6: memref<2x128xf32, #tpu.memory_space<vmem>>, %arg7: memref<8x128xf32, #tpu.memory_space<vmem>>, %arg8: memref<2x128xf32, #tpu.memory_space<vmem>>) attributes {dimension_semantics = [#tpu.dimension_semantics<parallel>, #tpu.dimension_semantics<arbitrary>, #tpu.dimension_semantics<arbitrary>], iteration_bounds = array<i64: 1, 1, 1>, scalar_prefetch = 0 : i64, scratch_operands = 2 : i64, tpu.core_type = #tpu.core_type<tc>, window_params = [{transform_indices = @transform_0, window_bounds = array<i64: 8, 128>}, {transform_indices = @transform_1, window_bounds = array<i64: 128, 128>}, {transform_indices = @transform_2, window_bounds = array<i64: 8, 128>}, {transform_indices = @transform_3, window_bounds = array<i64: 2, 128>}]} {
    %c0_i32 = arith.constant 0 : i32
    %0 = arith.cmpi eq, %arg2, %c0_i32 : i32
    %1 = arith.extui %0 : i1 to i32
    %c0_i32_0 = arith.constant 0 : i32
    %2 = arith.cmpi ne, %1, %c0_i32_0 : i32
    scf.if %2 {
      %cst_10 = arith.constant 0.000000e+00 : f32
      %12 = vector.broadcast %cst_10 : f32 to vector<8x128xf32>
      %c0_11 = arith.constant 0 : index
      %c0_12 = arith.constant 0 : index
      %13 = vector.load %arg7[%c0_11, %c0_12] : memref<8x128xf32, #tpu.memory_space<vmem>>, vector<8x128xf32>
      tpu.vector_store %arg7[%c0_11, %c0_12], %12 {strides = array<i32>} : memref<8x128xf32, #tpu.memory_space<vmem>>, vector<8x128xf32>,
    } else {
    }
    %c0 = arith.constant 0 : index
    %c0_1 = arith.constant 0 : index
    %3 = vector.load %arg7[%c0, %c0_1] : memref<8x128xf32, #tpu.memory_space<vmem>>, vector<8x128xf32>
    %c0_2 = arith.constant 0 : index
    %c0_3 = arith.constant 0 : index
    %4 = vector.load %arg3[%c0_2, %c0_3] : memref<8x128xf32, #tpu.memory_space<vmem>>, vector<8x128xf32>
    %c0_4 = arith.constant 0 : index
    %c0_5 = arith.constant 0 : index
    %5 = vector.load %arg4[%c0_4, %c0_5] : memref<128x128xf32, #tpu.memory_space<vmem>>, vector<128x128xf32>
    %cst = arith.constant dense<0.000000e+00> : vector<8x128xf32>
    %6 = tpu.matmul %4, %5, %cst {dimension_numbers = #tpu.dot_dimension_numbers<[1], [0], [0], [1], [0, 0, 1, 1], [], []>} : vector<8x128xf32>, vector<128x128xf32>, vector<8x128xf32> -> vector<8x128xf32>
    %7 = arith.addf %3, %6 : vector<8x128xf32>
    %c0_6 = arith.constant 0 : index
    %c0_7 = arith.constant 0 : index
    %8 = vector.load %arg7[%c0_6, %c0_7] : memref<8x128xf32, #tpu.memory_space<vmem>>, vector<8x128xf32>
    tpu.vector_store %arg7[%c0_6, %c0_7], %7 {strides = array<i32>} : memref<8x128xf32, #tpu.memory_space<vmem>>, vector<8x128xf32>,
    %c0_i32_8 = arith.constant 0 : i32
    %9 = arith.cmpi eq, %arg2, %c0_i32_8 : i32
    %10 = arith.extui %9 : i1 to i32
    %c0_i32_9 = arith.constant 0 : i32
    %11 = arith.cmpi ne, %10, %c0_i32_9 : i32
    scf.if %11 {
      %c0_10 = arith.constant 0 : index
      %c0_11 = arith.constant 0 : index
      %12 = vector.load %arg7[%c0_10, %c0_11] : memref<8x128xf32, #tpu.memory_space<vmem>>, vector<8x128xf32>
      %c0_12 = arith.constant 0 : index
      %c0_13 = arith.constant 0 : index
      %13 = vector.load %arg5[%c0_12, %c0_13] : memref<8x128xf32, #tpu.memory_space<vmem>>, vector<8x128xf32>
      tpu.vector_store %arg5[%c0_12, %c0_13], %12 {strides = array<i32>} : memref<8x128xf32, #tpu.memory_space<vmem>>, vector<8x128xf32>,
      %cst_14 = arith.constant dense<0.000000e+00> : vector<128xf32>
      %14 = vector.multi_reduction <add>, %12, %cst_14 [0] : vector<8x128xf32> to vector<128xf32>
      %15 = vector.shape_cast %14 : vector<128xf32> to vector<1x128xf32>
      %16 = arith.mulf %12, %12 : vector<8x128xf32>
      %cst_15 = arith.constant dense<0.000000e+00> : vector<128xf32>
      %17 = vector.multi_reduction <add>, %16, %cst_15 [0] : vector<8x128xf32> to vector<128xf32>
      %18 = vector.shape_cast %17 : vector<128xf32> to vector<1x128xf32>
      %c0_i32_16 = arith.constant 0 : i32
      %19 = arith.cmpi eq, %arg1, %c0_i32_16 : i32
      %20 = arith.extui %19 : i1 to i32
      %c0_i32_17 = arith.constant 0 : i32
      %21 = arith.cmpi ne, %20, %c0_i32_17 : i32
      scf.if %21 {
        %c0_22 = arith.constant 0 : index
        %c0_23 = arith.constant 0 : index
        %28 = vector.load %arg8[%c0_22, %c0_23] : memref<2x128xf32, #tpu.memory_space<vmem>>, vector<1x128xf32>
        tpu.vector_store %arg8[%c0_22, %c0_23], %15 {strides = array<i32>} : memref<2x128xf32, #tpu.memory_space<vmem>>, vector<1x128xf32>,
        %c1 = arith.constant 1 : index
        %c0_24 = arith.constant 0 : index
        %29 = vector.load %arg8[%c1, %c0_24] : memref<2x128xf32, #tpu.memory_space<vmem>>, vector<1x128xf32>
        tpu.vector_store %arg8[%c1, %c0_24], %18 {strides = array<i32>} : memref<2x128xf32, #tpu.memory_space<vmem>>, vector<1x128xf32>,
      } else {
      }
      %c0_i32_18 = arith.constant 0 : i32
      %22 = arith.cmpi sgt, %arg1, %c0_i32_18 : i32
      %23 = arith.extui %22 : i1 to i32
      %c0_i32_19 = arith.constant 0 : i32
      %24 = arith.cmpi ne, %23, %c0_i32_19 : i32
      scf.if %24 {
        %c0_22 = arith.constant 0 : index
        %c0_23 = arith.constant 0 : index
        %28 = vector.load %arg8[%c0_22, %c0_23] : memref<2x128xf32, #tpu.memory_space<vmem>>, vector<1x128xf32>
        %29 = arith.addf %28, %15 : vector<1x128xf32>
        %c0_24 = arith.constant 0 : index
        %c0_25 = arith.constant 0 : index
        %30 = vector.load %arg8[%c0_24, %c0_25] : memref<2x128xf32, #tpu.memory_space<vmem>>, vector<1x128xf32>
        tpu.vector_store %arg8[%c0_24, %c0_25], %29 {strides = array<i32>} : memref<2x128xf32, #tpu.memory_space<vmem>>, vector<1x128xf32>,
        %c1 = arith.constant 1 : index
        %c0_26 = arith.constant 0 : index
        %31 = vector.load %arg8[%c1, %c0_26] : memref<2x128xf32, #tpu.memory_space<vmem>>, vector<1x128xf32>
        %32 = arith.addf %31, %18 : vector<1x128xf32>
        %c1_27 = arith.constant 1 : index
        %c0_28 = arith.constant 0 : index
        %33 = vector.load %arg8[%c1_27, %c0_28] : memref<2x128xf32, #tpu.memory_space<vmem>>, vector<1x128xf32>
        tpu.vector_store %arg8[%c1_27, %c0_28], %32 {strides = array<i32>} : memref<2x128xf32, #tpu.memory_space<vmem>>, vector<1x128xf32>,
      } else {
      }
      %c0_i32_20 = arith.constant 0 : i32
      %25 = arith.cmpi eq, %arg1, %c0_i32_20 : i32
      %26 = arith.extui %25 : i1 to i32
      %c0_i32_21 = arith.constant 0 : i32
      %27 = arith.cmpi ne, %26, %c0_i32_21 : i32
      scf.if %27 {
        %c0_22 = arith.constant 0 : index
        %c0_23 = arith.constant 0 : index
        %28 = vector.load %arg8[%c0_22, %c0_23] : memref<2x128xf32, #tpu.memory_space<vmem>>, vector<2x128xf32>
        %c0_24 = arith.constant 0 : index
        %c0_25 = arith.constant 0 : index
        %29 = vector.load %arg6[%c0_24, %c0_25] : memref<2x128xf32, #tpu.memory_space<vmem>>, vector<2x128xf32>
        tpu.vector_store %arg6[%c0_24, %c0_25], %28 {strides = array<i32>} : memref<2x128xf32, #tpu.memory_space<vmem>>, vector<2x128xf32>,
      } else {
      }
    } else {
    }
    return
  }
  func.func @transform_0(%arg0: i32, %arg1: i32, %arg2: i32) -> (i32, i32) {
    %c0_i32 = arith.constant 0 : i32
    return %arg1, %arg2 : i32, i32
  }
  func.func @transform_1(%arg0: i32, %arg1: i32, %arg2: i32) -> (i32, i32) {
    %c0_i32 = arith.constant 0 : i32
    return %arg2, %arg0 : i32, i32
  }
  func.func @transform_2(%arg0: i32, %arg1: i32, %arg2: i32) -> (i32, i32) {
    %c0_i32 = arith.constant 0 : i32
    return %arg1, %arg0 : i32, i32
  }
  func.func @transform_3(%arg0: i32, %arg1: i32, %arg2: i32) -> (i32, i32) {
    %c0_i32 = arith.constant 0 : i32
    %c0_i32_0 = arith.constant 0 : i32
    return %c0_i32, %arg0 : i32, i32
  }
}

module attributes {stable_mosaic.version = 11 : i64} {
  func.func @_bn_apply_kernel(%arg0: i32, %arg1: memref<8x128xf32, #tpu.memory_space<vmem>>, %arg2: memref<2x128xf32, #tpu.memory_space<vmem>>, %arg3: memref<1x128xf32, #tpu.memory_space<vmem>>, %arg4: memref<1x128xf32, #tpu.memory_space<vmem>>, %arg5: memref<8x128xf32, #tpu.memory_space<vmem>>, %arg6: memref<2x128xf32, #tpu.memory_space<vmem>>, %arg7: memref<1x128xf32, #tpu.memory_space<vmem>>, %arg8: memref<1x128xf32, #tpu.memory_space<vmem>>, %arg9: memref<8x128xf32, #tpu.memory_space<vmem>>) attributes {dimension_semantics = [#tpu.dimension_semantics<parallel>], iteration_bounds = array<i64: 1>, scalar_prefetch = 0 : i64, scratch_operands = 0 : i64, tpu.core_type = #tpu.core_type<tc>, window_params = [{transform_indices = @transform_0, window_bounds = array<i64: 8, 128>}, {pipeline_mode = #tpu.pipeline_mode<synchronous>, transform_indices = @transform_1, window_bounds = array<i64: 2, 128>}, {pipeline_mode = #tpu.pipeline_mode<synchronous>, transform_indices = @transform_2, window_bounds = array<i64: 1, 128>}, {pipeline_mode = #tpu.pipeline_mode<synchronous>, transform_indices = @transform_3, window_bounds = array<i64: 1, 128>}, {transform_indices = @transform_4, window_bounds = array<i64: 8, 128>}, {pipeline_mode = #tpu.pipeline_mode<synchronous>, transform_indices = @transform_5, window_bounds = array<i64: 2, 128>}, {pipeline_mode = #tpu.pipeline_mode<synchronous>, transform_indices = @transform_6, window_bounds = array<i64: 1, 128>}, {pipeline_mode = #tpu.pipeline_mode<synchronous>, transform_indices = @transform_7, window_bounds = array<i64: 1, 128>}, {transform_indices = @transform_8, window_bounds = array<i64: 8, 128>}]} {
    %c0 = arith.constant 0 : index
    %c0_0 = arith.constant 0 : index
    %0 = vector.load %arg2[%c0, %c0_0] : memref<2x128xf32, #tpu.memory_space<vmem>>, vector<1x128xf32>
    %cst = arith.constant 1.250000e-01 : f32
    %1 = vector.broadcast %cst : f32 to vector<1x128xf32>
    %2 = arith.mulf %0, %1 : vector<1x128xf32>
    %c1 = arith.constant 1 : index
    %c0_1 = arith.constant 0 : index
    %3 = vector.load %arg2[%c1, %c0_1] : memref<2x128xf32, #tpu.memory_space<vmem>>, vector<1x128xf32>
    %cst_2 = arith.constant 1.250000e-01 : f32
    %4 = vector.broadcast %cst_2 : f32 to vector<1x128xf32>
    %5 = arith.mulf %3, %4 : vector<1x128xf32>
    %6 = arith.mulf %2, %2 : vector<1x128xf32>
    %7 = arith.subf %5, %6 : vector<1x128xf32>
    %cst_3 = arith.constant 0.000000e+00 : f32
    %8 = vector.broadcast %cst_3 : f32 to vector<1x128xf32>
    %9 = arith.maximumf %7, %8 : vector<1x128xf32>
    %cst_4 = arith.constant 9.99999974E-6 : f32
    %10 = vector.broadcast %cst_4 : f32 to vector<1x128xf32>
    %11 = arith.addf %9, %10 : vector<1x128xf32>
    %12 = math.rsqrt %11 : vector<1x128xf32>
    %c0_5 = arith.constant 0 : index
    %c0_6 = arith.constant 0 : index
    %13 = vector.load %arg3[%c0_5, %c0_6] : memref<1x128xf32, #tpu.memory_space<vmem>>, vector<1x128xf32>
    %14 = arith.mulf %12, %13 : vector<1x128xf32>
    %c0_7 = arith.constant 0 : index
    %c0_8 = arith.constant 0 : index
    %15 = vector.load %arg1[%c0_7, %c0_8] : memref<8x128xf32, #tpu.memory_space<vmem>>, vector<8x128xf32>
    %16 = vector.broadcast %2 : vector<1x128xf32> to vector<8x128xf32>
    %17 = arith.subf %15, %16 : vector<8x128xf32>
    %18 = vector.broadcast %14 : vector<1x128xf32> to vector<8x128xf32>
    %19 = arith.mulf %17, %18 : vector<8x128xf32>
    %c0_9 = arith.constant 0 : index
    %c0_10 = arith.constant 0 : index
    %20 = vector.load %arg4[%c0_9, %c0_10] : memref<1x128xf32, #tpu.memory_space<vmem>>, vector<1x128xf32>
    %21 = vector.broadcast %20 : vector<1x128xf32> to vector<8x128xf32>
    %22 = arith.addf %19, %21 : vector<8x128xf32>
    %c0_11 = arith.constant 0 : index
    %c0_12 = arith.constant 0 : index
    %23 = vector.load %arg6[%c0_11, %c0_12] : memref<2x128xf32, #tpu.memory_space<vmem>>, vector<1x128xf32>
    %cst_13 = arith.constant 1.250000e-01 : f32
    %24 = vector.broadcast %cst_13 : f32 to vector<1x128xf32>
    %25 = arith.mulf %23, %24 : vector<1x128xf32>
    %c1_14 = arith.constant 1 : index
    %c0_15 = arith.constant 0 : index
    %26 = vector.load %arg6[%c1_14, %c0_15] : memref<2x128xf32, #tpu.memory_space<vmem>>, vector<1x128xf32>
    %cst_16 = arith.constant 1.250000e-01 : f32
    %27 = vector.broadcast %cst_16 : f32 to vector<1x128xf32>
    %28 = arith.mulf %26, %27 : vector<1x128xf32>
    %29 = arith.mulf %25, %25 : vector<1x128xf32>
    %30 = arith.subf %28, %29 : vector<1x128xf32>
    %cst_17 = arith.constant 0.000000e+00 : f32
    %31 = vector.broadcast %cst_17 : f32 to vector<1x128xf32>
    %32 = arith.maximumf %30, %31 : vector<1x128xf32>
    %cst_18 = arith.constant 9.99999974E-6 : f32
    %33 = vector.broadcast %cst_18 : f32 to vector<1x128xf32>
    %34 = arith.addf %32, %33 : vector<1x128xf32>
    %35 = math.rsqrt %34 : vector<1x128xf32>
    %c0_19 = arith.constant 0 : index
    %c0_20 = arith.constant 0 : index
    %36 = vector.load %arg7[%c0_19, %c0_20] : memref<1x128xf32, #tpu.memory_space<vmem>>, vector<1x128xf32>
    %37 = arith.mulf %35, %36 : vector<1x128xf32>
    %c0_21 = arith.constant 0 : index
    %c0_22 = arith.constant 0 : index
    %38 = vector.load %arg5[%c0_21, %c0_22] : memref<8x128xf32, #tpu.memory_space<vmem>>, vector<8x128xf32>
    %39 = vector.broadcast %25 : vector<1x128xf32> to vector<8x128xf32>
    %40 = arith.subf %38, %39 : vector<8x128xf32>
    %41 = vector.broadcast %37 : vector<1x128xf32> to vector<8x128xf32>
    %42 = arith.mulf %40, %41 : vector<8x128xf32>
    %c0_23 = arith.constant 0 : index
    %c0_24 = arith.constant 0 : index
    %43 = vector.load %arg8[%c0_23, %c0_24] : memref<1x128xf32, #tpu.memory_space<vmem>>, vector<1x128xf32>
    %44 = vector.broadcast %43 : vector<1x128xf32> to vector<8x128xf32>
    %45 = arith.addf %42, %44 : vector<8x128xf32>
    %46 = arith.addf %22, %45 : vector<8x128xf32>
    %cst_25 = arith.constant 0.000000e+00 : f32
    %47 = vector.broadcast %cst_25 : f32 to vector<8x128xf32>
    %48 = arith.maximumf %46, %47 : vector<8x128xf32>
    %c0_26 = arith.constant 0 : index
    %c0_27 = arith.constant 0 : index
    %49 = vector.load %arg9[%c0_26, %c0_27] : memref<8x128xf32, #tpu.memory_space<vmem>>, vector<8x128xf32>
    tpu.vector_store %arg9[%c0_26, %c0_27], %48 {strides = array<i32>} : memref<8x128xf32, #tpu.memory_space<vmem>>, vector<8x128xf32>,
    return
  }
  func.func @transform_0(%arg0: i32) -> (i32, i32) {
    %c0_i32 = arith.constant 0 : i32
    %c0_i32_0 = arith.constant 0 : i32
    return %arg0, %c0_i32 : i32, i32
  }
  func.func @transform_1(%arg0: i32) -> (i32, i32) {
    %c0_i32 = arith.constant 0 : i32
    %c0_i32_0 = arith.constant 0 : i32
    %c0_i32_1 = arith.constant 0 : i32
    return %c0_i32, %c0_i32_0 : i32, i32
  }
  func.func @transform_2(%arg0: i32) -> (i32, i32) {
    %c0_i32 = arith.constant 0 : i32
    %c0_i32_0 = arith.constant 0 : i32
    %c0_i32_1 = arith.constant 0 : i32
    return %c0_i32, %c0_i32_0 : i32, i32
  }
  func.func @transform_3(%arg0: i32) -> (i32, i32) {
    %c0_i32 = arith.constant 0 : i32
    %c0_i32_0 = arith.constant 0 : i32
    %c0_i32_1 = arith.constant 0 : i32
    return %c0_i32, %c0_i32_0 : i32, i32
  }
  func.func @transform_4(%arg0: i32) -> (i32, i32) {
    %c0_i32 = arith.constant 0 : i32
    %c0_i32_0 = arith.constant 0 : i32
    return %arg0, %c0_i32 : i32, i32
  }
  func.func @transform_5(%arg0: i32) -> (i32, i32) {
    %c0_i32 = arith.constant 0 : i32
    %c0_i32_0 = arith.constant 0 : i32
    %c0_i32_1 = arith.constant 0 : i32
    return %c0_i32, %c0_i32_0 : i32, i32
  }
  func.func @transform_6(%arg0: i32) -> (i32, i32) {
    %c0_i32 = arith.constant 0 : i32
    %c0_i32_0 = arith.constant 0 : i32
    %c0_i32_1 = arith.constant 0 : i32
    return %c0_i32, %c0_i32_0 : i32, i32
  }
  func.func @transform_7(%arg0: i32) -> (i32, i32) {
    %c0_i32 = arith.constant 0 : i32
    %c0_i32_0 = arith.constant 0 : i32
    %c0_i32_1 = arith.constant 0 : i32
    return %c0_i32, %c0_i32_0 : i32, i32
  }
  func.func @transform_8(%arg0: i32) -> (i32, i32) {
    %c0_i32 = arith.constant 0 : i32
    %c0_i32_0 = arith.constant 0 : i32
    return %arg0, %c0_i32 : i32, i32
  }
}

</mosaic_0001>

<bundles_post_ra>
// kernel: bottleneck_forward.10
= control target key start
LH: loop header
LB: loop body
LE: loop exit
PB: predicated region body
PF: predicated region fallthrough
CT: control target
= control target key end

     0   :  { %v44_v6 = vlaneseq  ;;  %s297_s1 = inlined_call_operand.vmem [shape: f32[2,128], index: 1, kind: input, shape index: {}]   ;;  %s298_s0 = inlined_call_operand.vmem [shape: f32[128,128], index: 0, kind: input, shape index: {}]   ;;  %s299_s2 = inlined_call_operand.vmem [shape: f32[1,128], index: 2, kind: input, shape index: {}]   ;;  %s300_s3 = inlined_call_operand.vmem [shape: f32[1,128], index: 3, kind: input, shape index: {}]   ;;  %s301_s4 = inlined_call_operand.vmem [shape: f32[128,128], index: 4, kind: output, shape index: {}]  }
   0x1   :  { %v17_v0 = vld [vmem:[%s297_s1] sm:$0x1]  ;;  %v19_v1 = vld [vmem:[%s297_s1 + $0x1] sm:$0x1]  ;;  %v29_v14 = vld [vmem:[%s298_s0 + $0x8] sm:$0xff] }
   0x2   :  { %v18_v2 = vmul.f32 0.0078125, %v17_v0  ;;  %v20_v3 = vmul.f32 0.0078125, %v19_v1  ;;  %v45_v9 = vshrl.u32 %v44_v6, 7  ;;  %v26_v11 = vld [vmem:[%s299_s2] sm:$0x1]  ;;  %v30_v15 = vld [vmem:[%s298_s0 + $0x10] sm:$0xff] }
   0x3   :  { %v28_v12 = vld [vmem:[%s298_s0] sm:$0xff]  ;;  %v31_v16 = vld [vmem:[%s298_s0 + $0x18] sm:$0xff]  ;;  %v33_v18 = vld [vmem:[%s298_s0 + $0x28] sm:$0xff] }
   0x4   :  { %v21_v4 = vmul.f32 %v18_v2, %v18_v2  ;;  %v46_v10 = vsub.s32 0, %v45_v9  ;;  %v32_v17 = vld [vmem:[%s298_s0 + $0x20] sm:$0xff]  ;;  %v34_v19 = vld [vmem:[%s298_s0 + $0x30] sm:$0xff]  ;;  %v35_v20 = vld [vmem:[%s298_s0 + $0x38] sm:$0xff] }
   0x5   :  { %v36_v21 = vld [vmem:[%s298_s0 + $0x40] sm:$0xff]  ;;  %v37_v22 = vld [vmem:[%s298_s0 + $0x48] sm:$0xff]  ;;  %v38_v26 = vld [vmem:[%s298_s0 + $0x50] sm:$0xff] }
   0x6   :  { %v22_v5 = vsub.f32 %v20_v3, %v21_v4  ;;  %v183_v13 = vrot.slane %v18_v2, %v46_v10  ;;  %v39_v27 = vld [vmem:[%s298_s0 + $0x58] sm:$0xff]  ;;  %v40_v28 = vld [vmem:[%s298_s0 + $0x60] sm:$0xff]  ;;  %v41_v33 = vld [vmem:[%s298_s0 + $0x68] sm:$0xff] }
   0x7   :  { %v42_v34 = vld [vmem:[%s298_s0 + $0x70] sm:$0xff]  ;;  %v43_v35 = vld [vmem:[%s298_s0 + $0x78] sm:$0xff]  ;;  %v143_v44 = vld [vmem:[%s300_s3] ss:$0 sm:$0xff] }
   0x8   :  { %v23_v7 = vmax.f32 %v22_v5, 0.0  ;;  %v48_v24 = vsub.f32 %v28_v12, %v183_v13  ;;  %v49_v25 = vsub.f32 %v29_v14, %v183_v13  ;;  %v50_v30 = vsub.f32 %v30_v15, %v183_v13 }
   0x9   :  { %v51_v31 = vsub.f32 %v31_v16, %v183_v13  ;;  %v52_v32 = vsub.f32 %v32_v17, %v183_v13  ;;  %v53_v36 = vsub.f32 %v33_v18, %v183_v13  ;;  %v54_v37 = vsub.f32 %v34_v19, %v183_v13 }
   0xa   :  { %v24_v8 = vadd.f32 1e-05, %v23_v7  ;;  %v55_v38 = vsub.f32 %v35_v20, %v183_v13  ;;  %v56_v39 = vsub.f32 %v36_v21, %v183_v13  ;;  %v57_v41 = vsub.f32 %v37_v22, %v183_v13 }
   0xb   :  { %v58_v42 = vsub.f32 %v38_v26, %v183_v13  ;;  %v59_v43 = vsub.f32 %v39_v27, %v183_v13  ;;  %v60_v45 = vsub.f32 %v40_v28, %v183_v13  ;;  %v61_v46 = vsub.f32 %v41_v33, %v183_v13 }
   0xc   :  { %144 = vrsqrt.f32 %v24_v8  ;;  %v62_v47 = vsub.f32 %v42_v34, %v183_v13  ;;  %v63_v48 = vsub.f32 %v43_v35, %v183_v13 }
  0x16   :  { %v145_v23 = vpop.eup %144 }
  0x17   :  { %v27_v29 = vmul.f32 %v145_v23, %v26_v11 }
  0x19   :  { %v67_v40 = vrot.slane %v27_v29, %v46_v10 }
  0x1b   :  { %v68_v49 = vmul.f32 %v67_v40, %v48_v24  ;;  %v69_v50 = vmul.f32 %v67_v40, %v49_v25  ;;  %v70_v51 = vmul.f32 %v67_v40, %v50_v30  ;;  %v71_v52 = vmul.f32 %v67_v40, %v51_v31 }
  0x1c   :  { %v72_v53 = vmul.f32 %v67_v40, %v52_v32  ;;  %v73_v54 = vmul.f32 %v67_v40, %v53_v36  ;;  %v74_v55 = vmul.f32 %v67_v40, %v54_v37  ;;  %v75_v56 = vmul.f32 %v67_v40, %v55_v38 }
  0x1d   :  { %v91_v57 = vadd.f32 %v143_v44, %v68_v49  ;;  %v92_v58 = vadd.f32 %v143_v44, %v69_v50  ;;  %v93_v59 = vadd.f32 %v143_v44, %v70_v51  ;;  %v94_v60 = vadd.f32 %v143_v44, %v71_v52 }
  0x1e   :  { %v95_v61 = vadd.f32 %v143_v44, %v72_v53  ;;  %v96_v62 = vadd.f32 %v143_v44, %v73_v54  ;;  %v97_v63 = vadd.f32 %v143_v44, %v74_v55  ;;  %v98_v0 = vadd.f32 %v143_v44, %v75_v56 }
  0x1f   :  { %v107_v1 = vmax.f32 %v91_v57, 0.0  ;;  %v108_v2 = vmax.f32 %v92_v58, 0.0  ;;  %v109_v3 = vmax.f32 %v93_v59, 0.0  ;;  %v110_v4 = vmax.f32 %v94_v60, 0.0 }
  0x20   :  { %v111_v5 = vmax.f32 %v95_v61, 0.0  ;;  %v112_v6 = vmax.f32 %v96_v62, 0.0  ;;  %v113_v7 = vmax.f32 %v97_v63, 0.0  ;;  %v114_v8 = vmax.f32 %v98_v0, 0.0 }
  0x21   :  { %123 = vst [vmem:[%s301_s4] sm:$0xff] %v107_v1  ;;  %124 = vst [vmem:[%s301_s4 + $0x8] sm:$0xff] %v108_v2  ;;  %v76_v9 = vmul.f32 %v67_v40, %v56_v39  ;;  %v77_v10 = vmul.f32 %v67_v40, %v57_v41  ;;  %v78_v11 = vmul.f32 %v67_v40, %v58_v42 }
  0x22   :  { %125 = vst [vmem:[%s301_s4 + $0x10] sm:$0xff] %v109_v3  ;;  %126 = vst [vmem:[%s301_s4 + $0x18] sm:$0xff] %v110_v4  ;;  %v79_v12 = vmul.f32 %v67_v40, %v59_v43  ;;  %v80_v13 = vmul.f32 %v67_v40, %v60_v45  ;;  %v81_v14 = vmul.f32 %v67_v40, %v61_v46 }
  0x23   :  { %127 = vst [vmem:[%s301_s4 + $0x20] sm:$0xff] %v111_v5  ;;  %128 = vst [vmem:[%s301_s4 + $0x28] sm:$0xff] %v112_v6  ;;  %v82_v15 = vmul.f32 %v67_v40, %v62_v47  ;;  %v83_v16 = vmul.f32 %v67_v40, %v63_v48  ;;  %v99_v17 = vadd.f32 %v143_v44, %v76_v9 }
  0x24   :  { %129 = vst [vmem:[%s301_s4 + $0x30] sm:$0xff] %v113_v7  ;;  %130 = vst [vmem:[%s301_s4 + $0x38] sm:$0xff] %v114_v8  ;;  %v100_v18 = vadd.f32 %v143_v44, %v77_v10  ;;  %v101_v19 = vadd.f32 %v143_v44, %v78_v11  ;;  %v102_v20 = vadd.f32 %v143_v44, %v79_v12 }
  0x25   :  { %v103_v21 = vadd.f32 %v143_v44, %v80_v13  ;;  %v104_v22 = vadd.f32 %v143_v44, %v81_v14  ;;  %v105_v23 = vadd.f32 %v143_v44, %v82_v15  ;;  %v106_v24 = vadd.f32 %v143_v44, %v83_v16 }
  0x26   :  { %v115_v25 = vmax.f32 %v99_v17, 0.0  ;;  %v116_v26 = vmax.f32 %v100_v18, 0.0  ;;  %v117_v27 = vmax.f32 %v101_v19, 0.0  ;;  %v118_v28 = vmax.f32 %v102_v20, 0.0 }
  0x27   :  { %v119_v29 = vmax.f32 %v103_v21, 0.0  ;;  %v120_v30 = vmax.f32 %v104_v22, 0.0  ;;  %v121_v31 = vmax.f32 %v105_v23, 0.0  ;;  %v122_v32 = vmax.f32 %v106_v24, 0.0 }
  0x28   :  { %131 = vst [vmem:[%s301_s4 + $0x40] sm:$0xff] %v115_v25  ;;  %132 = vst [vmem:[%s301_s4 + $0x48] sm:$0xff] %v116_v26 }
  0x29   :  { %133 = vst [vmem:[%s301_s4 + $0x50] sm:$0xff] %v117_v27  ;;  %134 = vst [vmem:[%s301_s4 + $0x58] sm:$0xff] %v118_v28 }
  0x2a   :  { %135 = vst [vmem:[%s301_s4 + $0x60] sm:$0xff] %v119_v29  ;;  %136 = vst [vmem:[%s301_s4 + $0x68] sm:$0xff] %v120_v30 }
  0x2b   :  { %137 = vst [vmem:[%s301_s4 + $0x70] sm:$0xff] %v121_v31  ;;  %138 = vst [vmem:[%s301_s4 + $0x78] sm:$0xff] %v122_v32 }

// kernel: bottleneck_forward.9
= control target key start
LH: loop header
LB: loop body
LE: loop exit
PB: predicated region body
PF: predicated region fallthrough
CT: control target
= control target key end

     0   :  { %s683_s1 = inlined_call_operand.vmem [shape: f32[128,128], index: 1, kind: input, shape index: {}]   ;;  %s684_s0 = inlined_call_operand.vmem [shape: f32[128,128], index: 0, kind: input, shape index: {}]   ;;  %s685_s2 = inlined_call_operand.vmem [shape: f32[128,128], index: 2, kind: output, shape index: {0}]   ;;  %s686_s3 = inlined_call_operand.vmem [shape: f32[2,128], index: 3, kind: output, shape index: {1}]  }
   0x1   :  { %v65_v0 = vld [vmem:[%s683_s1] sm:$0xff]  ;;  %v66_v1 = vld [vmem:[%s683_s1 + $0x8] sm:$0xff]  ;;  %v67_v2 = vld [vmem:[%s683_s1 + $0x10] sm:$0xff] }
   0x2   :  { %v468_v3 = vpack.c.bf16 %v66_v1, %v65_v0  ;;  %v68_v4 = vld [vmem:[%s683_s1 + $0x18] sm:$0xff]  ;;  %v69_v6 = vld [vmem:[%s683_s1 + $0x20] sm:$0xff]  ;;  %v70_v7 = vld [vmem:[%s683_s1 + $0x28] sm:$0xff] }
   0x3   :  { %v472_v5 = vpack.c.bf16 %v68_v4, %v67_v2  ;;  %v476_v8 = vpack.c.bf16 %v70_v7, %v69_v6  ;;  %v49_v9 = vld [vmem:[%s684_s0] sm:$0xff]  ;;  %v71_v10 = vld [vmem:[%s683_s1 + $0x30] sm:$0xff]  ;;  %v72_v11 = vld [vmem:[%s683_s1 + $0x38] sm:$0xff] }
   0x4   :  { %469 = vmatprep.subr.bf16.mxu0 %v468_v3  ;;  %500 = vmatprep.subr.bf16.mxu1 %v468_v3  ;;  %v57_v12 = vld [vmem:[%s684_s0 + $0x40] sm:$0xff]  ;;  %v480_v13 = vpack.c.bf16 %v72_v11, %v71_v10  ;;  %v74_v15 = vld [vmem:[%s683_s1 + $0x48] sm:$0xff]  ;;  %v75_v17 = vld [vmem:[%s683_s1 + $0x50] sm:$0xff] }
   0x5   :  { %471 = vmatpush3.bf16.msra.mxu0 %v468_v3  ;;  %508 = vmatpush3.bf16.msra.mxu1 %v468_v3  ;;  %v73_v14 = vld [vmem:[%s683_s1 + $0x40] sm:$0xff]  ;;  %v76_v18 = vld [vmem:[%s683_s1 + $0x58] sm:$0xff]  ;;  %v78_v21 = vld [vmem:[%s683_s1 + $0x68] sm:$0xff] }
   0x6   :  { %473 = vmatprep.subr.bf16.mxu0 %v472_v5  ;;  %501 = vmatprep.subr.bf16.mxu1 %v472_v5  ;;  %v484_v16 = vpack.c.bf16 %v74_v15, %v73_v14  ;;  %v488_v19 = vpack.c.bf16 %v76_v18, %v75_v17  ;;  %v77_v20 = vld [vmem:[%s683_s1 + $0x60] sm:$0xff]  ;;  %v79_v23 = vld [vmem:[%s683_s1 + $0x70] sm:$0xff]  ;;  %v80_v24 = vld [vmem:[%s683_s1 + $0x78] sm:$0xff] }
   0x7   :  { %444 = vmatprep.mubr.f32.mxu0 %v49_v9  ;;  %456 = vmatprep.mubr.f32.mxu1 %v57_v12  ;;  %v492_v22 = vpack.c.bf16 %v78_v21, %v77_v20  ;;  %v496_v25 = vpack.c.bf16 %v80_v24, %v79_v23  ;;  %v50_v26 = vld [vmem:[%s684_s0 + $0x8] sm:$0xff]  ;;  %v51_v28 = vld [vmem:[%s684_s0 + $0x10] sm:$0xff]  ;;  %v52_v30 = vld [vmem:[%s684_s0 + $0x18] sm:$0xff] }
   0x8   :  { %v58_v27 = vld [vmem:[%s684_s0 + $0x48] sm:$0xff]  ;;  %v59_v29 = vld [vmem:[%s684_s0 + $0x50] sm:$0xff]  ;;  %v60_v31 = vld [vmem:[%s684_s0 + $0x58] sm:$0xff] }
   0x9   :  { %475 = vmatpush3.bf16.msra.mxu0 %v472_v5  ;;  %509 = vmatpush3.bf16.msra.mxu1 %v472_v5  ;;  %v53_v32 = vld [vmem:[%s684_s0 + $0x20] sm:$0xff]  ;;  %v54_v34 = vld [vmem:[%s684_s0 + $0x28] sm:$0xff]  ;;  %v55_v36 = vld [vmem:[%s684_s0 + $0x30] sm:$0xff] }
   0xa   :  { %477 = vmatprep.subr.bf16.mxu0 %v476_v8  ;;  %502 = vmatprep.subr.bf16.mxu1 %v476_v8  ;;  %v61_v33 = vld [vmem:[%s684_s0 + $0x60] sm:$0xff]  ;;  %v62_v35 = vld [vmem:[%s684_s0 + $0x68] sm:$0xff]  ;;  %v63_v37 = vld [vmem:[%s684_s0 + $0x70] sm:$0xff] }
   0xb   :  { %v56_v38 = vld [vmem:[%s684_s0 + $0x38] sm:$0xff] }
   0xc   :  { %v64_v39 = vld [vmem:[%s684_s0 + $0x78] sm:$0xff] }
   0xd   :  { %479 = vmatpush3.bf16.msra.mxu0 %v476_v8  ;;  %510 = vmatpush3.bf16.msra.mxu1 %v476_v8 }
   0xe   :  { %481 = vmatprep.subr.bf16.mxu0 %v480_v13  ;;  %503 = vmatprep.subr.bf16.mxu1 %v480_v13 }
  0x11   :  { %483 = vmatpush3.bf16.msra.mxu0 %v480_v13  ;;  %511 = vmatpush3.bf16.msra.mxu1 %v480_v13 }
  0x12   :  { %485 = vmatprep.subr.bf16.mxu0 %v484_v16  ;;  %504 = vmatprep.subr.bf16.mxu1 %v484_v16 }
  0x15   :  { %487 = vmatpush3.bf16.msra.mxu0 %v484_v16  ;;  %512 = vmatpush3.bf16.msra.mxu1 %v484_v16 }
  0x16   :  { %489 = vmatprep.subr.bf16.mxu0 %v488_v19  ;;  %505 = vmatprep.subr.bf16.mxu1 %v488_v19 }
  0x19   :  { %491 = vmatpush3.bf16.msra.mxu0 %v488_v19  ;;  %513 = vmatpush3.bf16.msra.mxu1 %v488_v19 }
  0x1a   :  { %493 = vmatprep.subr.bf16.mxu0 %v492_v22  ;;  %506 = vmatprep.subr.bf16.mxu1 %v492_v22 }
  0x1d   :  { %495 = vmatpush3.bf16.msra.mxu0 %v492_v22  ;;  %514 = vmatpush3.bf16.msra.mxu1 %v492_v22 }
  0x1e   :  { %497 = vmatprep.subr.bf16.mxu0 %v496_v25  ;;  %507 = vmatprep.subr.bf16.mxu1 %v496_v25 }
  0x21   :  { %499 = vmatpush3.bf16.msra.mxu0 %v496_v25  ;;  %515 = vmatpush3.bf16.msra.mxu1 %v496_v25 }
  0x24   :  { %445 = vmatmul.mubr.f32.vlgmr.msra.gmra.mrb[0].mxu0 %v50_v26  ;;  %457 = vmatmul.mubr.f32.vlgmr.msra.gmra.mrb[0].mxu1 %v58_v27 }
  0x25   :  { %447 = vmatprep.mubr.f32.mxu0 %v51_v28  ;;  %459 = vmatprep.mubr.f32.mxu1 %v59_v29 }
  0x28   :  { %448 = vmatmul.mubr.f32.gmra.mrb[2].mxu0 %v52_v30  ;;  %460 = vmatmul.mubr.f32.gmra.mrb[2].mxu1 %v60_v31 }
  0x29   :  { %450 = vmatprep.mubr.f32.mxu0 %v53_v32  ;;  %462 = vmatprep.mubr.f32.mxu1 %v61_v33 }
  0x2c   :  { %451 = vmatmul.mubr.f32.gmra.mrb[4].mxu0 %v54_v34  ;;  %463 = vmatmul.mubr.f32.gmra.mrb[4].mxu1 %v62_v35 }
  0x2d   :  { %453 = vmatprep.mubr.f32.mxu0 %v55_v36  ;;  %465 = vmatprep.mubr.f32.mxu1 %v63_v37 }
  0x30   :  { %454 = vmatmul.mubr.f32.gmra.mrb[6].mxu0 %v56_v38  ;;  %466 = vmatmul.mubr.f32.gmra.mrb[6].mxu1 %v64_v39 }
  0xf7   :  { %v446_v40 = vpop.f32.mrb[0].mxu0  ;;  %v458_v41 = vpop.f32.mrb[0].mxu1 }
  0xf8   :  { %278 = vst [vmem:[%s685_s2 + $0x8] sm:$0xff] %v446_v40  ;;  %v315_v42 = vmul.f32 %v446_v40, %v446_v40  ;;  %v147_v43 = vpop.f32.mrb[1].mxu0  ;;  %286 = vst [vmem:[%s685_s2 + $0x48] sm:$0xff] %v458_v41  ;;  %v187_v44 = vpop.f32.mrb[1].mxu1  ;;  %v323_v16 = vmul.f32 %v458_v41, %v458_v41 }
  0xf9   :  { %277 = vst [vmem:[%s685_s2] sm:$0xff] %v147_v43  ;;  %v293_v45 = vadd.f32 %v446_v40, %v147_v43  ;;  %v314_v46 = vmul.f32 %v147_v43, %v147_v43  ;;  %285 = vst [vmem:[%s685_s2 + $0x40] sm:$0xff] %v187_v44  ;;  %v322_v13 = vmul.f32 %v187_v44, %v187_v44 }
  0xfb   :  { %v330_v47 = vadd.f32 %v315_v42, %v314_v46  ;;  %v449_v48 = vpop.f32.mrb[2].mxu0  ;;  %v461_v49 = vpop.f32.mrb[2].mxu1 }
  0xfc   :  { %280 = vst [vmem:[%s685_s2 + $0x18] sm:$0xff] %v449_v48  ;;  %v157_v50 = vpop.f32.mrb[3].mxu0  ;;  %288 = vst [vmem:[%s685_s2 + $0x58] sm:$0xff] %v461_v49  ;;  %v197_v51 = vpop.f32.mrb[3].mxu1  ;;  %v317_v54 = vmul.f32 %v449_v48, %v449_v48  ;;  %v325_v22 = vmul.f32 %v461_v49, %v461_v49 }
  0xfd   :  { %279 = vst [vmem:[%s685_s2 + $0x10] sm:$0xff] %v157_v50  ;;  %v294_v52 = vadd.f32 %v293_v45, %v157_v50  ;;  %v316_v53 = vmul.f32 %v157_v50, %v157_v50  ;;  %287 = vst [vmem:[%s685_s2 + $0x50] sm:$0xff] %v197_v51  ;;  %v324_v19 = vmul.f32 %v197_v51, %v197_v51 }
  0xff   :  { %v331_v55 = vadd.f32 %v330_v47, %v316_v53  ;;  %v452_v56 = vpop.f32.mrb[4].mxu0  ;;  %v295_v57 = vadd.f32 %v449_v48, %v294_v52  ;;  %v464_v58 = vpop.f32.mrb[4].mxu1 }
 0x100   :  { %282 = vst [vmem:[%s685_s2 + $0x28] sm:$0xff] %v452_v56  ;;  %v167_v59 = vpop.f32.mrb[5].mxu0  ;;  %290 = vst [vmem:[%s685_s2 + $0x68] sm:$0xff] %v464_v58  ;;  %v207_v60 = vpop.f32.mrb[5].mxu1  ;;  %v319_v0 = vmul.f32 %v452_v56, %v452_v56  ;;  %v327_v28 = vmul.f32 %v464_v58, %v464_v58 }
 0x101   :  { %281 = vst [vmem:[%s685_s2 + $0x20] sm:$0xff] %v167_v59  ;;  %v296_v61 = vadd.f32 %v295_v57, %v167_v59  ;;  %v318_v62 = vmul.f32 %v167_v59, %v167_v59  ;;  %v332_v63 = vadd.f32 %v331_v55, %v317_v54  ;;  %289 = vst [vmem:[%s685_s2 + $0x60] sm:$0xff] %v207_v60 }
 0x102   :  { %v326_v25 = vmul.f32 %v207_v60, %v207_v60 }
 0x103   :  { %v333_v1 = vadd.f32 %v332_v63, %v318_v62  ;;  %v455_v2 = vpop.f32.mrb[6].mxu0  ;;  %v297_v3 = vadd.f32 %v452_v56, %v296_v61  ;;  %v467_v4 = vpop.f32.mrb[6].mxu1 }
 0x104   :  { %284 = vst [vmem:[%s685_s2 + $0x38] sm:$0xff] %v455_v2  ;;  %v177_v5 = vpop.f32.mrb[7].mxu0  ;;  %292 = vst [vmem:[%s685_s2 + $0x78] sm:$0xff] %v467_v4  ;;  %v217_v6 = vpop.f32.mrb[7].mxu1  ;;  %v321_v10 = vmul.f32 %v455_v2, %v455_v2  ;;  %v329_v34 = vmul.f32 %v467_v4, %v467_v4 }
 0x105   :  { %283 = vst [vmem:[%s685_s2 + $0x30] sm:$0xff] %v177_v5  ;;  %v298_v7 = vadd.f32 %v297_v3, %v177_v5  ;;  %v320_v8 = vmul.f32 %v177_v5, %v177_v5  ;;  %v334_v9 = vadd.f32 %v333_v1, %v319_v0  ;;  %291 = vst [vmem:[%s685_s2 + $0x70] sm:$0xff] %v217_v6 }
 0x106   :  { %v328_v31 = vmul.f32 %v217_v6, %v217_v6 }
 0x107   :  { %v299_v11 = vadd.f32 %v455_v2, %v298_v7  ;;  %v335_v12 = vadd.f32 %v334_v9, %v320_v8 }
 0x109   :  { %v336_v14 = vadd.f32 %v335_v12, %v321_v10  ;;  %v300_v15 = vadd.f32 %v299_v11, %v187_v44 }
 0x10b   :  { %v337_v17 = vadd.f32 %v336_v14, %v322_v13  ;;  %v301_v18 = vadd.f32 %v458_v41, %v300_v15 }
 0x10d   :  { %v302_v20 = vadd.f32 %v301_v18, %v197_v51  ;;  %v338_v21 = vadd.f32 %v337_v17, %v323_v16 }
 0x10f   :  { %v339_v23 = vadd.f32 %v338_v21, %v324_v19  ;;  %v303_v24 = vadd.f32 %v461_v49, %v302_v20 }
 0x111   :  { %v304_v26 = vadd.f32 %v303_v24, %v207_v60  ;;  %v340_v27 = vadd.f32 %v339_v23, %v325_v22 }
 0x113   :  { %v341_v29 = vadd.f32 %v340_v27, %v326_v25  ;;  %v305_v30 = vadd.f32 %v464_v58, %v304_v26 }
 0x115   :  { %v306_v32 = vadd.f32 %v305_v30, %v217_v6  ;;  %v342_v33 = vadd.f32 %v341_v29, %v327_v28 }
 0x117   :  { %v307_v35 = vadd.f32 %v467_v4, %v306_v32  ;;  %v343_v36 = vadd.f32 %v342_v33, %v328_v31 }
 0x119   :  { %v308_v37 = vrot.slane %v307_v35, 4  ;;  %v344_v38 = vadd.f32 %v343_v36, %v329_v34 }
 0x11b   :  { %v309_v39 = vadd.f32 %v308_v37, %v307_v35  ;;  %v345_v40 = vrot.slane %v344_v38, 4 }
 0x11d   :  { %v310_v41 = vrot.slane %v309_v39, 2  ;;  %v346_v42 = vadd.f32 %v345_v40, %v344_v38 }
 0x11f   :  { %v311_v43 = vadd.f32 %v310_v41, %v309_v39  ;;  %v347_v44 = vrot.slane %v346_v42, 2 }
 0x121   :  { %v312_v45 = vrot.slane %v311_v43, 1  ;;  %v348_v46 = vadd.f32 %v347_v44, %v346_v42 }
 0x123   :  { %v313_v47 = vadd.f32 %v312_v45, %v311_v43  ;;  %v349_v48 = vrot.slane %v348_v46, 1 }
 0x125   :  { %v350_v49 = vadd.f32 %v349_v48, %v348_v46  ;;  %355 = vst [vmem:[#allocation3] sm:$0x1] %v313_v47 }
 0x127   :  { %356 = vst [vmem:[#allocation3 + $0x1] sm:$0x1] %v350_v49 }
 0x12e   :  { %v370_v50 = vld [vmem:[#allocation3] sm:$0x3] }
 0x12f   :  { %371 = vst [vmem:[%s686_s3] sm:$0x3] %v370_v50 }

// kernel: bottleneck_forward.12
= control target key start
LH: loop header
LB: loop body
LE: loop exit
PB: predicated region body
PF: predicated region fallthrough
CT: control target
= control target key end

     0   :  { %v37_v6 = vlaneseq  ;;  %s195_s1 = inlined_call_operand.vmem [shape: f32[2,128], index: 1, kind: input, shape index: {}]   ;;  %s196_s0 = inlined_call_operand.vmem [shape: f32[72,128], index: 0, kind: input, shape index: {}]   ;;  %s197_s2 = inlined_call_operand.vmem [shape: f32[1,128], index: 2, kind: input, shape index: {}]   ;;  %s198_s3 = inlined_call_operand.vmem [shape: f32[1,128], index: 3, kind: input, shape index: {}]   ;;  %s199_s4 = inlined_call_operand.vmem [shape: f32[72,128], index: 4, kind: output, shape index: {}]  }
   0x1   :  { %v17_v0 = vld [vmem:[%s195_s1] sm:$0x1]  ;;  %v19_v1 = vld [vmem:[%s195_s1 + $0x1] sm:$0x1]  ;;  %v29_v14 = vld [vmem:[%s196_s0 + $0x8] sm:$0xff] }
   0x2   :  { %v18_v2 = vmul.f32 0.013888889, %v17_v0  ;;  %v20_v3 = vmul.f32 0.013888889, %v19_v1  ;;  %v38_v9 = vshrl.u32 %v37_v6, 7  ;;  %v28_v13 = vld [vmem:[%s196_s0] sm:$0xff] }
   0x3   :  { %v26_v12 = vld [vmem:[%s197_s2] sm:$0x1]  ;;  %v30_v15 = vld [vmem:[%s196_s0 + $0x10] sm:$0xff]  ;;  %v31_v16 = vld [vmem:[%s196_s0 + $0x18] sm:$0xff] }
   0x4   :  { %v21_v4 = vmul.f32 %v18_v2, %v18_v2  ;;  %v39_v10 = vsub.s32 0, %v38_v9  ;;  %v32_v17 = vld [vmem:[%s196_s0 + $0x20] sm:$0xff]  ;;  %v33_v18 = vld [vmem:[%s196_s0 + $0x28] sm:$0xff]  ;;  %v34_v19 = vld [vmem:[%s196_s0 + $0x30] sm:$0xff] }
   0x5   :  { %v35_v20 = vld [vmem:[%s196_s0 + $0x38] sm:$0xff]  ;;  %v36_v27 = vld [vmem:[%s196_s0 + $0x40] sm:$0xff] }
   0x6   :  { %v22_v5 = vsub.f32 %v20_v3, %v21_v4  ;;  %v40_v11 = vrot.slane %v18_v2, %v39_v10  ;;  %v101_v33 = vld [vmem:[%s198_s3] ss:$0 sm:$0xff] }
   0x8   :  { %v23_v7 = vmax.f32 %v22_v5, 0.0  ;;  %v41_v22 = vsub.f32 %v28_v13, %v40_v11  ;;  %v42_v24 = vsub.f32 %v29_v14, %v40_v11  ;;  %v43_v25 = vsub.f32 %v30_v15, %v40_v11 }
   0x9   :  { %v44_v26 = vsub.f32 %v31_v16, %v40_v11  ;;  %v45_v28 = vsub.f32 %v32_v17, %v40_v11  ;;  %v46_v29 = vsub.f32 %v33_v18, %v40_v11  ;;  %v47_v30 = vsub.f32 %v34_v19, %v40_v11 }
   0xa   :  { %v24_v8 = vadd.f32 1e-05, %v23_v7  ;;  %v48_v31 = vsub.f32 %v35_v20, %v40_v11  ;;  %v49_v34 = vsub.f32 %v36_v27, %v40_v11 }
   0xc   :  { %102 = vrsqrt.f32 %v24_v8 }
  0x16   :  { %v103_v21 = vpop.eup %102 }
  0x17   :  { %v27_v23 = vmul.f32 %v103_v21, %v26_v12 }
  0x19   :  { %v53_v32 = vrot.slane %v27_v23, %v39_v10 }
  0x1b   :  { %v54_v35 = vmul.f32 %v53_v32, %v41_v22  ;;  %v55_v36 = vmul.f32 %v53_v32, %v42_v24  ;;  %v56_v37 = vmul.f32 %v53_v32, %v43_v25  ;;  %v57_v38 = vmul.f32 %v53_v32, %v44_v26 }
  0x1c   :  { %v58_v39 = vmul.f32 %v53_v32, %v45_v28  ;;  %v59_v40 = vmul.f32 %v53_v32, %v46_v29  ;;  %v60_v41 = vmul.f32 %v53_v32, %v47_v30  ;;  %v61_v42 = vmul.f32 %v53_v32, %v48_v31 }
  0x1d   :  { %v70_v43 = vadd.f32 %v101_v33, %v54_v35  ;;  %v71_v44 = vadd.f32 %v101_v33, %v55_v36  ;;  %v72_v45 = vadd.f32 %v101_v33, %v56_v37  ;;  %v73_v46 = vadd.f32 %v101_v33, %v57_v38 }
  0x1e   :  { %v74_v47 = vadd.f32 %v101_v33, %v58_v39  ;;  %v75_v48 = vadd.f32 %v101_v33, %v59_v40  ;;  %v76_v49 = vadd.f32 %v101_v33, %v60_v41  ;;  %v77_v50 = vadd.f32 %v101_v33, %v61_v42 }
  0x1f   :  { %v79_v51 = vmax.f32 %v70_v43, 0.0  ;;  %v80_v52 = vmax.f32 %v71_v44, 0.0  ;;  %v81_v53 = vmax.f32 %v72_v45, 0.0  ;;  %v82_v54 = vmax.f32 %v73_v46, 0.0 }
  0x20   :  { %v83_v55 = vmax.f32 %v74_v47, 0.0  ;;  %v84_v56 = vmax.f32 %v75_v48, 0.0  ;;  %v85_v57 = vmax.f32 %v76_v49, 0.0  ;;  %v86_v58 = vmax.f32 %v77_v50, 0.0 }
  0x21   :  { %88 = vst [vmem:[%s199_s4] sm:$0xff] %v79_v51  ;;  %89 = vst [vmem:[%s199_s4 + $0x8] sm:$0xff] %v80_v52  ;;  %v62_v59 = vmul.f32 %v53_v32, %v49_v34 }
  0x22   :  { %90 = vst [vmem:[%s199_s4 + $0x10] sm:$0xff] %v81_v53  ;;  %91 = vst [vmem:[%s199_s4 + $0x18] sm:$0xff] %v82_v54 }
  0x23   :  { %92 = vst [vmem:[%s199_s4 + $0x20] sm:$0xff] %v83_v55  ;;  %93 = vst [vmem:[%s199_s4 + $0x28] sm:$0xff] %v84_v56  ;;  %v78_v60 = vadd.f32 %v101_v33, %v62_v59 }
  0x24   :  { %94 = vst [vmem:[%s199_s4 + $0x30] sm:$0xff] %v85_v57  ;;  %95 = vst [vmem:[%s199_s4 + $0x38] sm:$0xff] %v86_v58 }
  0x25   :  { %v87_v61 = vmax.f32 %v78_v60, 0.0 }
  0x27   :  { %96 = vst [vmem:[%s199_s4 + $0x40] sm:$0xff] %v87_v61 }

// kernel: bottleneck_forward.11
= control target key start
LH: loop header
LB: loop body
LE: loop exit
PB: predicated region body
PF: predicated region fallthrough
CT: control target
= control target key end

     0   :  { %s2834_s12 = smov 0   ;;  %s2836_s13 = smov 0   ;;  %s3437_s0 = inlined_call_operand.vmem [shape: f32[2,72,128], index: 0, kind: input, shape index: {}]   ;;  %s3438_s1 = inlined_call_operand.vmem [shape: f32[9,128,128], index: 1, kind: input, shape index: {}]   ;;  %s3439_s2 = inlined_call_operand.vmem [shape: f32[2,48,128], index: 2, kind: output, shape index: {0}]   ;;  %s3440_s3 = inlined_call_operand.vmem [shape: f32[2,128], index: 3, kind: output, shape index: {1}]  }
   0x1   :  { %s2838_s14 = smov 0  }
   0x2 LB: > { %s29_s15 = sadd.s32 1, %s2808_s13  ;;  %p1708_p0 = scmp.ge.s32.totalorder %s2812_s14, 1  ;;  %s2812_s14 = sphi %s2838_s14, %s14_s14   ;;  %s2808_s13 = sphi %s2836_s13, %s3444_s13   ;;  %s2804_s12 = sphi %s2834_s12, %s3443_s12  }
   0x3   : > { %p31_p1 = scmp.ge.s32.totalorder %s29_s15, 2  ;;  %p182_p2 = scmp.lt.s32.totalorder %s2812_s14, 3 }
   0x5   : > { %s3446_s15 = smov (%p31_p1, %s29_s15), 0  ;;  %p183_p3 = pnand %p1708_p0, %p182_p2 }
   0x6   : > { %v275_v0 = vld [vmem:[%s3438_s1] sm:$0xff] (!%p183_p3)  ;;  %v276_v1 = vld [vmem:[%s3438_s1 + $0x8] sm:$0xff] (!%p183_p3)  ;;  %p224_p4 = scmp.lt.s32.totalorder (!%p183_p3), %s2804_s12, 1  ;;  %v277_v5 = vld [vmem:[%s3438_s1 + $0x10] sm:$0xff] (!%p183_p3)  ;;  %p1839_p5 = scmp.ne.s32.totalorder (!%p183_p3), %s2804_s12, 0 }
   0x7   : > { %186 = sbr.rel (%p183_p3) target bundleno = 430 (0x1ae), region = 28  ;;  %v1759_v2 = vld [vmem:[%s3438_s1 + $0x200] sm:$0xff] (!%p183_p3)  ;;  %v2412_v3 = vpack.c.bf16 (!%p183_p3), %v276_v1, %v275_v0  ;;  %v1760_v4 = vld [vmem:[%s3438_s1 + $0x208] sm:$0xff] (!%p183_p3)  ;;  %v278_v6 = vld [vmem:[%s3438_s1 + $0x18] sm:$0xff] (!%p183_p3) }
   0x8   : > { %v2540_v7 = vpack.c.bf16 (!%p183_p3), %v1760_v4, %v1759_v2  ;;  %v2416_v8 = vpack.c.bf16 (!%p183_p3), %v278_v6, %v277_v5  ;;  %v1761_v9 = vld [vmem:[%s3438_s1 + $0x210] sm:$0xff] (!%p183_p3)  ;;  %v1762_v10 = vld [vmem:[%s3438_s1 + $0x218] sm:$0xff] (!%p183_p3)  ;;  %v279_v11 = vld [vmem:[%s3438_s1 + $0x20] sm:$0xff] (!%p183_p3) }
   0x9   : > { %2413 = vmatprep.subr.bf16.mxu1 (!%p183_p3), %v2412_v3  ;;  %v2544_v12 = vpack.c.bf16 (!%p183_p3), %v1762_v10, %v1761_v9  ;;  %v280_v13 = vld [vmem:[%s3438_s1 + $0x28] sm:$0xff] (!%p183_p3)  ;;  %v1763_v14 = vld [vmem:[%s3438_s1 + $0x220] sm:$0xff] (!%p183_p3)  ;;  %v281_v18 = vld [vmem:[%s3438_s1 + $0x30] sm:$0xff] (!%p183_p3) }
   0xa   : > { %v1764_v15 = vld [vmem:[%s3438_s1 + $0x228] sm:$0xff] (!%p183_p3)  ;;  %2541 = vmatprep.subr.bf16.mxu0 (!%p183_p3), %v2540_v7  ;;  %2415 = vmatpush3.bf16.msra.mxu1 (!%p183_p3), %v2412_v3  ;;  %v2420_v16 = vpack.c.bf16 (!%p183_p3), %v280_v13, %v279_v11  ;;  %v282_v19 = vld [vmem:[%s3438_s1 + $0x38] sm:$0xff] (!%p183_p3)  ;;  %v1765_v20 = vld [vmem:[%s3438_s1 + $0x230] sm:$0xff] (!%p183_p3) }
   0xb   : > { %2543 = vmatpush3.bf16.msra.mxu0 (!%p183_p3), %v2540_v7  ;;  %2417 = vmatprep.subr.bf16.mxu1 (!%p183_p3), %v2416_v8  ;;  %v2548_v17 = vpack.c.bf16 (!%p183_p3), %v1764_v15, %v1763_v14  ;;  %v1766_v21 = vld [vmem:[%s3438_s1 + $0x238] sm:$0xff] (!%p183_p3)  ;;  %v2424_v22 = vpack.c.bf16 (!%p183_p3), %v282_v19, %v281_v18  ;;  %v283_v24 = vld [vmem:[%s3438_s1 + $0x40] sm:$0xff] (!%p183_p3)  ;;  %v284_v25 = vld [vmem:[%s3438_s1 + $0x48] sm:$0xff] (!%p183_p3) }
   0xc   : > { %2545 = vmatprep.subr.bf16.mxu0 (!%p183_p3), %v2544_v12  ;;  %v2552_v23 = vpack.c.bf16 (!%p183_p3), %v1766_v21, %v1765_v20  ;;  %v1767_v27 = vld [vmem:[%s3438_s1 + $0x240] sm:$0xff] (!%p183_p3)  ;;  %v1768_v28 = vld [vmem:[%s3438_s1 + $0x248] sm:$0xff] (!%p183_p3)  ;;  %v2428_v30 = vpack.c.bf16 (!%p183_p3), %v284_v25, %v283_v24  ;;  %v285_v32 = vld [vmem:[%s3438_s1 + $0x50] sm:$0xff] (!%p183_p3) }
   0xd   : > { %v2556_v31 = vpack.c.bf16 (!%p183_p3), %v1768_v28, %v1767_v27  ;;  %v286_v33 = vld [vmem:[%s3438_s1 + $0x58] sm:$0xff] (!%p183_p3)  ;;  %v1769_v34 = vld [vmem:[%s3438_s1 + $0x250] sm:$0xff] (!%p183_p3)  ;;  %v287_v38 = vld [vmem:[%s3438_s1 + $0x60] sm:$0xff] (!%p183_p3) }
   0xe   : > { %s2883_s7 = scalar_select %p224_p4, %s2804_s12, 1  ;;  %2419 = vmatpush3.bf16.msra.mxu1 %v2416_v8  ;;  %v1770_v35 = vld [vmem:[%s3438_s1 + $0x258] sm:$0xff]  ;;  %v2432_v36 = vpack.c.bf16 %v286_v33, %v285_v32  ;;  %v288_v39 = vld [vmem:[%s3438_s1 + $0x68] sm:$0xff]  ;;  %v1771_v40 = vld [vmem:[%s3438_s1 + $0x260] sm:$0xff] }
   0xf   : > { %2547 = vmatpush3.bf16.msra.mxu0 %v2544_v12  ;;  %2421 = vmatprep.subr.bf16.mxu1 %v2420_v16  ;;  %v2560_v37 = vpack.c.bf16 %v1770_v35, %v1769_v34  ;;  %v1772_v41 = vld [vmem:[%s3438_s1 + $0x268] sm:$0xff]  ;;  %v2436_v42 = vpack.c.bf16 %v288_v39, %v287_v38  ;;  %v289_v44 = vld [vmem:[%s3438_s1 + $0x70] sm:$0xff]  ;;  %v290_v45 = vld [vmem:[%s3438_s1 + $0x78] sm:$0xff] }
  0x10   : > { %s2764_s18 = smul.u32 72, %s2883_s7  ;;  %2549 = vmatprep.subr.bf16.mxu0 %v2548_v17  ;;  %v2564_v43 = vpack.c.bf16 %v1772_v41, %v1771_v40  ;;  %v1773_v46 = vld [vmem:[%s3438_s1 + $0x270] sm:$0xff]  ;;  %v1774_v47 = vld [vmem:[%s3438_s1 + $0x278] sm:$0xff]  ;;  %v2440_v48 = vpack.c.bf16 %v290_v45, %v289_v44  ;;  %v1711_v50 = vld [vmem:[%s3438_s1 + $0x80] sm:$0xff] }
  0x11   : > { %v2568_v49 = vpack.c.bf16 %v1774_v47, %v1773_v46  ;;  %v1712_v51 = vld [vmem:[%s3438_s1 + $0x88] sm:$0xff]  ;;  %v1775_v52 = vld [vmem:[%s3438_s1 + $0x280] sm:$0xff]  ;;  %v1713_v56 = vld [vmem:[%s3438_s1 + $0x90] sm:$0xff] }
  0x12   : > { %s2910_s29 = scalar_lea.vmem %s3437_s0, %s2764_s18  ;;  %2423 = vmatpush3.bf16.msra.mxu1 %v2420_v16  ;;  %v1776_v53 = vld [vmem:[%s3438_s1 + $0x288] sm:$0xff]  ;;  %v2444_v54 = vpack.c.bf16 %v1712_v51, %v1711_v50  ;;  %v1714_v57 = vld [vmem:[%s3438_s1 + $0x98] sm:$0xff]  ;;  %v1777_v58 = vld [vmem:[%s3438_s1 + $0x290] sm:$0xff] }
  0x13   : > { %v269_v26 = vld [vmem:[%s2910_s29] sm:$0xff]  ;;  %v2926_v29 = vld [vmem:[%s2910_s29 + $0x9] sm:$0xff]  ;;  %2551 = vmatpush3.bf16.msra.mxu0 %v2548_v17  ;;  %2425 = vmatprep.subr.bf16.mxu1 %v2424_v22  ;;  %v2572_v55 = vpack.c.bf16 %v1776_v53, %v1775_v52  ;;  %v1778_v59 = vld [vmem:[%s3438_s1 + $0x298] sm:$0xff]  ;;  %v2448_v62 = vpack.c.bf16 %v1714_v57, %v1713_v56 }
  0x14   : > { %2075 = vmatprep.mubr.f32.mxu1 %v269_v26  ;;  %2239 = vmatprep.mubr.f32.mxu0 %v2926_v29  ;;  %v2990_v60 = vld [vmem:[%s2910_s29 + $0x8] sm:$0xff]  ;;  %v2993_v61 = vld [vmem:[%s2910_s29 + $0x11] sm:$0xff]  ;;  %v2576_v63 = vpack.c.bf16 %v1778_v59, %v1777_v58  ;;  %v1715_v0 = vld [vmem:[%s3438_s1 + $0xa0] sm:$0xff] }
  0x15   : > { %2553 = vmatprep.subr.bf16.mxu0 %v2552_v23  ;;  %v1716_v1 = vld [vmem:[%s3438_s1 + $0xa8] sm:$0xff]  ;;  %v1779_v2 = vld [vmem:[%s3438_s1 + $0x2a0] sm:$0xff]  ;;  %v3009_v4 = vld [vmem:[%s2910_s29 + $0x10] sm:$0xff] }
  0x16   : > { %2427 = vmatpush3.bf16.msra.mxu1 %v2424_v22  ;;  %v1780_v3 = vld [vmem:[%s3438_s1 + $0x2a8] sm:$0xff]  ;;  %v3013_v5 = vld [vmem:[%s2910_s29 + $0x19] sm:$0xff]  ;;  %v2452_v7 = vpack.c.bf16 %v1716_v1, %v1715_v0  ;;  %v1717_v10 = vld [vmem:[%s3438_s1 + $0xb0] sm:$0xff] }
  0x17   : > { %2555 = vmatpush3.bf16.msra.mxu0 %v2552_v23  ;;  %2429 = vmatprep.subr.bf16.mxu1 %v2428_v30  ;;  %v3016_v6 = vld [vmem:[%s2910_s29 + $0x18] sm:$0xff]  ;;  %v3019_v8 = vld [vmem:[%s2910_s29 + $0x21] sm:$0xff]  ;;  %v2580_v9 = vpack.c.bf16 %v1780_v3, %v1779_v2  ;;  %v1781_v12 = vld [vmem:[%s3438_s1 + $0x2b0] sm:$0xff] }
  0x18   : > { %2557 = vmatprep.subr.bf16.mxu0 %v2556_v31  ;;  %v1718_v11 = vld [vmem:[%s3438_s1 + $0xb8] sm:$0xff]  ;;  %v3037_v14 = vld [vmem:[%s2910_s29 + $0x20] sm:$0xff]  ;;  %v3041_v15 = vld [vmem:[%s2910_s29 + $0x29] sm:$0xff] }
  0x19   : > { %v1782_v13 = vld [vmem:[%s3438_s1 + $0x2b8] sm:$0xff]  ;;  %v3044_v16 = vld [vmem:[%s2910_s29 + $0x28] sm:$0xff]  ;;  %v2456_v17 = vpack.c.bf16 %v1718_v11, %v1717_v10  ;;  %v1719_v20 = vld [vmem:[%s3438_s1 + $0xc0] sm:$0xff] }
  0x1a   : > { %2431 = vmatpush3.bf16.msra.mxu1 %v2428_v30  ;;  %v3047_v18 = vld [vmem:[%s2910_s29 + $0x31] sm:$0xff]  ;;  %v2584_v19 = vpack.c.bf16 %v1782_v13, %v1781_v12  ;;  %v1720_v21 = vld [vmem:[%s3438_s1 + $0xc8] sm:$0xff]  ;;  %v1783_v22 = vld [vmem:[%s3438_s1 + $0x2c0] sm:$0xff] }
  0x1b   : > { %2559 = vmatpush3.bf16.msra.mxu0 %v2556_v31  ;;  %2433 = vmatprep.subr.bf16.mxu1 %v2432_v36  ;;  %v1784_v23 = vld [vmem:[%s3438_s1 + $0x2c8] sm:$0xff]  ;;  %v2460_v26 = vpack.c.bf16 %v1720_v21, %v1719_v20  ;;  %v1721_v28 = vld [vmem:[%s3438_s1 + $0xd0] sm:$0xff]  ;;  %v1722_v30 = vld [vmem:[%s3438_s1 + $0xd8] sm:$0xff] }
  0x1c   : > { %2561 = vmatprep.subr.bf16.mxu0 %v2560_v37  ;;  %v392_v24 = vld [vmem:[%s2910_s29 + $0x1] sm:$0xff]  ;;  %v3067_v25 = vld [vmem:[%s2910_s29 + $0xa] sm:$0xff]  ;;  %v2588_v27 = vpack.c.bf16 %v1784_v23, %v1783_v22  ;;  %v1786_v32 = vld [vmem:[%s3438_s1 + $0x2d8] sm:$0xff]  ;;  %v2464_v33 = vpack.c.bf16 %v1722_v30, %v1721_v28 }
  0x1d   : > { %v1785_v31 = vld [vmem:[%s3438_s1 + $0x2d0] sm:$0xff]  ;;  %v1723_v35 = vld [vmem:[%s3438_s1 + $0xe0] sm:$0xff]  ;;  %v1788_v38 = vld [vmem:[%s3438_s1 + $0x2e8] sm:$0xff] }
  0x1e   : > { %2435 = vmatpush3.bf16.msra.mxu1 %v2432_v36  ;;  %v2592_v34 = vpack.c.bf16 %v1786_v32, %v1785_v31  ;;  %v1724_v36 = vld [vmem:[%s3438_s1 + $0xe8] sm:$0xff]  ;;  %v1725_v41 = vld [vmem:[%s3438_s1 + $0xf0] sm:$0xff]  ;;  %v1790_v44 = vld [vmem:[%s3438_s1 + $0x2f8] sm:$0xff] }
  0x1f   : > { %2563 = vmatpush3.bf16.msra.mxu0 %v2560_v37  ;;  %2437 = vmatprep.subr.bf16.mxu1 %v2436_v42  ;;  %v1787_v37 = vld [vmem:[%s3438_s1 + $0x2e0] sm:$0xff]  ;;  %v2468_v39 = vpack.c.bf16 %v1724_v36, %v1723_v35  ;;  %v1792_v50 = vld [vmem:[%s3438_s1 + $0x308] sm:$0xff]  ;;  %v1729_v53 = vld [vmem:[%s3438_s1 + $0x110] sm:$0xff] }
  0x20   : > { %2565 = vmatprep.subr.bf16.mxu0 %v2564_v43  ;;  %v2596_v40 = vpack.c.bf16 %v1788_v38, %v1787_v37  ;;  %v1727_v47 = vld [vmem:[%s3438_s1 + $0x100] sm:$0xff]  ;;  %v1794_v56 = vld [vmem:[%s3438_s1 + $0x318] sm:$0xff]  ;;  %v1796_v1 = vld [vmem:[%s3438_s1 + $0x328] sm:$0xff] }
  0x21   : > { %v3131_v57 = vld [vmem:[%s2910_s29 + $0x12] sm:$0xff]  ;;  %v1795_v0 = vld [vmem:[%s3438_s1 + $0x320] sm:$0xff]  ;;  %v3170_v13 = vld [vmem:[%s2910_s29 + $0x2a] sm:$0xff] }
  0x22   : > { %2439 = vmatpush3.bf16.msra.mxu1 %v2436_v42  ;;  %v1726_v42 = vld [vmem:[%s3438_s1 + $0xf8] sm:$0xff]  ;;  %v1797_v11 = vld [vmem:[%s3438_s1 + $0x330] sm:$0xff]  ;;  %v1735_v21 = vld [vmem:[%s3438_s1 + $0x140] sm:$0xff] }
  0x23   : > { %2567 = vmatpush3.bf16.msra.mxu0 %v2564_v43  ;;  %2441 = vmatprep.subr.bf16.mxu1 %v2440_v48  ;;  %v1789_v43 = vld [vmem:[%s3438_s1 + $0x2f0] sm:$0xff]  ;;  %v2472_v45 = vpack.c.bf16 %v1726_v42, %v1725_v41  ;;  %v3148_v2 = vld [vmem:[%s2910_s29 + $0x1a] sm:$0xff]  ;;  %v1736_v22 = vld [vmem:[%s3438_s1 + $0x148] sm:$0xff] }
  0x24   : > { %2569 = vmatprep.subr.bf16.mxu0 %v2568_v49  ;;  %v2600_v46 = vpack.c.bf16 %v1790_v44, %v1789_v43  ;;  %v1734_v10 = vld [vmem:[%s3438_s1 + $0x138] sm:$0xff]  ;;  %v1799_v23 = vld [vmem:[%s3438_s1 + $0x340] sm:$0xff]  ;;  %v1737_v30 = vld [vmem:[%s3438_s1 + $0x150] sm:$0xff] }
  0x25   : > { %v1798_v12 = vld [vmem:[%s3438_s1 + $0x338] sm:$0xff]  ;;  %v1801_v32 = vld [vmem:[%s3438_s1 + $0x350] sm:$0xff]  ;;  %v1739_v36 = vld [vmem:[%s3438_s1 + $0x160] sm:$0xff] }
  0x26   : > { %2443 = vmatpush3.bf16.msra.mxu1 %v2440_v48  ;;  %v1728_v48 = vld [vmem:[%s3438_s1 + $0x108] sm:$0xff]  ;;  %v2616_v20 = vpack.c.bf16 %v1798_v12, %v1797_v11  ;;  %v1738_v31 = vld [vmem:[%s3438_s1 + $0x158] sm:$0xff]  ;;  %v1803_v38 = vld [vmem:[%s3438_s1 + $0x360] sm:$0xff] }
  0x27   : > { %2571 = vmatpush3.bf16.msra.mxu0 %v2568_v49  ;;  %2445 = vmatprep.subr.bf16.mxu1 %v2444_v54  ;;  %v1791_v49 = vld [vmem:[%s3438_s1 + $0x300] sm:$0xff]  ;;  %v2476_v51 = vpack.c.bf16 %v1728_v48, %v1727_v47  ;;  %v1740_v37 = vld [vmem:[%s3438_s1 + $0x168] sm:$0xff]  ;;  %v1741_v42 = vld [vmem:[%s3438_s1 + $0x170] sm:$0xff] }
  0x28   : > { %2573 = vmatprep.subr.bf16.mxu0 %v2572_v55  ;;  %v2604_v52 = vpack.c.bf16 %v1792_v50, %v1791_v49  ;;  %v1742_v43 = vld [vmem:[%s3438_s1 + $0x178] sm:$0xff]  ;;  %v1805_v44 = vld [vmem:[%s3438_s1 + $0x370] sm:$0xff]  ;;  %v1743_v48 = vld [vmem:[%s3438_s1 + $0x180] sm:$0xff] }
  0x29   : > { %2076 = vmatmul.mubr.f32.vlgmr.msra.gmra.mrb[0].mxu1 %v2990_v60  ;;  %v1744_v49 = vld [vmem:[%s3438_s1 + $0x188] sm:$0xff]  ;;  %v1807_v50 = vld [vmem:[%s3438_s1 + $0x380] sm:$0xff]  ;;  %v1813_v11 = vld [vmem:[%s3438_s1 + $0x3b0] sm:$0xff] }
  0x2a   : > { %2447 = vmatpush3.bf16.msra.mxu1 %v2444_v54  ;;  %2240 = vmatmul.mubr.f32.vlgmr.msra.gmra.mrb[0].mxu0 %v2993_v61  ;;  %v1730_v54 = vld [vmem:[%s3438_s1 + $0x118] sm:$0xff] }
  0x2b   : > { %2575 = vmatpush3.bf16.msra.mxu0 %v2572_v55  ;;  %2449 = vmatprep.subr.bf16.mxu1 %v2448_v62  ;;  %v1793_v55 = vld [vmem:[%s3438_s1 + $0x310] sm:$0xff]  ;;  %v2480_v58 = vpack.c.bf16 %v1730_v54, %v1729_v53  ;;  %v1814_v12 = vld [vmem:[%s3438_s1 + $0x3b8] sm:$0xff] }
  0x2c   : > { %2577 = vmatprep.subr.bf16.mxu0 %v2576_v63  ;;  %2078 = vmatprep.mubr.f32.mxu1 %v3009_v4  ;;  %v2608_v59 = vpack.c.bf16 %v1794_v56, %v1793_v55  ;;  %v1745_v54 = vld [vmem:[%s3438_s1 + $0x190] sm:$0xff]  ;;  %v1746_v55 = vld [vmem:[%s3438_s1 + $0x198] sm:$0xff] }
  0x2d   : > { %2242 = vmatprep.mubr.f32.mxu0 %v3013_v5  ;;  %2079 = vmatmul.mubr.f32.gmra.mrb[2].mxu1 %v3016_v6  ;;  %v1809_v56 = vld [vmem:[%s3438_s1 + $0x390] sm:$0xff] }
  0x2e   : > { %2451 = vmatpush3.bf16.msra.mxu1 %v2448_v62  ;;  %2243 = vmatmul.mubr.f32.gmra.mrb[2].mxu0 %v3019_v8  ;;  %v1731_v62 = vld [vmem:[%s3438_s1 + $0x120] sm:$0xff] }
  0x2f   : > { %2579 = vmatpush3.bf16.msra.mxu0 %v2576_v63  ;;  %2453 = vmatprep.subr.bf16.mxu1 %v2452_v7  ;;  %v1732_v63 = vld [vmem:[%s3438_s1 + $0x128] sm:$0xff] }
  0x30   : > { %2581 = vmatprep.subr.bf16.mxu0 %v2580_v9  ;;  %2081 = vmatprep.mubr.f32.mxu1 %v3037_v14  ;;  %v2484_v3 = vpack.c.bf16 %v1732_v63, %v1731_v62  ;;  %v1747_v63 = vld [vmem:[%s3438_s1 + $0x1a0] sm:$0xff] }
  0x31   : > { %2245 = vmatprep.mubr.f32.mxu0 %v3041_v15  ;;  %2082 = vmatmul.mubr.f32.gmra.mrb[4].mxu1 %v3044_v16 }
  0x32   : > { %2455 = vmatpush3.bf16.msra.mxu1 %v2452_v7  ;;  %2246 = vmatmul.mubr.f32.gmra.mrb[4].mxu0 %v3047_v18  ;;  %v3151_v7 = vld [vmem:[%s2910_s29 + $0x22] sm:$0xff] }
  0x33   : > { %2583 = vmatpush3.bf16.msra.mxu0 %v2580_v9  ;;  %2457 = vmatprep.subr.bf16.mxu1 %v2456_v17  ;;  %v1733_v9 = vld [vmem:[%s3438_s1 + $0x130] sm:$0xff] }
  0x34   : > { %2585 = vmatprep.subr.bf16.mxu0 %v2584_v19  ;;  %2116 = vmatprep.mubr.f32.mxu1 %v392_v24  ;;  %v1800_v24 = vld [vmem:[%s3438_s1 + $0x348] sm:$0xff] }
  0x35   : > { %2280 = vmatprep.mubr.f32.mxu0 %v3067_v25  ;;  %v2620_v28 = vpack.c.bf16 %v1800_v24, %v1799_v23  ;;  %v1751_v23 = vld [vmem:[%s3438_s1 + $0x1c0] sm:$0xff]  ;;  %v1752_v24 = vld [vmem:[%s3438_s1 + $0x1c8] sm:$0xff] }
  0x36   : > { %2459 = vmatpush3.bf16.msra.mxu1 %v2456_v17  ;;  %v2488_v17 = vpack.c.bf16 %v1734_v10, %v1733_v9  ;;  %v1750_v10 = vld [vmem:[%s3438_s1 + $0x1b8] sm:$0xff] }
  0x37   : > { %2587 = vmatpush3.bf16.msra.mxu0 %v2584_v19  ;;  %2461 = vmatprep.subr.bf16.mxu1 %v2460_v26  ;;  %v3173_v19 = vld [vmem:[%s2910_s29 + $0x32] sm:$0xff] }
  0x38   : > { %2589 = vmatprep.subr.bf16.mxu0 %v2588_v27 }
  0x3a   : > { %2463 = vmatpush3.bf16.msra.mxu1 %v2460_v26  ;;  %v516_v26 = vld [vmem:[%s2910_s29 + $0x2] sm:$0xff] }
  0x3b   : > { %2591 = vmatpush3.bf16.msra.mxu0 %v2588_v27  ;;  %2465 = vmatprep.subr.bf16.mxu1 %v2464_v33  ;;  %v2492_v27 = vpack.c.bf16 %v1736_v22, %v1735_v21  ;;  %v1017_v21 = vld [vmem:[%s2910_s29 + $0x38] sm:$0xff]  ;;  %v2648_v22 = vpack.c.bf16 %v1814_v12, %v1813_v11 }
  0x3c   : > { %2593 = vmatprep.subr.bf16.mxu0 %v2592_v34 }
  0x3e   : > { %2467 = vmatpush3.bf16.msra.mxu1 %v2464_v33  ;;  %v1802_v33 = vld [vmem:[%s3438_s1 + $0x358] sm:$0xff] }
  0x3f   : > { %2595 = vmatpush3.bf16.msra.mxu0 %v2592_v34  ;;  %2469 = vmatprep.subr.bf16.mxu1 %v2468_v39  ;;  %v2496_v34 = vpack.c.bf16 %v1738_v31, %v1737_v30  ;;  %v2624_v35 = vpack.c.bf16 %v1802_v33, %v1801_v32  ;;  %v1753_v31 = vld [vmem:[%s3438_s1 + $0x1d0] sm:$0xff]  ;;  %v1754_v32 = vld [vmem:[%s3438_s1 + $0x1d8] sm:$0xff] }
  0x40   : > { %2597 = vmatprep.subr.bf16.mxu0 %v2596_v40  ;;  %v1817_v33 = vld [vmem:[%s3438_s1 + $0x3d0] sm:$0xff] }
  0x42   : > { %2471 = vmatpush3.bf16.msra.mxu1 %v2468_v39  ;;  %v1804_v39 = vld [vmem:[%s3438_s1 + $0x368] sm:$0xff] }
  0x43   : > { %2599 = vmatpush3.bf16.msra.mxu0 %v2596_v40  ;;  %2473 = vmatprep.subr.bf16.mxu1 %v2472_v45  ;;  %v2500_v40 = vpack.c.bf16 %v1740_v37, %v1739_v36  ;;  %v2628_v41 = vpack.c.bf16 %v1804_v39, %v1803_v38  ;;  %v1756_v37 = vld [vmem:[%s3438_s1 + $0x1e8] sm:$0xff]  ;;  %v1819_v38 = vld [vmem:[%s3438_s1 + $0x3e0] sm:$0xff] }
  0x44   : > { %2601 = vmatprep.subr.bf16.mxu0 %v2600_v46 }
  0x46   : > { %2475 = vmatpush3.bf16.msra.mxu1 %v2472_v45  ;;  %v1806_v45 = vld [vmem:[%s3438_s1 + $0x378] sm:$0xff] }
  0x47   : > { %2603 = vmatpush3.bf16.msra.mxu0 %v2600_v46  ;;  %2477 = vmatprep.subr.bf16.mxu1 %v2476_v51  ;;  %v2504_v46 = vpack.c.bf16 %v1742_v43, %v1741_v42  ;;  %v2632_v47 = vpack.c.bf16 %v1806_v45, %v1805_v44  ;;  %v1758_v42 = vld [vmem:[%s3438_s1 + $0x1f8] sm:$0xff]  ;;  %v1821_v43 = vld [vmem:[%s3438_s1 + $0x3f0] sm:$0xff] }
  0x48   : > { %2605 = vmatprep.subr.bf16.mxu0 %v2604_v52  ;;  %v1822_v44 = vld [vmem:[%s3438_s1 + $0x3f8] sm:$0xff] }
  0x49   : > { %2117 = vmatmul.mubr.f32.vlgmr.msra.gmra.mrb[0].mxu1 %v2926_v29  ;;  %v2612_v29 = vpack.c.bf16 %v1796_v1, %v1795_v0  ;;  %v1748_v0 = vld [vmem:[%s3438_s1 + $0x1a8] sm:$0xff]  ;;  %v1811_v1 = vld [vmem:[%s3438_s1 + $0x3a0] sm:$0xff] }
  0x4a   : > { %2479 = vmatpush3.bf16.msra.mxu1 %v2476_v51  ;;  %2281 = vmatmul.mubr.f32.vlgmr.msra.gmra.mrb[0].mxu0 %v3131_v57  ;;  %v1808_v51 = vld [vmem:[%s3438_s1 + $0x388] sm:$0xff] }
  0x4b   : > { %2607 = vmatpush3.bf16.msra.mxu0 %v2604_v52  ;;  %2481 = vmatprep.subr.bf16.mxu1 %v2480_v58  ;;  %v2508_v52 = vpack.c.bf16 %v1744_v49, %v1743_v48  ;;  %v2636_v53 = vpack.c.bf16 %v1808_v51, %v1807_v50  ;;  %v1824_v48 = vld [vmem:[%s3438_s1 + $0x408] sm:$0xff]  ;;  %v1825_v50 = vld [vmem:[%s3438_s1 + $0x410] sm:$0xff]  ;;  %v1826_v51 = vld [vmem:[%s3438_s1 + $0x418] sm:$0xff] }
  0x4c   : > { %2609 = vmatprep.subr.bf16.mxu0 %v2608_v59  ;;  %2119 = vmatprep.mubr.f32.mxu1 %v2993_v61 }
  0x4d   : > { %2283 = vmatprep.mubr.f32.mxu0 %v3148_v2  ;;  %2120 = vmatmul.mubr.f32.gmra.mrb[2].mxu1 %v3013_v5 }
  0x4e   : > { %2483 = vmatpush3.bf16.msra.mxu1 %v2480_v58  ;;  %2284 = vmatmul.mubr.f32.gmra.mrb[2].mxu0 %v3151_v7  ;;  %v1810_v58 = vld [vmem:[%s3438_s1 + $0x398] sm:$0xff] }
  0x4f   : > { %2611 = vmatpush3.bf16.msra.mxu0 %v2608_v59  ;;  %2485 = vmatprep.subr.bf16.mxu1 %v2484_v3  ;;  %v2512_v59 = vpack.c.bf16 %v1746_v55, %v1745_v54  ;;  %v2640_v62 = vpack.c.bf16 %v1810_v58, %v1809_v56  ;;  %v1828_v54 = vld [vmem:[%s3438_s1 + $0x428] sm:$0xff]  ;;  %v1830_v56 = vld [vmem:[%s3438_s1 + $0x438] sm:$0xff] }
  0x50   : > { %2613 = vmatprep.subr.bf16.mxu0 %v2612_v29  ;;  %2122 = vmatprep.mubr.f32.mxu1 %v3019_v8 }
  0x51   : > { %2286 = vmatprep.mubr.f32.mxu0 %v3170_v13  ;;  %2123 = vmatmul.mubr.f32.gmra.mrb[4].mxu1 %v3041_v15 }
  0x52   : > { %2487 = vmatpush3.bf16.msra.mxu1 %v2484_v3  ;;  %2287 = vmatmul.mubr.f32.gmra.mrb[4].mxu0 %v3173_v19  ;;  %v1812_v3 = vld [vmem:[%s3438_s1 + $0x3a8] sm:$0xff] }
  0x53   : > { %2615 = vmatpush3.bf16.msra.mxu0 %v2612_v29  ;;  %2489 = vmatprep.subr.bf16.mxu1 %v2488_v17  ;;  %v2516_v29 = vpack.c.bf16 %v1748_v0, %v1747_v63  ;;  %v2644_v9 = vpack.c.bf16 %v1812_v3, %v1811_v1  ;;  %v1265_v1 = vld [vmem:[%s2910_s29 + $0x3a] sm:$0xff] }
  0x54   : > { %2617 = vmatprep.subr.bf16.mxu0 %v2616_v20  ;;  %2157 = vmatprep.mubr.f32.mxu1 %v516_v26  ;;  %v1815_v26 = vld [vmem:[%s3438_s1 + $0x3c0] sm:$0xff] }
  0x55   : > { %2321 = vmatprep.mubr.f32.mxu0 %v3009_v4 }
  0x56   : > { %2491 = vmatpush3.bf16.msra.mxu1 %v2488_v17  ;;  %v3284_v17 = vld [vmem:[%s2910_s29 + $0x30] sm:$0xff] }
  0x57   : > { %2619 = vmatpush3.bf16.msra.mxu0 %v2616_v20  ;;  %2493 = vmatprep.subr.bf16.mxu1 %v2492_v27 }
  0x58   : > { %2621 = vmatprep.subr.bf16.mxu0 %v2620_v28 }
  0x5a   : > { %2495 = vmatpush3.bf16.msra.mxu1 %v2492_v27  ;;  %v1816_v27 = vld [vmem:[%s3438_s1 + $0x3c8] sm:$0xff] }
  0x5b   : > { %2623 = vmatpush3.bf16.msra.mxu0 %v2620_v28  ;;  %2497 = vmatprep.subr.bf16.mxu1 %v2496_v34  ;;  %v2524_v28 = vpack.c.bf16 %v1752_v24, %v1751_v23  ;;  %v2652_v30 = vpack.c.bf16 %v1816_v27, %v1815_v26 }
  0x5c   : > { %2625 = vmatprep.subr.bf16.mxu0 %v2624_v35 }
  0x5e   : > { %2499 = vmatpush3.bf16.msra.mxu1 %v2496_v34  ;;  %v1818_v34 = vld [vmem:[%s3438_s1 + $0x3d8] sm:$0xff] }
  0x5f   : > { %2627 = vmatpush3.bf16.msra.mxu0 %v2624_v35  ;;  %2501 = vmatprep.subr.bf16.mxu1 %v2500_v40  ;;  %v2528_v35 = vpack.c.bf16 %v1754_v32, %v1753_v31  ;;  %v2656_v36 = vpack.c.bf16 %v1818_v34, %v1817_v33 }
  0x60   : > { %2629 = vmatprep.subr.bf16.mxu0 %v2628_v41 }
  0x62   : > { %2503 = vmatpush3.bf16.msra.mxu1 %v2500_v40 }
  0x63   : > { %2631 = vmatpush3.bf16.msra.mxu0 %v2628_v41  ;;  %2505 = vmatprep.subr.bf16.mxu1 %v2504_v46  ;;  %v1757_v41 = vld [vmem:[%s3438_s1 + $0x1f0] sm:$0xff] }
  0x64   : > { %2633 = vmatprep.subr.bf16.mxu0 %v2632_v47  ;;  %v2536_v45 = vpack.c.bf16 %v1758_v42, %v1757_v41 }
  0x66   : > { %2507 = vmatpush3.bf16.msra.mxu1 %v2504_v46  ;;  %v2664_v46 = vpack.c.bf16 %v1822_v44, %v1821_v43 }
  0x67   : > { %2635 = vmatpush3.bf16.msra.mxu0 %v2632_v47  ;;  %2509 = vmatprep.subr.bf16.mxu1 %v2508_v52  ;;  %v1823_v47 = vld [vmem:[%s3438_s1 + $0x400] sm:$0xff] }
  0x68   : > { %2637 = vmatprep.subr.bf16.mxu0 %v2636_v53  ;;  %v2668_v49 = vpack.c.bf16 %v1824_v48, %v1823_v47 }
  0x69   : > { %2158 = vmatmul.mubr.f32.vlgmr.msra.gmra.mrb[0].mxu1 %v3067_v25  ;;  %v1749_v25 = vld [vmem:[%s3438_s1 + $0x1b0] sm:$0xff] }
  0x6a   : > { %2511 = vmatpush3.bf16.msra.mxu1 %v2508_v52  ;;  %2322 = vmatmul.mubr.f32.vlgmr.msra.gmra.mrb[0].mxu0 %v3016_v6  ;;  %v2520_v20 = vpack.c.bf16 %v1750_v10, %v1749_v25  ;;  %v2672_v52 = vpack.c.bf16 %v1826_v51, %v1825_v50 }
  0x6b   : > { %2639 = vmatpush3.bf16.msra.mxu0 %v2636_v53  ;;  %2513 = vmatprep.subr.bf16.mxu1 %v2512_v59  ;;  %v1827_v53 = vld [vmem:[%s3438_s1 + $0x420] sm:$0xff] }
  0x6c   : > { %2641 = vmatprep.subr.bf16.mxu0 %v2640_v62  ;;  %2160 = vmatprep.mubr.f32.mxu1 %v3131_v57  ;;  %v2676_v55 = vpack.c.bf16 %v1828_v54, %v1827_v53 }
  0x6d   : > { %2324 = vmatprep.mubr.f32.mxu0 %v3037_v14  ;;  %2161 = vmatmul.mubr.f32.gmra.mrb[2].mxu1 %v3148_v2 }
  0x6e   : > { %2515 = vmatpush3.bf16.msra.mxu1 %v2512_v59  ;;  %2325 = vmatmul.mubr.f32.gmra.mrb[2].mxu0 %v3044_v16  ;;  %v1835_v59 = vld [vmem:[%s3438_s1 + $0x460] sm:$0xff] }
  0x6f   : > { %2643 = vmatpush3.bf16.msra.mxu0 %v2640_v62  ;;  %2517 = vmatprep.subr.bf16.mxu1 %v2516_v29  ;;  %v1836_v62 = vld [vmem:[%s3438_s1 + $0x468] sm:$0xff] }
  0x70   : > { %2645 = vmatprep.subr.bf16.mxu0 %v2644_v9  ;;  %2163 = vmatprep.mubr.f32.mxu1 %v3151_v7  ;;  %v2692_v63 = vpack.c.bf16 %v1836_v62, %v1835_v59 }
  0x71   : > { %2327 = vmatprep.mubr.f32.mxu0 %v3284_v17  ;;  %2164 = vmatmul.mubr.f32.gmra.mrb[4].mxu1 %v3170_v13 }
  0x72   : > { %2519 = vmatpush3.bf16.msra.mxu1 %v2516_v29  ;;  %2328 = vmatmul.mubr.f32.gmra.mrb[4].mxu0 %v1017_v21 }
  0x73   : > { %2647 = vmatpush3.bf16.msra.mxu0 %v2644_v9  ;;  %2521 = vmatprep.subr.bf16.mxu1 %v2520_v20 }
  0x74   : > { %2649 = vmatprep.subr.bf16.mxu0 %v2648_v22  ;;  %2198 = vmatprep.mubr.f32.mxu1 %v2990_v60  ;;  %v1755_v60 = vld [vmem:[%s3438_s1 + $0x1e0] sm:$0xff] }
  0x75   : > { %2362 = vmatprep.mubr.f32.mxu0 %v2993_v61  ;;  %v1820_v61 = vld [vmem:[%s3438_s1 + $0x3e8] sm:$0xff]  ;;  %v2532_v39 = vpack.c.bf16 %v1756_v37, %v1755_v60 }
  0x76   : > { %2523 = vmatpush3.bf16.msra.mxu1 %v2520_v20  ;;  %v2660_v40 = vpack.c.bf16 %v1820_v61, %v1819_v38 }
  0x77   : > { %2651 = vmatpush3.bf16.msra.mxu0 %v2648_v22  ;;  %2525 = vmatprep.subr.bf16.mxu1 %v2524_v28 }
  0x78   : > { %2653 = vmatprep.subr.bf16.mxu0 %v2652_v30 }
  0x7a   : > { %2527 = vmatpush3.bf16.msra.mxu1 %v2524_v28 }
  0x7b   : > { %2655 = vmatpush3.bf16.msra.mxu0 %v2652_v30  ;;  %2529 = vmatprep.subr.bf16.mxu1 %v2528_v35 }
  0x7c   : > { %2657 = vmatprep.subr.bf16.mxu0 %v2656_v36 }
  0x7e   : > { %2531 = vmatpush3.bf16.msra.mxu1 %v2528_v35 }
  0x7f   : > { %2659 = vmatpush3.bf16.msra.mxu0 %v2656_v36  ;;  %2533 = vmatprep.subr.bf16.mxu1 %v2532_v39 }
  0x80   : > { %2661 = vmatprep.subr.bf16.mxu0 %v2660_v40 }
  0x82   : > { %2535 = vmatpush3.bf16.msra.mxu1 %v2532_v39 }
  0x83   : > { %2663 = vmatpush3.bf16.msra.mxu0 %v2660_v40  ;;  %2537 = vmatprep.subr.bf16.mxu1 %v2536_v45 }
  0x84   : > { %2665 = vmatprep.subr.bf16.mxu0 %v2664_v46 }
  0x86   : > { %2539 = vmatpush3.bf16.msra.mxu1 %v2536_v45 }
  0x87   : > { %2667 = vmatpush3.bf16.msra.mxu0 %v2664_v46  ;;  %2700 = vmatprep.subr.bf16.mxu1 %v2668_v49 }
  0x88   : > { %2669 = vmatprep.subr.bf16.mxu0 %v2668_v49 }
  0x89   : > { %2199 = vmatmul.mubr.f32.vlgmr.msra.gmra.mrb[0].mxu1 %v3009_v4  ;;  %v1829_v4 = vld [vmem:[%s3438_s1 + $0x430] sm:$0xff] }
  0x8a   : > { %2363 = vmatmul.mubr.f32.vlgmr.msra.gmra.mrb[0].mxu0 %v3013_v5  ;;  %2708 = vmatpush3.bf16.msra.mxu1 %v2668_v49  ;;  %v1141_v5 = vld [vmem:[%s2910_s29 + $0x39] sm:$0xff]  ;;  %s2765_s29 = smul.u32 48, %s2883_s7 }
  0x8b   : > { %2671 = vmatpush3.bf16.msra.mxu0 %v2668_v49  ;;  %2201 = vmatprep.mubr.f32.mxu1 %v3016_v6  ;;  %v2680_v6 = vpack.c.bf16 %v1830_v56, %v1829_v4 }
  0x8c   : > { %2365 = vmatprep.mubr.f32.mxu0 %v3019_v8  ;;  %2673 = vmatprep.subr.bf16.mxu0 %v2672_v52  ;;  %v1831_v8 = vld [vmem:[%s3438_s1 + $0x440] sm:$0xff]  ;;  %s3408_s10 = scalar_lea.vmem %s3439_s2, %s2765_s29 }
  0x8d   : > { %2202 = vmatmul.mubr.f32.gmra.mrb[2].mxu1 %v3037_v14  ;;  %2701 = vmatprep.subr.bf16.mxu1 %v2672_v52  ;;  %v1832_v14 = vld [vmem:[%s3438_s1 + $0x448] sm:$0xff] }
  0x8e   : > { %2366 = vmatmul.mubr.f32.gmra.mrb[2].mxu0 %v3041_v15  ;;  %2709 = vmatpush3.bf16.msra.mxu1 %v2672_v52  ;;  %v2684_v15 = vpack.c.bf16 %v1832_v14, %v1831_v8 }
  0x8f   : > { %2675 = vmatpush3.bf16.msra.mxu0 %v2672_v52  ;;  %2204 = vmatprep.mubr.f32.mxu1 %v3044_v16  ;;  %v1833_v16 = vld [vmem:[%s3438_s1 + $0x450] sm:$0xff] }
  0x90   : > { %2368 = vmatprep.mubr.f32.mxu0 %v3047_v18  ;;  %2677 = vmatprep.subr.bf16.mxu0 %v2676_v55  ;;  %v1834_v18 = vld [vmem:[%s3438_s1 + $0x458] sm:$0xff] }
  0x91   : > { %2205 = vmatmul.mubr.f32.gmra.mrb[4].mxu1 %v3284_v17  ;;  %2702 = vmatprep.subr.bf16.mxu1 %v2676_v55  ;;  %v2688_v58 = vpack.c.bf16 %v1834_v18, %v1833_v16 }
  0x92   : > { %2369 = vmatmul.mubr.f32.gmra.mrb[4].mxu0 %v1141_v5  ;;  %2710 = vmatpush3.bf16.msra.mxu1 %v2676_v55 }
  0x93   : > { %2679 = vmatpush3.bf16.msra.mxu0 %v2676_v55  ;;  %2703 = vmatprep.subr.bf16.mxu1 %v2680_v6 }
  0x94   : > { %2681 = vmatprep.subr.bf16.mxu0 %v2680_v6  ;;  %2403 = vmatprep.mubr.f32.mxu0 %v3131_v57  ;;  %v1837_v57 = vld [vmem:[%s3438_s1 + $0x470] sm:$0xff] }
  0x95   : > { %2406 = vmatprep.mubr.f32.mxu1 %v3151_v7  ;;  %v1838_v7 = vld [vmem:[%s3438_s1 + $0x478] sm:$0xff] }
  0x96   : > { %2711 = vmatpush3.bf16.msra.mxu1 %v2680_v6  ;;  %v2696_v0 = vpack.c.bf16 %v1838_v7, %v1837_v57 }
  0x97   : > { %2683 = vmatpush3.bf16.msra.mxu0 %v2680_v6  ;;  %2704 = vmatprep.subr.bf16.mxu1 %v2684_v15 }
  0x98   : > { %2685 = vmatprep.subr.bf16.mxu0 %v2684_v15 }
  0x9a   : > { %2712 = vmatpush3.bf16.msra.mxu1 %v2684_v15 }
  0x9b   : > { %2687 = vmatpush3.bf16.msra.mxu0 %v2684_v15  ;;  %2705 = vmatprep.subr.bf16.mxu1 %v2688_v58 }
  0x9c   : > { %2689 = vmatprep.subr.bf16.mxu0 %v2688_v58 }
  0x9e   : > { %2713 = vmatpush3.bf16.msra.mxu1 %v2688_v58 }
  0x9f   : > { %2691 = vmatpush3.bf16.msra.mxu0 %v2688_v58  ;;  %2706 = vmatprep.subr.bf16.mxu1 %v2692_v63 }
  0xa0   : > { %2693 = vmatprep.subr.bf16.mxu0 %v2692_v63 }
  0xa2   : > { %2714 = vmatpush3.bf16.msra.mxu1 %v2692_v63 }
  0xa3   : > { %2695 = vmatpush3.bf16.msra.mxu0 %v2692_v63  ;;  %2707 = vmatprep.subr.bf16.mxu1 %v2696_v0 }
  0xa4   : > { %2697 = vmatprep.subr.bf16.mxu0 %v2696_v0 }
  0xa6   : > { %2715 = vmatpush3.bf16.msra.mxu1 %v2696_v0 }
  0xa7   : > { %2699 = vmatpush3.bf16.msra.mxu0 %v2696_v0 }
  0xa9   : > { %2407 = vmatmul.mubr.f32.vlgmr.msra.gmra.mrb[6].mxu1 %v3170_v13 }
  0xaa   : > { %2404 = vmatmul.mubr.f32.vlgmr.msra.gmra.mrb[0].mxu0 %v3148_v2  ;;  %2409 = vmatprep.mubr.f32.mxu1 %v3173_v19  ;;  %v1405_v2 = vlaneseq }
  0xac   : > { %v1406_v26 = vshrl.u32 %v1405_v2, 7 }
  0xad   : > { %2410 = vmatmul.mubr.f32.gmra.mrb[8].mxu1 %v1265_v1 }
  0xae   : > { %v1407_v19 = vadd.s32 8, %v1406_v26  ;;  %v1408_v27 = vadd.s32 16, %v1406_v26  ;;  %v1409_v28 = vadd.s32 24, %v1406_v26  ;;  %v1422_v31 = vand.u32 7, %v1406_v26 }
  0xaf   : > { %v1410_v33 = vadd.s32 32, %v1406_v26  ;;  %v1411_v36 = vadd.s32 40, %v1406_v26 }
  0xb0   : > { %v1429_v30 = vand.u32 7, %v1407_v19  ;;  %v1436_v32 = vand.u32 7, %v1408_v27  ;;  %v1443_v35 = vand.u32 7, %v1409_v28  ;;  %vm3410_vm1 = vcmp.lt.s32.totalorder %v1422_v31, 6 }
  0xb1   : > { %v1450_v42 = vand.u32 7, %v1410_v33  ;;  %v1457_v46 = vand.u32 7, %v1411_v36 }
  0xb2   : > { %vm1491_vm0 = vcmp.lt.s32.totalorder %v1429_v30, 6  ;;  %vm1492_vm2 = vcmp.lt.s32.totalorder %v1436_v32, 6  ;;  %vm1493_vm3 = vcmp.lt.s32.totalorder %v1443_v35, 6 }
  0xb3   : > { %vm1494_vm4 = vcmp.lt.s32.totalorder %v1450_v42, 6  ;;  %vm1495_vm5 = vcmp.lt.s32.totalorder %v1457_v46, 6 }
 0x15c   : > { %v2200_v3 = vpop.f32.mrb[0].mxu1 }
 0x15d   : > { %v729_v29 = vpop.f32.mrb[1].mxu1 }
 0x160   : > { %v2203_v9 = vpop.f32.mrb[2].mxu1 }
 0x161   : > { %v2367_v25 = vpop.f32.mrb[2].mxu0  ;;  %v739_v10 = vpop.f32.mrb[3].mxu1 }
 0x162   : > { %v2718_v11 = vadd.f32 %v2367_v25, %v2203_v9  ;;  %v1235_v12 = vpop.f32.mrb[3].mxu0 }
 0x163   : > { %v2720_v17 = vadd.f32 %v1235_v12, %v739_v10 }
 0x164   : > { %v2206_v20 = vpop.f32.mrb[4].mxu1 }
 0x165   : > { %v2370_v21 = vpop.f32.mrb[4].mxu0  ;;  %v749_v22 = vpop.f32.mrb[5].mxu1 }
 0x166   : > { %v2722_v23 = vadd.f32 %v2370_v21, %v2206_v20  ;;  %v1245_v13 = vpop.f32.mrb[5].mxu0 }
 0x167   : > { %v2724_v24 = vadd.f32 %v1245_v13, %v749_v22 }
 0x17c   : > { %v2408_v34 = vpop.f32.mrb[6].mxu1 }
 0x17d   : > { %v2405_v60 = vpop.f32.mrb[0].mxu0  ;;  %v2719_v37 = vadd.f32 %v2718_v11, %v2408_v34  ;;  %v1359_v61 = vpop.f32.mrb[7].mxu1 }
 0x17e   : > { %v2716_v39 = vadd.f32 %v2405_v60, %v2200_v3  ;;  %v1349_v40 = vpop.f32.mrb[1].mxu0  ;;  %v2721_v41 = vadd.f32 %v2720_v17, %v1359_v61 }
 0x17f   : > { %1402 = vst [vmem:[%s3408_s10 + $0x18] sm:$0xff] %v2719_v37  ;;  %v2717_v43 = vadd.f32 %v1349_v40, %v729_v29  ;;  %v1517_v55 = vsel %vm1493_vm3, %v2719_v37, 0.0 }
 0x180   : > { %1400 = vst [vmem:[%s3408_s10 + $0x8] sm:$0xff] %v2716_v39  ;;  %v1515_v44 = vsel %vm1491_vm0, %v2716_v39, 0.0  ;;  %1401 = vst [vmem:[%s3408_s10 + $0x10] sm:$0xff] %v2721_v41  ;;  %v2411_v45 = vpop.f32.mrb[8].mxu1  ;;  %v1516_v49 = vsel %vm1492_vm2, %v2721_v41, 0.0  ;;  %v1534_v8 = vmul.f32 %v1517_v55, %v1517_v55 }
 0x181   : > { %v1532_v47 = vmul.f32 %v1515_v44, %v1515_v44  ;;  %1399 = vst [vmem:[%s3408_s10] sm:$0xff] %v2717_v43  ;;  %v1514_v48 = vsel %vm3410_vm1, %v2717_v43, 0.0  ;;  %v2723_v50 = vadd.f32 %v2722_v23, %v2411_v45  ;;  %v1369_v51 = vpop.f32.mrb[9].mxu1  ;;  %v1533_v5 = vmul.f32 %v1516_v49, %v1516_v49 }
 0x182   : > { %v1520_v52 = vadd.f32 %v1515_v44, %v1514_v48  ;;  %v1531_v53 = vmul.f32 %v1514_v48, %v1514_v48  ;;  %v2725_v54 = vadd.f32 %v2724_v24, %v1369_v51 }
 0x183   : > { %1404 = vst [vmem:[%s3408_s10 + $0x28] sm:$0xff] %v2723_v50  ;;  %v1519_v16 = vsel %vm1495_vm5, %v2723_v50, 0.0 }
 0x184   : > { %v1537_v4 = vadd.f32 %v1532_v47, %v1531_v53  ;;  %v1521_v56 = vadd.f32 %v1520_v52, %v1516_v49  ;;  %1403 = vst [vmem:[%s3408_s10 + $0x20] sm:$0xff] %v2725_v54  ;;  %v1518_v6 = vsel %vm1494_vm4, %v2725_v54, 0.0  ;;  %v1536_v62 = vmul.f32 %v1519_v16, %v1519_v16 }
 0x185   : > { %v1535_v58 = vmul.f32 %v1518_v6, %v1518_v6 }
 0x186   : > { %v1538_v14 = vadd.f32 %v1537_v4, %v1533_v5  ;;  %v1522_v15 = vadd.f32 %v1521_v56, %v1517_v55 }
 0x188   : > { %v1523_v18 = vadd.f32 %v1522_v15, %v1518_v6  ;;  %v1539_v59 = vadd.f32 %v1538_v14, %v1534_v8 }
 0x18a   : > { %v1524_v63 = vadd.f32 %v1523_v18, %v1519_v16  ;;  %v1540_v57 = vadd.f32 %v1539_v59, %v1535_v58 }
 0x18c   : > { %v1525_v7 = vrot.slane %v1524_v63, 4  ;;  %v1541_v0 = vadd.f32 %v1540_v57, %v1536_v62 }
 0x18e   : > { %v1526_v1 = vadd.f32 %v1525_v7, %v1524_v63  ;;  %v1542_v3 = vrot.slane %v1541_v0, 4 }
 0x190   : > { %v1527_v29 = vrot.slane %v1526_v1, 2  ;;  %v1543_v9 = vadd.f32 %v1542_v3, %v1541_v0 }
 0x192   : > { %v1528_v25 = vadd.f32 %v1527_v29, %v1526_v1  ;;  %v1544_v10 = vrot.slane %v1543_v9, 2  ;;  %1551 = sbr.rel (%p1839_p5) target bundleno = 411 (0x19b), region = 40 }
 0x194   : > { %v1529_v11 = vrot.slane %v1528_v25, 1  ;;  %v1545_v12 = vadd.f32 %v1544_v10, %v1543_v9 }
 0x196   : > { %v1530_v17 = vadd.f32 %v1529_v11, %v1528_v25  ;;  %v1546_v20 = vrot.slane %v1545_v12, 1 }
 0x198   : > { %v1547_v21 = vadd.f32 %v1546_v20, %v1545_v12  ;;  %1552 = vst [vmem:[#allocation3] sm:$0x1] (!%p1839_p5), %v1530_v17 }
 0x19a   : > { %1553 = vst [vmem:[#allocation3 + $0x1] sm:$0x1] %v1547_v21 }
 0x19b PF: > { %p1840_p6 = scmp.le.s32.totalorder %s2804_s12, 0 }
 0x19d   : > { %1557 = sbr.rel (%p1840_p6) target bundleno = 421 (0x1a5), region = 44 }
 0x1a1   : > { %v1558_v22 = vld [vmem:[#allocation3] sm:$0x1] (!%p1840_p6)  ;;  %v1561_v23 = vld [vmem:[#allocation3 + $0x1] sm:$0x1] (!%p1840_p6) }
 0x1a2   : > { %v1559_v13 = vadd.f32 (!%p1840_p6), %v1558_v22, %v1530_v17  ;;  %v1562_v24 = vadd.f32 (!%p1840_p6), %v1561_v23, %v1547_v21 }
 0x1a4   : > { %1560 = vst [vmem:[#allocation3] sm:$0x1] %v1559_v13  ;;  %1563 = vst [vmem:[#allocation3 + $0x1] sm:$0x1] %v1562_v24 }
 0x1a5 PF: > { %p1841_p7 = scmp.ne.s32.totalorder %s2804_s12, 1 }
 0x1a7   : > { %1567 = sbr.rel (%p1841_p7) target bundleno = 430 (0x1ae), region = 48 }
 0x1ab   : > { %v1568_v2 = vld [vmem:[#allocation3] sm:$0x3] (!%p1841_p7) }
 0x1ac   : > { %1569 = vst [vmem:[%s3440_s3] sm:$0x3] (!%p1841_p7), %v1568_v2 }
 0x1ae PF: > { %s14_s14 = sadd.s32 1, %s2812_s14   ;;  %s3443_s12 = smov %s2808_s13 }
 0x1af   : > { %p11_p8 = scmp.ge.s32.totalorder %s14_s14, 4   ;;  %s3444_s13 = smov %s3446_s15 }
 0x1b1   :  { %13 = sbr.rel (!%p11_p8) target bundleno = 2 (0x2), region = 101 }

// kernel: bottleneck_forward.13
= control target key start
LH: loop header
LB: loop body
LE: loop exit
PB: predicated region body
PF: predicated region fallthrough
CT: control target
= control target key end

     0   :  { %vm163_vm0 = vcmask 1041409   ;;  %s473_s0 = inlined_call_operand.vmem [shape: f32[4,3,2,3,128], index: 0, kind: input, shape index: {}]   ;;  %s474_s1 = inlined_call_operand.vmem [shape: f32[4,2,128], index: 1, kind: output, shape index: {}]  }
   0x1   :  { %v8_v0 = vld [vmem:[%s473_s0] sm:$0x1]  ;;  %v9_v1 = vld [vmem:[%s473_s0 + $0x4] sm:$0x1]  ;;  %v16_v2 = vld [vmem:[%s473_s0 + $0x1] sm:$0x1] }
   0x2   :  { %v17_v3 = vld [vmem:[%s473_s0 + $0x5] sm:$0x1]  ;;  %v24_v4 = vadd.f32 %v16_v2, %v8_v0  ;;  %v32_v5 = vld [vmem:[%s473_s0 + $0x2] sm:$0x1]  ;;  %v33_v6 = vld [vmem:[%s473_s0 + $0x6] sm:$0x1] }
   0x3   :  { %v25_v7 = vadd.f32 %v17_v3, %v9_v1  ;;  %v183_v8 = vld [vmem:[%s473_s0 + $0x8] sm:$0x1]  ;;  %v184_v10 = vld [vmem:[%s473_s0 + $0xc] sm:$0x1]  ;;  %v191_v12 = vld [vmem:[%s473_s0 + $0x9] sm:$0x1] }
   0x4   :  { %v40_v9 = vadd.f32 %v32_v5, %v24_v4  ;;  %v192_v14 = vld [vmem:[%s473_s0 + $0xd] sm:$0x1]  ;;  %v199_v15 = vld [vmem:[%s473_s0 + $0xa] sm:$0x1]  ;;  %v200_v16 = vld [vmem:[%s473_s0 + $0xe] sm:$0x1] }
   0x5   :  { %v41_v11 = vadd.f32 %v33_v6, %v25_v7  ;;  %v10_v18 = vld [vmem:[%s473_s0 + $0x18] sm:$0x1]  ;;  %v11_v19 = vld [vmem:[%s473_s0 + $0x1c] sm:$0x1]  ;;  %v18_v20 = vld [vmem:[%s473_s0 + $0x19] sm:$0x1] }
   0x6   :  { %v57_v13 = vadd.f32 %v183_v8, %v40_v9  ;;  %v19_v22 = vld [vmem:[%s473_s0 + $0x1d] sm:$0x1]  ;;  %v26_v23 = vadd.f32 %v18_v20, %v10_v18  ;;  %v34_v24 = vld [vmem:[%s473_s0 + $0x1a] sm:$0x1]  ;;  %v35_v25 = vld [vmem:[%s473_s0 + $0x1e] sm:$0x1] }
   0x7   :  { %v58_v17 = vadd.f32 %v184_v10, %v41_v11  ;;  %v207_v27 = vld [vmem:[%s473_s0 + $0x10] sm:$0x1]  ;;  %v27_v28 = vadd.f32 %v19_v22, %v11_v19  ;;  %v185_v29 = vld [vmem:[%s473_s0 + $0x20] sm:$0x1]  ;;  %v208_v31 = vld [vmem:[%s473_s0 + $0x14] sm:$0x1] }
   0x8   :  { %v73_v21 = vadd.f32 %v191_v12, %v57_v13  ;;  %v215_v32 = vld [vmem:[%s473_s0 + $0x11] sm:$0x1]  ;;  %v42_v33 = vadd.f32 %v34_v24, %v26_v23  ;;  %v186_v34 = vld [vmem:[%s473_s0 + $0x24] sm:$0x1]  ;;  %v216_v36 = vld [vmem:[%s473_s0 + $0x15] sm:$0x1] }
   0x9   :  { %v74_v26 = vadd.f32 %v192_v14, %v58_v17  ;;  %v223_v37 = vld [vmem:[%s473_s0 + $0x12] sm:$0x1]  ;;  %v43_v38 = vadd.f32 %v35_v25, %v27_v28  ;;  %v193_v39 = vld [vmem:[%s473_s0 + $0x21] sm:$0x1]  ;;  %v224_v41 = vld [vmem:[%s473_s0 + $0x16] sm:$0x1] }
   0xa   :  { %v89_v30 = vadd.f32 %v199_v15, %v73_v21  ;;  %v59_v42 = vadd.f32 %v185_v29, %v42_v33  ;;  %v194_v43 = vld [vmem:[%s473_s0 + $0x25] sm:$0x1]  ;;  %v201_v44 = vld [vmem:[%s473_s0 + $0x22] sm:$0x1]  ;;  %v202_v45 = vld [vmem:[%s473_s0 + $0x26] sm:$0x1] }
   0xb   :  { %v90_v35 = vadd.f32 %v200_v16, %v74_v26  ;;  %v60_v47 = vadd.f32 %v186_v34, %v43_v38  ;;  %v12_v48 = vld [vmem:[%s473_s0 + $0x30] sm:$0x1]  ;;  %v13_v49 = vld [vmem:[%s473_s0 + $0x34] sm:$0x1]  ;;  %v20_v50 = vld [vmem:[%s473_s0 + $0x31] sm:$0x1] }
   0xc   :  { %v106_v40 = vadd.f32 %v207_v27, %v89_v30  ;;  %v75_v52 = vadd.f32 %v193_v39, %v59_v42  ;;  %v21_v53 = vld [vmem:[%s473_s0 + $0x35] sm:$0x1]  ;;  %v28_v54 = vadd.f32 %v20_v50, %v12_v48  ;;  %v36_v55 = vld [vmem:[%s473_s0 + $0x32] sm:$0x1]  ;;  %v37_v56 = vld [vmem:[%s473_s0 + $0x36] sm:$0x1] }
   0xd   :  { %v107_v46 = vadd.f32 %v208_v31, %v90_v35  ;;  %v76_v58 = vadd.f32 %v194_v43, %v60_v47  ;;  %v209_v59 = vld [vmem:[%s473_s0 + $0x28] sm:$0x1]  ;;  %v29_v60 = vadd.f32 %v21_v53, %v13_v49  ;;  %v187_v61 = vld [vmem:[%s473_s0 + $0x38] sm:$0x1]  ;;  %v210_v0 = vld [vmem:[%s473_s0 + $0x2c] sm:$0x1] }
   0xe   :  { %v122_v51 = vadd.f32 %v215_v32, %v106_v40  ;;  %v91_v63 = vadd.f32 %v201_v44, %v75_v52  ;;  %v217_v1 = vld [vmem:[%s473_s0 + $0x29] sm:$0x1]  ;;  %v44_v2 = vadd.f32 %v36_v55, %v28_v54  ;;  %v188_v3 = vld [vmem:[%s473_s0 + $0x3c] sm:$0x1]  ;;  %v218_v6 = vld [vmem:[%s473_s0 + $0x2d] sm:$0x1] }
   0xf   :  { %v123_v57 = vadd.f32 %v216_v36, %v107_v46  ;;  %v92_v5 = vadd.f32 %v202_v45, %v76_v58  ;;  %v225_v7 = vld [vmem:[%s473_s0 + $0x2a] sm:$0x1]  ;;  %v45_v8 = vadd.f32 %v37_v56, %v29_v60  ;;  %v195_v9 = vld [vmem:[%s473_s0 + $0x39] sm:$0x1]  ;;  %v226_v11 = vld [vmem:[%s473_s0 + $0x2e] sm:$0x1] }
  0x10   :  { %v138_v62 = vadd.f32 %v223_v37, %v122_v51  ;;  %v108_v10 = vadd.f32 %v209_v59, %v91_v63  ;;  %v61_v12 = vadd.f32 %v187_v61, %v44_v2  ;;  %v196_v13 = vld [vmem:[%s473_s0 + $0x3d] sm:$0x1]  ;;  %v203_v14 = vld [vmem:[%s473_s0 + $0x3a] sm:$0x1]  ;;  %v204_v15 = vld [vmem:[%s473_s0 + $0x3e] sm:$0x1] }
  0x11   :  { %v139_v4 = vadd.f32 %v224_v41, %v123_v57  ;;  %v109_v18 = vadd.f32 %v210_v0, %v92_v5  ;;  %v62_v19 = vadd.f32 %v188_v3, %v45_v8  ;;  %v211_v20 = vld [vmem:[%s473_s0 + $0x40] sm:$0x1]  ;;  %v14_v21 = vld [vmem:[%s473_s0 + $0x48] sm:$0x1]  ;;  %v15_v24 = vld [vmem:[%s473_s0 + $0x4c] sm:$0x1] }
  0x12   :  { %v146_v16 = vmul.f32 0.11111111, %v138_v62  ;;  %v124_v22 = vadd.f32 %v217_v1, %v108_v10  ;;  %v77_v23 = vadd.f32 %v195_v9, %v61_v12  ;;  %v22_v25 = vld [vmem:[%s473_s0 + $0x49] sm:$0x1]  ;;  %v23_v26 = vld [vmem:[%s473_s0 + $0x4d] sm:$0x1] }
  0x13   :  { %v147_v17 = vmul.f32 0.11111111, %v139_v4  ;;  %v125_v28 = vadd.f32 %v218_v6, %v109_v18  ;;  %v78_v29 = vadd.f32 %v196_v13, %v62_v19  ;;  %v30_v30 = vadd.f32 %v22_v25, %v14_v21  ;;  %v38_v31 = vld [vmem:[%s473_s0 + $0x4a] sm:$0x1]  ;;  %v39_v32 = vld [vmem:[%s473_s0 + $0x4e] sm:$0x1] }
  0x14   :  { %v140_v33 = vadd.f32 %v225_v7, %v124_v22  ;;  %v93_v34 = vadd.f32 %v203_v14, %v77_v23  ;;  %v212_v35 = vld [vmem:[%s473_s0 + $0x44] sm:$0x1]  ;;  %v31_v36 = vadd.f32 %v23_v26, %v15_v24  ;;  %v189_v37 = vld [vmem:[%s473_s0 + $0x50] sm:$0x1]  ;;  %v219_v41 = vld [vmem:[%s473_s0 + $0x41] sm:$0x1] }
  0x15   :  { %v162_v27 = vrot.slane %v147_v17, 7  ;;  %v141_v39 = vadd.f32 %v226_v11, %v125_v28  ;;  %v94_v40 = vadd.f32 %v204_v15, %v78_v29  ;;  %v46_v42 = vadd.f32 %v38_v31, %v30_v30  ;;  %v190_v43 = vld [vmem:[%s473_s0 + $0x54] sm:$0x1]  ;;  %v220_v45 = vld [vmem:[%s473_s0 + $0x45] sm:$0x1] }
  0x16   :  { %v110_v44 = vadd.f32 %v211_v20, %v93_v34  ;;  %v227_v46 = vld [vmem:[%s473_s0 + $0x42] sm:$0x1]  ;;  %v47_v47 = vadd.f32 %v39_v32, %v31_v36  ;;  %v197_v48 = vld [vmem:[%s473_s0 + $0x51] sm:$0x1]  ;;  %v148_v49 = vmul.f32 0.11111111, %v140_v33 }
  0x17   :  { %v164_v38 = vsel %vm163_vm0, %v162_v27, %v146_v16  ;;  %v149_v50 = vmul.f32 0.11111111, %v141_v39  ;;  %v111_v51 = vadd.f32 %v212_v35, %v94_v40  ;;  %v63_v52 = vadd.f32 %v189_v37, %v46_v42  ;;  %v198_v53 = vld [vmem:[%s473_s0 + $0x55] sm:$0x1]  ;;  %v228_v55 = vld [vmem:[%s473_s0 + $0x46] sm:$0x1] }
  0x18   :  { %175 = vst [vmem:[%s474_s1] sm:$0x3] %v164_v38  ;;  %v126_v54 = vadd.f32 %v219_v41, %v110_v44  ;;  %v64_v56 = vadd.f32 %v190_v43, %v47_v47  ;;  %v205_v57 = vld [vmem:[%s473_s0 + $0x52] sm:$0x1]  ;;  %v206_v61 = vld [vmem:[%s473_s0 + $0x56] sm:$0x1] }
  0x19   :  { %v165_v58 = vrot.slane %v149_v50, 7  ;;  %v127_v59 = vadd.f32 %v220_v45, %v111_v51  ;;  %v79_v60 = vadd.f32 %v197_v48, %v63_v52  ;;  %v213_v0 = vld [vmem:[%s473_s0 + $0x58] sm:$0x1]  ;;  %v214_v4 = vld [vmem:[%s473_s0 + $0x5c] sm:$0x1] }
  0x1a   :  { %v142_v62 = vadd.f32 %v227_v46, %v126_v54  ;;  %v80_v63 = vadd.f32 %v198_v53, %v64_v56  ;;  %v221_v6 = vld [vmem:[%s473_s0 + $0x59] sm:$0x1]  ;;  %v222_v10 = vld [vmem:[%s473_s0 + $0x5d] sm:$0x1]  ;;  %v229_v12 = vld [vmem:[%s473_s0 + $0x5a] sm:$0x1] }
  0x1b   :  { %v166_v1 = vsel %vm163_vm0, %v165_v58, %v148_v49  ;;  %v143_v2 = vadd.f32 %v228_v55, %v127_v59  ;;  %v95_v3 = vadd.f32 %v205_v57, %v79_v60  ;;  %v230_v15 = vld [vmem:[%s473_s0 + $0x5e] sm:$0x1] }
  0x1c   :  { %176 = vst [vmem:[%s474_s1 + $0x2] sm:$0x3] %v166_v1  ;;  %v96_v5 = vadd.f32 %v206_v61, %v80_v63  ;;  %v150_v7 = vmul.f32 0.11111111, %v142_v62 }
  0x1d   :  { %v151_v8 = vmul.f32 0.11111111, %v143_v2  ;;  %v112_v9 = vadd.f32 %v213_v0, %v95_v3 }
  0x1e   :  { %v113_v11 = vadd.f32 %v214_v4, %v96_v5 }
  0x1f   :  { %v167_v13 = vrot.slane %v151_v8, 7  ;;  %v128_v14 = vadd.f32 %v221_v6, %v112_v9 }
  0x20   :  { %v129_v16 = vadd.f32 %v222_v10, %v113_v11 }
  0x21   :  { %v168_v17 = vsel %vm163_vm0, %v167_v13, %v150_v7  ;;  %v144_v18 = vadd.f32 %v229_v12, %v128_v14 }
  0x22   :  { %177 = vst [vmem:[%s474_s1 + $0x4] sm:$0x3] %v168_v17  ;;  %v145_v19 = vadd.f32 %v230_v15, %v129_v16 }
  0x23   :  { %v152_v20 = vmul.f32 0.11111111, %v144_v18 }
  0x24   :  { %v153_v21 = vmul.f32 0.11111111, %v145_v19 }
  0x26   :  { %v169_v22 = vrot.slane %v153_v21, 7 }
  0x28   :  { %v170_v23 = vsel %vm163_vm0, %v169_v22, %v152_v20 }
  0x29   :  { %178 = vst [vmem:[%s474_s1 + $0x6] sm:$0x3] %v170_v23 }

// kernel: bottleneck_forward.14
= control target key start
LH: loop header
LB: loop body
LE: loop exit
PB: predicated region body
PF: predicated region fallthrough
CT: control target
= control target key end

     0   :  { %v234_v0 = vmov 0.0|0.0   ;;  %vm235_vm0 = vmmov 0   ;;  %v236_v4 = vmov 0.0   ;;  %s314_s1 = inlined_call_operand.vmem [shape: f32[128,128], index: 1, kind: input, shape index: {}]   ;;  %s315_s0 = inlined_call_operand.vmem [shape: f32[8,128], index: 0, kind: input, shape index: {}]   ;;  %s316_s2 = inlined_call_operand.vmem [shape: f32[8,128], index: 2, kind: output, shape index: {0}]   ;;  %s317_s3 = inlined_call_operand.vmem [shape: f32[2,128], index: 3, kind: output, shape index: {1}]  }
   0x1   :  { %207 = vmatprep.subr.bf16.mxu0 %v234_v0  ;;  %v20_v1 = vld [vmem:[%s314_s1] sm:$0xff]  ;;  %v21_v2 = vld [vmem:[%s314_s1 + $0x8] sm:$0xff]  ;;  %v22_v3 = vld [vmem:[%s314_s1 + $0x10] sm:$0xff]  ;;  %204 = vmatprep.mubr.msk.f32.mxu0 %vm235_vm0, %v236_v4 }
   0x2   :  { %v208_v5 = vpack.c.bf16 %v21_v2, %v20_v1  ;;  %v23_v6 = vld [vmem:[%s314_s1 + $0x18] sm:$0xff]  ;;  %v24_v8 = vld [vmem:[%s314_s1 + $0x20] sm:$0xff]  ;;  %v25_v9 = vld [vmem:[%s314_s1 + $0x28] sm:$0xff] }
   0x3   :  { %v211_v7 = vpack.c.bf16 %v23_v6, %v22_v3  ;;  %v214_v10 = vpack.c.bf16 %v25_v9, %v24_v8  ;;  %v26_v11 = vld [vmem:[%s314_s1 + $0x30] sm:$0xff]  ;;  %v27_v12 = vld [vmem:[%s314_s1 + $0x38] sm:$0xff]  ;;  %v28_v14 = vld [vmem:[%s314_s1 + $0x40] sm:$0xff] }
   0x4   :  { %209 = vmatpush3.bf16.msra.mxu0 %v208_v5  ;;  %v217_v13 = vpack.c.bf16 %v27_v12, %v26_v11  ;;  %v29_v15 = vld [vmem:[%s314_s1 + $0x48] sm:$0xff]  ;;  %v30_v17 = vld [vmem:[%s314_s1 + $0x50] sm:$0xff]  ;;  %v31_v18 = vld [vmem:[%s314_s1 + $0x58] sm:$0xff] }
   0x5   :  { %210 = vmatprep.subr.bf16.mxu0 %v234_v0  ;;  %v220_v16 = vpack.c.bf16 %v29_v15, %v28_v14  ;;  %v223_v19 = vpack.c.bf16 %v31_v18, %v30_v17  ;;  %v32_v20 = vld [vmem:[%s314_s1 + $0x60] sm:$0xff]  ;;  %v33_v21 = vld [vmem:[%s314_s1 + $0x68] sm:$0xff]  ;;  %v34_v23 = vld [vmem:[%s314_s1 + $0x70] sm:$0xff] }
   0x6   :  { %v226_v22 = vpack.c.bf16 %v33_v21, %v32_v20  ;;  %v35_v24 = vld [vmem:[%s314_s1 + $0x78] sm:$0xff]  ;;  %v19_v26 = vld [vmem:[%s315_s0] sm:$0xff] }
   0x7   :  { %v229_v25 = vpack.c.bf16 %v35_v24, %v34_v23 }
   0x8   :  { %212 = vmatpush3.bf16.msra.mxu0 %v211_v7 }
   0x9   :  { %213 = vmatprep.subr.bf16.mxu0 %v234_v0 }
   0xc   :  { %215 = vmatpush3.bf16.msra.mxu0 %v214_v10 }
   0xd   :  { %216 = vmatprep.subr.bf16.mxu0 %v234_v0 }
  0x10   :  { %218 = vmatpush3.bf16.msra.mxu0 %v217_v13 }
  0x11   :  { %219 = vmatprep.subr.bf16.mxu0 %v234_v0 }
  0x14   :  { %221 = vmatpush3.bf16.msra.mxu0 %v220_v16 }
  0x15   :  { %222 = vmatprep.subr.bf16.mxu0 %v234_v0 }
  0x18   :  { %224 = vmatpush3.bf16.msra.mxu0 %v223_v19 }
  0x19   :  { %225 = vmatprep.subr.bf16.mxu0 %v234_v0 }
  0x1c   :  { %227 = vmatpush3.bf16.msra.mxu0 %v226_v22 }
  0x1d   :  { %228 = vmatprep.subr.bf16.mxu0 %v234_v0 }
  0x20   :  { %230 = vmatpush3.bf16.msra.mxu0 %v229_v25 }
  0x23   :  { %205 = vmatmul.mubr.f32.vlgmr.msra.gmra.mrb[0].mxu0 %v19_v26 }
  0xf6   :  { %v102_v27 = vpop.f32.mrb[0].mxu0 }
  0xf7   :  { %112 = vst [vmem:[%s316_s2] sm:$0xff] %v102_v27  ;;  %v113_v28 = vrot.slane %v102_v27, 4  ;;  %v119_v29 = vmul.f32 %v102_v27, %v102_v27  ;;  %v206_v30 = vpop.f32.mrb[1].mxu0 }
  0xf9   :  { %v114_v31 = vadd.f32 %v113_v28, %v102_v27  ;;  %v120_v32 = vrot.slane %v119_v29, 4 }
  0xfb   :  { %v115_v33 = vrot.slane %v114_v31, 2  ;;  %v121_v34 = vadd.f32 %v120_v32, %v119_v29 }
  0xfd   :  { %v116_v35 = vadd.f32 %v115_v33, %v114_v31  ;;  %v122_v36 = vrot.slane %v121_v34, 2 }
  0xff   :  { %v117_v37 = vrot.slane %v116_v35, 1  ;;  %v123_v38 = vadd.f32 %v122_v36, %v121_v34 }
 0x101   :  { %v118_v39 = vadd.f32 %v117_v37, %v116_v35  ;;  %v124_v40 = vrot.slane %v123_v38, 1 }
 0x103   :  { %v125_v41 = vadd.f32 %v124_v40, %v123_v38  ;;  %130 = vst [vmem:[#allocation3] sm:$0x1] %v118_v39 }
 0x105   :  { %131 = vst [vmem:[#allocation3 + $0x1] sm:$0x1] %v125_v41 }
 0x10c   :  { %v145_v42 = vld [vmem:[#allocation3] sm:$0x3] }
 0x10d   :  { %146 = vst [vmem:[%s317_s3] sm:$0x3] %v145_v42 }

// kernel: bottleneck_forward.17
= control target key start
LH: loop header
LB: loop body
LE: loop exit
PB: predicated region body
PF: predicated region fallthrough
CT: control target
= control target key end

     0   :  { %s226_s0 = inlined_call_operand.vmem [shape: f32[8,128], index: 0, kind: input, shape index: {}]   ;;  %s227_s1 = inlined_call_operand.vmem [shape: f32[2,128], index: 1, kind: input, shape index: {}]   ;;  %s228_s2 = inlined_call_operand.vmem [shape: f32[1,128], index: 2, kind: input, shape index: {}]   ;;  %s229_s3 = inlined_call_operand.vmem [shape: f32[1,128], index: 3, kind: input, shape index: {}]   ;;  %s230_s4 = inlined_call_operand.vmem [shape: f32[8,128], index: 4, kind: input, shape index: {}]   ;;  %s231_s5 = inlined_call_operand.vmem [shape: f32[2,128], index: 5, kind: input, shape index: {}]   ;;  %s232_s6 = inlined_call_operand.vmem [shape: f32[1,128], index: 6, kind: input, shape index: {}]   ;;  %s233_s7 = inlined_call_operand.vmem [shape: f32[1,128], index: 7, kind: input, shape index: {}]   ;;  %s234_s8 = inlined_call_operand.hbm [shape: f32[8,128], index: 8, kind: output, shape index: {}]  }
   0x1   :  { %v30_v0 = vld [vmem:[%s227_s1] sm:$0x1]  ;;  %v32_v1 = vld [vmem:[%s227_s1 + $0x1] sm:$0x1] }
   0x2   :  { %v31_v2 = vmul.f32 0.125, %v30_v0  ;;  %v33_v3 = vmul.f32 0.125, %v32_v1  ;;  %v60_v4 = vld [vmem:[%s231_s5] sm:$0x1]  ;;  %v62_v5 = vld [vmem:[%s231_s5 + $0x1] sm:$0x1] }
   0x3   :  { %v61_v7 = vmul.f32 0.125, %v60_v4  ;;  %v63_v8 = vmul.f32 0.125, %v62_v5 }
   0x4   :  { %v34_v6 = vmul.f32 %v31_v2, %v31_v2 }
   0x5   :  { %13 = vsyncpa [#allocation3], 0  ;;  %v64_v10 = vmul.f32 %v61_v7, %v61_v7  ;;  %v42_v11 = vlaneseq  ;;  %v39_v20 = vld [vmem:[%s228_s2] sm:$0x1] }
   0x6   :  { %v35_v9 = vsub.f32 %v33_v3, %v34_v6  ;;  %v41_v21 = vld [vmem:[%s226_s0] sm:$0xff] }
   0x7   :  { %v65_v13 = vsub.f32 %v63_v8, %v64_v10  ;;  %v43_v16 = vshrl.u32 %v42_v11, 7  ;;  %v69_v24 = vld [vmem:[%s232_s6] sm:$0x1] }
   0x8   :  { %v36_v12 = vmax.f32 %v35_v9, 0.0  ;;  %v71_v25 = vld [vmem:[%s230_s4] sm:$0xff]  ;;  %s138_s4 = smov [#allocation2]  }
   0x9   :  { %v66_v15 = vmax.f32 %v65_v13, 0.0  ;;  %v44_v18 = vsub.s32 0, %v43_v16  ;;  %v107_v32 = vld [vmem:[%s229_s3] ss:$0 sm:$0xff]  ;;  %s99_s6 = sshll.u32 %s138_s4, 4  ;;  %s100_s6 = int_to_ptr.vmem [resolvable:$true] %s99_s6 }
   0xa   :  { %v37_v14 = vadd.f32 1e-05, %v36_v12  ;;  %v108_v35 = vld [vmem:[%s233_s7] ss:$0 sm:$0xff]  ;;  %s114_s21 = scalar_lea.vmem %s100_s6, 128  ;;  %p119_p1 = scmp.lt.s32.totalorder %s100_s6, %s100_s6 }
   0xb   :  { %v67_v17 = vadd.f32 1e-05, %v66_v15  ;;  %v45_v19 = vrot.slane %v31_v2, %v44_v18  ;;  %v75_v22 = vrot.slane %v61_v7, %v44_v18  ;;  %p115_p0 = scmp.ne.s32.totalorder %s100_s6, %s114_s21  ;;  %p120_p2 = scmp.lt.s32.totalorder %s114_s21, %s114_s21 }
   0xc   :  { %110 = vrsqrt.f32 %v37_v14 }
   0xd   :  { %112 = vrsqrt.f32 %v67_v17  ;;  %v46_v27 = vsub.f32 %v41_v21, %v45_v19  ;;  %v76_v31 = vsub.f32 %v71_v25, %v75_v22  ;;  %p121_p3 = por %p120_p2, %p119_p1 }
   0xf   :  { %p122_p4 = pnand %p121_p3, %p115_p0 }
  0x16   :  { %v111_v23 = vpop.eup %110 }
  0x17   :  { %v40_v26 = vmul.f32 %v111_v23, %v39_v20  ;;  %v113_v28 = vpop.eup %112 }
  0x18   :  { %v70_v30 = vmul.f32 %v113_v28, %v69_v24 }
  0x19   :  { %v50_v29 = vrot.slane %v40_v26, %v44_v18 }
  0x1a   :  { %v80_v34 = vrot.slane %v70_v30, %v44_v18 }
  0x1b   :  { %v51_v33 = vmul.f32 %v50_v29, %v46_v27 }
  0x1c   :  { %v81_v37 = vmul.f32 %v80_v34, %v76_v31 }
  0x1d   :  { %v59_v36 = vadd.f32 %v107_v32, %v51_v33 }
  0x1e   :  { %v89_v38 = vadd.f32 %v108_v35, %v81_v37 }
  0x20   :  { %v90_v39 = vadd.f32 %v89_v38, %v59_v36 }
  0x22   :  { %v91_v40 = vmax.f32 %v90_v39, 0.0 }
  0x24   :  { %92 = vst [vmem:[#allocation2] sm:$0xff] %v91_v40 }
  0x25   :  { %125 = shalt.err (!%p122_p4)
}
  0x26   :  { %s126_s7 = scalar_lea.hbm %s234_s8, 128 }
  0x27   :  { %p127_p5 = scmp.ne.s32.totalorder %s234_s8, %s126_s7  ;;  %p130_p6 = scmp.lt.u32.totalorder %s126_s7, %s234_s8 }
  0x29   :  { %p132_p7 = pnand %p130_p6, %p127_p5 }
  0x2b   :  { %135 = shalt.err (!%p132_p7)
}
  0x2c   :  { %102 = dma.vmem_to_hbm [thread:$0]  %s100_s6, 128, %s234_s8, [#allocation3]  }
  0x2d   :  { %136 = dma.done.wait [#allocation3], 128  }
  0x2e   :  { %137 = vsyncadd [#allocation3], 4294967168 }
  0x2f   :  { %106 = vsyncpa [#allocation3], 1 }

</bundles_post_ra>
